<compile_context>
chip_gen: v7x
topology: tpu7x:2x2x1
jax: 0.10.0
libtpu: 0.0.40
codegen_flags: <defaults>
</compile_context>

<pallas_src>
import functools

import numpy as np
import jax
import jax.numpy as jnp
from jax.experimental import pallas as pl
from jax.experimental.pallas import tpu as pltpu

_EPS = 1e-5  # torch.nn.BatchNorm3d default eps


# ---------------------------------------------------------------------------
# Pallas kernels
# ---------------------------------------------------------------------------
def _conv5_kernel(*args, n_in, cins, H, W, relu, has_head):
    """One (n, d, kd) grid step of fused Conv3d(5,1,2) + BN + ReLU (+1x1 head).

    args = x_refs[0..n_in-1], w_refs[0..n_in-1], s_ref, t_ref,
           (wh_ref, bh_ref if has_head), o_ref, acc_ref
    x_ref block : (1, 1, H+4, W+4, Ci)   padded activation, depth slice d+kd
    w_ref block : (1, 25, Ci, Cout)      weights of depth tap kd
    acc_ref     : (H*W, Cout) f32 VMEM accumulator, reduced over kd.
    """
    x_refs = args[:n_in]
    w_refs = args[n_in:2 * n_in]
    s_ref = args[2 * n_in]
    t_ref = args[2 * n_in + 1]
    pos = 2 * n_in + 2
    if has_head:
        wh_ref = args[pos]
        bh_ref = args[pos + 1]
        pos += 2
    o_ref = args[pos]
    acc_ref = args[pos + 1]

    kd = pl.program_id(2)

    @pl.when(kd == 0)
    def _():
        acc_ref[...] = jnp.zeros_like(acc_ref)

    acc = acc_ref[...]
    for b in range(n_in):
        ci = cins[b]
        for kh in range(5):
            for kw in range(5):
                win = x_refs[b][0, 0, kh:kh + H, kw:kw + W, :]   # (H, W, ci) bf16
                a = win.reshape(H * W, ci)
                wt = w_refs[b][0, kh * 5 + kw]                    # (ci, Cout) bf16
                if ci == 1:
                    # degenerate K=1 contraction -> plain broadcast multiply (VPU)
                    acc = acc + a.astype(jnp.float32) * wt.astype(jnp.float32)
                else:
                    acc = acc + jnp.dot(a, wt,
                                        preferred_element_type=jnp.float32)
    acc_ref[...] = acc

    @pl.when(kd == 4)
    def _():
        y = acc_ref[...] * s_ref[...] + t_ref[...]
        if relu:
            y = jnp.maximum(y, 0.0)
        if has_head:
            # fused final 1x1x1 conv (single output channel): row-reduce over C
            y = jnp.sum(y * wh_ref[...], axis=1, keepdims=True) + bh_ref[...]
        o_ref[0, 0] = y.reshape(H, W, -1).astype(o_ref.dtype)


def _convT_kernel(x_ref, w_ref, s_ref, t_ref, o_ref, *, H, W):
    # ConvTranspose3d(k=2, s=2) is non-overlapping: one (H*W, Cin)@(Cin, 8*Cout)
    # matmul per depth slice, BN affine + ReLU fused.
    x = x_ref[0, 0].reshape(H * W, -1)
    y = jnp.dot(x, w_ref[...], preferred_element_type=jnp.float32)
    y = jnp.maximum(y * s_ref[...] + t_ref[...], 0.0)
    o_ref[0, 0] = y.reshape(H, W, -1).astype(o_ref.dtype)


def _maxpool_kernel(x_ref, o_ref):
    # x_ref block: (1, 2, H2, 2, W2, 2, C) -> max over the three size-2 axes.
    x = x_ref[0]
    m = jnp.maximum(x[0], x[1])                # depth pair
    m = jnp.maximum(m[:, 0], m[:, 1])          # height pair
    m = jnp.maximum(m[:, :, 0], m[:, :, 1])    # width pair
    o_ref[0] = m


# ---------------------------------------------------------------------------
# Layer wrappers (thin JAX glue; no HBM relayouts except convT pixel shuffle)
# ---------------------------------------------------------------------------
def _fold_bn(conv_b, bn):
    s = bn["gamma"] * jax.lax.rsqrt(bn["var"] + _EPS)
    t = (conv_b - bn["mean"]) * s + bn["beta"]
    return s, t


def conv5_block(xs, ws, scale, bias, *, relu=True, head=None,
                out_dtype=jnp.bfloat16):
    """Fused multi-input Conv3d(k=5, p=2) + folded-BN affine + ReLU.

    xs: list of (N, D, H, W, Ci) activations with the same spatial shape.
    ws: matching list of (5, 5, 5, Ci, Cout) weights; their contributions are
        summed (== conv over the channel-concatenated input, so the decoder's
        torch.cat never materializes).
    head: optional (w_head (1, Cout), b_head (1, 1)) fused 1x1x1 output conv.
    """
    N, D, H, W, _ = xs[0].shape
    Cout = ws[0].shape[-1]
    cins = tuple(int(w.shape[3]) for w in ws)
    n_in = len(xs)

    xps = [jnp.pad(x.astype(jnp.bfloat16),
                   ((0, 0), (2, 2), (2, 2), (2, 2), (0, 0))) for x in xs]
    wks = [w.astype(jnp.bfloat16).reshape(5, 25, int(w.shape[3]), Cout)
           for w in ws]
    s2 = jnp.asarray(scale, jnp.float32).reshape(1, Cout)
    t2 = jnp.asarray(bias, jnp.float32).reshape(1, Cout)

    in_specs = []
    for ci in cins:
        in_specs.append(
            pl.BlockSpec((1, 1, H + 4, W + 4, ci),
                         lambda n, d, kd: (n, d + kd, 0, 0, 0)))
    for ci in cins:
        in_specs.append(
            pl.BlockSpec((1, 25, ci, Cout), lambda n, d, kd: (kd, 0, 0, 0)))
    in_specs.append(pl.BlockSpec((1, Cout), lambda n, d, kd: (0, 0)))
    in_specs.append(pl.BlockSpec((1, Cout), lambda n, d, kd: (0, 0)))

    operands = list(xps) + list(wks) + [s2, t2]

    has_head = head is not None
    if has_head:
        wh, bh = head
        wh = jnp.asarray(wh, jnp.float32).reshape(1, Cout)
        bh = jnp.asarray(bh, jnp.float32).reshape(1, 1)
        in_specs.append(pl.BlockSpec((1, Cout), lambda n, d, kd: (0, 0)))
        in_specs.append(pl.BlockSpec((1, 1), lambda n, d, kd: (0, 0)))
        operands += [wh, bh]
        out_c = 1
        out_dtype = jnp.float32
    else:
        out_c = Cout

    kernel = functools.partial(_conv5_kernel, n_in=n_in, cins=cins, H=H, W=W,
                               relu=relu, has_head=has_head)
    return pl.pallas_call(
        kernel,
        out_shape=jax.ShapeDtypeStruct((N, D, H, W, out_c), out_dtype),
        grid=(N, D, 5),
        in_specs=in_specs,
        out_specs=pl.BlockSpec((1, 1, H, W, out_c),
                               lambda n, d, kd: (n, d, 0, 0, 0)),
        scratch_shapes=[pltpu.VMEM((H * W, Cout), jnp.float32)],
        compiler_params=pltpu.CompilerParams(
            dimension_semantics=("parallel", "parallel", "arbitrary")),
    )(*operands)


def convT2_bn_relu(x, conv, bn):
    """ConvTranspose3d(k=2, s=2) + BN + ReLU."""
    N, D, H, W, Cin = x.shape
    Cout = conv["w"].shape[-1]
    w2 = conv["w"].astype(jnp.bfloat16).reshape(Cin, 8 * Cout)  # cols = (i,j,k,co)
    s, t = _fold_bn(conv["b"], bn)
    s8 = jnp.tile(s, 8).reshape(1, 8 * Cout).astype(jnp.float32)
    t8 = jnp.tile(t, 8).reshape(1, 8 * Cout).astype(jnp.float32)
    y = pl.pallas_call(
        functools.partial(_convT_kernel, H=H, W=W),
        out_shape=jax.ShapeDtypeStruct((N, D, H, W, 8 * Cout), jnp.bfloat16),
        grid=(N, D),
        in_specs=[
            pl.BlockSpec((1, 1, H, W, Cin), lambda n, d: (n, d, 0, 0, 0)),
            pl.BlockSpec((Cin, 8 * Cout), lambda n, d: (0, 0)),
            pl.BlockSpec((1, 8 * Cout), lambda n, d: (0, 0)),
            pl.BlockSpec((1, 8 * Cout), lambda n, d: (0, 0)),
        ],
        out_specs=pl.BlockSpec((1, 1, H, W, 8 * Cout),
                               lambda n, d: (n, d, 0, 0, 0)),
        compiler_params=pltpu.CompilerParams(
            dimension_semantics=("parallel", "parallel")),
    )(x.astype(jnp.bfloat16), w2, s8, t8)
    # TODO(synk): pixel-shuffle relayout still round-trips HBM once per decoder;
    # folding it into the kernel output needs an in-kernel lane-splitting reshape
    # that is not guaranteed to lower on all Mosaic versions.
    y = y.reshape(N, D, H, W, 2, 2, 2, Cout)
    y = y.transpose(0, 1, 4, 2, 5, 3, 6, 7).reshape(N, 2 * D, 2 * H, 2 * W, Cout)
    return y


def maxpool2(x):
    """MaxPool3d(kernel=2, stride=2).  x: (N, D, H, W, C), even spatial dims."""
    N, D, H, W, C = x.shape
    D2, H2, W2 = D // 2, H // 2, W // 2
    M2 = N * D2
    xr = x.reshape(M2, 2, H2, 2, W2, 2, C)    # contiguous split: free, no relayout
    out = pl.pallas_call(
        _maxpool_kernel,
        out_shape=jax.ShapeDtypeStruct((M2, H2, W2, C), x.dtype),
        grid=(M2,),
        in_specs=[pl.BlockSpec((1, 2, H2, 2, W2, 2, C),
                               lambda i: (i, 0, 0, 0, 0, 0, 0))],
        out_specs=pl.BlockSpec((1, H2, W2, C), lambda i: (i, 0, 0, 0)),
        compiler_params=pltpu.CompilerParams(
            dimension_semantics=("parallel",)),
    )(xr)
    return out.reshape(N, D2, H2, W2, C)


def encoder_apply(p, x):
    s1, t1 = _fold_bn(p["conv1"]["b"], p["bn1"])
    x = conv5_block([x], [p["conv1"]["w"]], s1, t1)
    s2, t2 = _fold_bn(p["conv2"]["b"], p["bn2"])
    return conv5_block([x], [p["conv2"]["w"]], s2, t2)


def decoder_apply(p, x, skip, head=None):
    up = convT2_bn_relu(x, p["convT"], p["bnT"])
    cout = p["convT"]["w"].shape[-1]
    # conv1 consumes torch.cat([up, skip], dim=channel): split the weight instead
    # of materializing the concatenated activation (channel order: up, then skip).
    w_mid = p["conv1"]["w"]
    s1, t1 = _fold_bn(p["conv1"]["b"], p["bn1"])
    mid = conv5_block([up, skip],
                      [w_mid[:, :, :, :cout, :], w_mid[:, :, :, cout:, :]],
                      s1, t1)
    s2, t2 = _fold_bn(p["conv2"]["b"], p["bn2"])
    return conv5_block([mid], [p["conv2"]["w"]], s2, t2, head=head)


# ---------------------------------------------------------------------------
# Deterministic synthetic parameter init (shapes from the PyTorch __init__)
# ---------------------------------------------------------------------------
def _init_conv(key, cin, cout, k):
    kw_, kb_ = jax.random.split(key)
    fan_in = cin * k ** 3
    w = jax.random.normal(kw_, (k, k, k, cin, cout), jnp.float32) / np.sqrt(fan_in)
    b = 0.05 * jax.random.normal(kb_, (cout,), jnp.float32)
    return {"w": w, "b": b}


def _init_convT(key, cin, cout):
    kw_, kb_ = jax.random.split(key)
    w = jax.random.normal(kw_, (cin, 2, 2, 2, cout), jnp.float32) / np.sqrt(cin * 8)
    b = 0.05 * jax.random.normal(kb_, (cout,), jnp.float32)
    return {"w": w, "b": b}


def _init_bn(key, c):
    k1, k2, k3, k4 = jax.random.split(key, 4)
    return {
        "gamma": 1.0 + 0.1 * jax.random.normal(k1, (c,), jnp.float32),
        "beta": 0.1 * jax.random.normal(k2, (c,), jnp.float32),
        "mean": 0.1 * jax.random.normal(k3, (c,), jnp.float32),
        "var": 0.5 + jax.random.uniform(k4, (c,), jnp.float32),
    }


def _init_encoder(key, cin, cout):
    k1, k2, k3, k4 = jax.random.split(key, 4)
    return {"conv1": _init_conv(k1, cin, cout, 5), "bn1": _init_bn(k2, cout),
            "conv2": _init_conv(k3, cout, cout, 5), "bn2": _init_bn(k4, cout)}


def _init_decoder(key, cin, cout):
    k1, k2, k3, k4, k5, k6 = jax.random.split(key, 6)
    return {"convT": _init_convT(k1, cin, cout), "bnT": _init_bn(k2, cout),
            "conv1": _init_conv(k3, cin, cout, 5), "bn1": _init_bn(k4, cout),
            "conv2": _init_conv(k5, cout, cout, 5), "bn2": _init_bn(k6, cout)}


def init_unet(key, depth, base):
    assert depth >= 1, "need at least one decoder to host the fused output conv"
    keys = jax.random.split(key, 2 * depth + 2)
    params = {"input": _init_encoder(keys[0], 1, base)}
    params["encoders"] = [
        _init_encoder(keys[1 + i], base * 2 ** i, base * 2 ** (i + 1))
        for i in range(depth)]
    params["decoders"] = [
        _init_decoder(keys[1 + depth + j], base * 2 ** i, base * 2 ** (i - 1))
        for j, i in enumerate(range(depth, 0, -1))]
    params["out"] = _init_conv(keys[-1], base, 1, 1)
    return params


# ---------------------------------------------------------------------------
# Full forward pass (mirrors LargeKernelUnet.forward)
# ---------------------------------------------------------------------------
def unet_forward(params, x_ncdhw):
    x = jnp.transpose(x_ncdhw, (0, 2, 3, 4, 1)).astype(jnp.float32)  # -> NDHWC
    skips = []
    h = encoder_apply(params["input"], x)
    skips.append(h)
    for ep in params["encoders"]:
        h = encoder_apply(ep, maxpool2(h))
        skips.append(h)
    skips.pop()
    skips.reverse()
    n_dec = len(params["decoders"])
    for i, (dp, skip) in enumerate(zip(params["decoders"], skips)):
        head = None
        if i == n_dec - 1:
            # fuse the final 1x1x1 Conv3d (no BN, no ReLU) into the last conv.
            head = (params["out"]["w"].reshape(1, -1),
                    params["out"]["b"].reshape(1, 1))
        h = decoder_apply(dp, h, skip, head=head)
    return jnp.transpose(h, (0, 4, 1, 2, 3))  # (N, 1, D, H, W) back to NCDHW


if __name__ == "__main__":
    key = jax.random.PRNGKey(0)
    kp, kx, kc = jax.random.split(key, 3)

    # --- self-check 1: fused conv5+BN+ReLU kernel vs lax.conv reference -----
    k1, k2, k3, k4 = jax.random.split(kc, 4)
    xt = jax.random.normal(k1, (1, 8, 8, 8, 3), jnp.float32)
    wt = 0.1 * jax.random.normal(k2, (5, 5, 5, 3, 5), jnp.float32)
    st = 1.0 + 0.1 * jax.random.normal(k3, (5,), jnp.float32)
    tt = 0.1 * jax.random.normal(k4, (5,), jnp.float32)
    got = conv5_block([xt], [wt], st, tt).astype(jnp.float32)
    ref = jax.lax.conv_general_dilated(
        xt.astype(jnp.bfloat16).astype(jnp.float32),
        wt.astype(jnp.bfloat16).astype(jnp.float32),
        (1, 1, 1), ((2, 2), (2, 2), (2, 2)),
        dimension_numbers=("NDHWC", "DHWIO", "NDHWC"))
    ref = jnp.maximum(ref * st + tt, 0.0)
    assert jnp.allclose(got, ref, atol=3e-2, rtol=3e-2), \
        float(jnp.max(jnp.abs(got - ref)))

    # --- self-check 2: maxpool kernel ----------------------------------------
    xm = jax.random.normal(jax.random.fold_in(kc, 7), (2, 4, 8, 8, 6), jnp.float32)
    gotm = maxpool2(xm)
    refm = xm.reshape(2, 2, 2, 4, 2, 4, 2, 6).max(axis=(2, 4, 6))
    assert jnp.allclose(gotm, refm), "maxpool kernel mismatch"

    # --- full network ---------------------------------------------------------
    depth, base = 2, 4
    params = init_unet(kp, depth, base)
    x = jax.random.normal(kx, (2, 1, 16, 16, 16), jnp.float32)   # NCDHW like PyTorch
    fwd = jax.jit(unet_forward)
    y = jax.block_until_ready(fwd(params, x))
    assert y.shape == (2, 1, 16, 16, 16), y.shape
    assert bool(jnp.all(jnp.isfinite(y)))
    print("KERNEL_OK")
</pallas_src>

<mosaic_0001>
module attributes {stable_mosaic.version = 11 : i64} {
  func.func @_conv5_kernel(%arg0: i32, %arg1: i32, %arg2: i32, %arg3: memref<1x1x12x12x3xbf16, #tpu.memory_space<vmem>>, %arg4: memref<1x25x3x5xbf16, #tpu.memory_space<vmem>>, %arg5: memref<1x5xf32, #tpu.memory_space<vmem>>, %arg6: memref<1x5xf32, #tpu.memory_space<vmem>>, %arg7: memref<1x1x8x8x5xbf16, #tpu.memory_space<vmem>>, %arg8: memref<64x5xf32, #tpu.memory_space<vmem>>) attributes {dimension_semantics = [#tpu.dimension_semantics<parallel>, #tpu.dimension_semantics<parallel>, #tpu.dimension_semantics<arbitrary>], iteration_bounds = array<i64: 1, 8, 5>, scalar_prefetch = 0 : i64, scratch_operands = 1 : i64, tpu.core_type = #tpu.core_type<tc>, window_params = [{transform_indices = @transform_0, window_bounds = array<i64: 1, 1, 12, 12, 3>}, {transform_indices = @transform_1, window_bounds = array<i64: 1, 25, 3, 5>}, {pipeline_mode = #tpu.pipeline_mode<synchronous>, transform_indices = @transform_2, window_bounds = array<i64: 1, 5>}, {pipeline_mode = #tpu.pipeline_mode<synchronous>, transform_indices = @transform_3, window_bounds = array<i64: 1, 5>}, {transform_indices = @transform_4, window_bounds = array<i64: 1, 1, 8, 8, 5>}]} {
    %c0_i32 = arith.constant 0 : i32
    %0 = arith.cmpi eq, %arg2, %c0_i32 : i32
    %1 = arith.extui %0 : i1 to i32
    %c0_i32_0 = arith.constant 0 : i32
    %2 = arith.cmpi ne, %1, %c0_i32_0 : i32
    scf.if %2 {
      %cst_230 = arith.constant 0.000000e+00 : f32
      %183 = vector.broadcast %cst_230 : f32 to vector<64x5xf32>
      %c0_231 = arith.constant 0 : index
      %c0_232 = arith.constant 0 : index
      %184 = vector.load %arg8[%c0_231, %c0_232] : memref<64x5xf32, #tpu.memory_space<vmem>>, vector<64x5xf32>
      tpu.vector_store %arg8[%c0_231, %c0_232], %183 {strides = array<i32>} : memref<64x5xf32, #tpu.memory_space<vmem>>, vector<64x5xf32>,
    } else {
    }
    %c0 = arith.constant 0 : index
    %c0_1 = arith.constant 0 : index
    %3 = vector.load %arg8[%c0, %c0_1] : memref<64x5xf32, #tpu.memory_space<vmem>>, vector<64x5xf32>
    %c0_2 = arith.constant 0 : index
    %c0_3 = arith.constant 0 : index
    %c0_4 = arith.constant 0 : index
    %c0_5 = arith.constant 0 : index
    %c0_6 = arith.constant 0 : index
    %4 = vector.load %arg3[%c0_2, %c0_3, %c0_4, %c0_5, %c0_6] : memref<1x1x12x12x3xbf16, #tpu.memory_space<vmem>>, vector<1x1x8x8x3xbf16>
    %5 = vector.shape_cast %4 : vector<1x1x8x8x3xbf16> to vector<8x8x3xbf16>
    %6 = vector.shape_cast %5 : vector<8x8x3xbf16> to vector<64x3xbf16>
    %c0_7 = arith.constant 0 : index
    %c0_8 = arith.constant 0 : index
    %c0_9 = arith.constant 0 : index
    %c0_10 = arith.constant 0 : index
    %7 = vector.load %arg4[%c0_7, %c0_8, %c0_9, %c0_10] : memref<1x25x3x5xbf16, #tpu.memory_space<vmem>>, vector<1x1x3x5xbf16>
    %8 = vector.shape_cast %7 : vector<1x1x3x5xbf16> to vector<3x5xbf16>
    %cst = arith.constant dense<0.000000e+00> : vector<64x5xf32>
    %9 = tpu.matmul %6, %8, %cst {dimension_numbers = #tpu.dot_dimension_numbers<[1], [0], [0], [1], [0, 0, 1, 1], [], []>} : vector<64x3xbf16>, vector<3x5xbf16>, vector<64x5xf32> -> vector<64x5xf32>
    %10 = arith.addf %3, %9 : vector<64x5xf32>
    %c0_11 = arith.constant 0 : index
    %c0_12 = arith.constant 0 : index
    %c0_13 = arith.constant 0 : index
    %c1 = arith.constant 1 : index
    %c0_14 = arith.constant 0 : index
    %11 = vector.load %arg3[%c0_11, %c0_12, %c0_13, %c1, %c0_14] : memref<1x1x12x12x3xbf16, #tpu.memory_space<vmem>>, vector<1x1x8x8x3xbf16>
    %12 = vector.shape_cast %11 : vector<1x1x8x8x3xbf16> to vector<8x8x3xbf16>
    %13 = vector.shape_cast %12 : vector<8x8x3xbf16> to vector<64x3xbf16>
    %c0_15 = arith.constant 0 : index
    %c1_16 = arith.constant 1 : index
    %c0_17 = arith.constant 0 : index
    %c0_18 = arith.constant 0 : index
    %14 = vector.load %arg4[%c0_15, %c1_16, %c0_17, %c0_18] : memref<1x25x3x5xbf16, #tpu.memory_space<vmem>>, vector<1x1x3x5xbf16>
    %15 = vector.shape_cast %14 : vector<1x1x3x5xbf16> to vector<3x5xbf16>
    %cst_19 = arith.constant dense<0.000000e+00> : vector<64x5xf32>
    %16 = tpu.matmul %13, %15, %cst_19 {dimension_numbers = #tpu.dot_dimension_numbers<[1], [0], [0], [1], [0, 0, 1, 1], [], []>} : vector<64x3xbf16>, vector<3x5xbf16>, vector<64x5xf32> -> vector<64x5xf32>
    %17 = arith.addf %10, %16 : vector<64x5xf32>
    %c0_20 = arith.constant 0 : index
    %c0_21 = arith.constant 0 : index
    %c0_22 = arith.constant 0 : index
    %c2 = arith.constant 2 : index
    %c0_23 = arith.constant 0 : index
    %18 = vector.load %arg3[%c0_20, %c0_21, %c0_22, %c2, %c0_23] : memref<1x1x12x12x3xbf16, #tpu.memory_space<vmem>>, vector<1x1x8x8x3xbf16>
    %19 = vector.shape_cast %18 : vector<1x1x8x8x3xbf16> to vector<8x8x3xbf16>
    %20 = vector.shape_cast %19 : vector<8x8x3xbf16> to vector<64x3xbf16>
    %c0_24 = arith.constant 0 : index
    %c2_25 = arith.constant 2 : index
    %c0_26 = arith.constant 0 : index
    %c0_27 = arith.constant 0 : index
    %21 = vector.load %arg4[%c0_24, %c2_25, %c0_26, %c0_27] : memref<1x25x3x5xbf16, #tpu.memory_space<vmem>>, vector<1x1x3x5xbf16>
    %22 = vector.shape_cast %21 : vector<1x1x3x5xbf16> to vector<3x5xbf16>
    %cst_28 = arith.constant dense<0.000000e+00> : vector<64x5xf32>
    %23 = tpu.matmul %20, %22, %cst_28 {dimension_numbers = #tpu.dot_dimension_numbers<[1], [0], [0], [1], [0, 0, 1, 1], [], []>} : vector<64x3xbf16>, vector<3x5xbf16>, vector<64x5xf32> -> vector<64x5xf32>
    %24 = arith.addf %17, %23 : vector<64x5xf32>
    %c0_29 = arith.constant 0 : index
    %c0_30 = arith.constant 0 : index
    %c0_31 = arith.constant 0 : index
    %c3 = arith.constant 3 : index
    %c0_32 = arith.constant 0 : index
    %25 = vector.load %arg3[%c0_29, %c0_30, %c0_31, %c3, %c0_32] : memref<1x1x12x12x3xbf16, #tpu.memory_space<vmem>>, vector<1x1x8x8x3xbf16>
    %26 = vector.shape_cast %25 : vector<1x1x8x8x3xbf16> to vector<8x8x3xbf16>
    %27 = vector.shape_cast %26 : vector<8x8x3xbf16> to vector<64x3xbf16>
    %c0_33 = arith.constant 0 : index
    %c3_34 = arith.constant 3 : index
    %c0_35 = arith.constant 0 : index
    %c0_36 = arith.constant 0 : index
    %28 = vector.load %arg4[%c0_33, %c3_34, %c0_35, %c0_36] : memref<1x25x3x5xbf16, #tpu.memory_space<vmem>>, vector<1x1x3x5xbf16>
    %29 = vector.shape_cast %28 : vector<1x1x3x5xbf16> to vector<3x5xbf16>
    %cst_37 = arith.constant dense<0.000000e+00> : vector<64x5xf32>
    %30 = tpu.matmul %27, %29, %cst_37 {dimension_numbers = #tpu.dot_dimension_numbers<[1], [0], [0], [1], [0, 0, 1, 1], [], []>} : vector<64x3xbf16>, vector<3x5xbf16>, vector<64x5xf32> -> vector<64x5xf32>
    %31 = arith.addf %24, %30 : vector<64x5xf32>
    %c0_38 = arith.constant 0 : index
    %c0_39 = arith.constant 0 : index
    %c0_40 = arith.constant 0 : index
    %c4 = arith.constant 4 : index
    %c0_41 = arith.constant 0 : index
    %32 = vector.load %arg3[%c0_38, %c0_39, %c0_40, %c4, %c0_41] : memref<1x1x12x12x3xbf16, #tpu.memory_space<vmem>>, vector<1x1x8x8x3xbf16>
    %33 = vector.shape_cast %32 : vector<1x1x8x8x3xbf16> to vector<8x8x3xbf16>
    %34 = vector.shape_cast %33 : vector<8x8x3xbf16> to vector<64x3xbf16>
    %c0_42 = arith.constant 0 : index
    %c4_43 = arith.constant 4 : index
    %c0_44 = arith.constant 0 : index
    %c0_45 = arith.constant 0 : index
    %35 = vector.load %arg4[%c0_42, %c4_43, %c0_44, %c0_45] : memref<1x25x3x5xbf16, #tpu.memory_space<vmem>>, vector<1x1x3x5xbf16>
    %36 = vector.shape_cast %35 : vector<1x1x3x5xbf16> to vector<3x5xbf16>
    %cst_46 = arith.constant dense<0.000000e+00> : vector<64x5xf32>
    %37 = tpu.matmul %34, %36, %cst_46 {dimension_numbers = #tpu.dot_dimension_numbers<[1], [0], [0], [1], [0, 0, 1, 1], [], []>} : vector<64x3xbf16>, vector<3x5xbf16>, vector<64x5xf32> -> vector<64x5xf32>
    %38 = arith.addf %31, %37 : vector<64x5xf32>
    %c0_47 = arith.constant 0 : index
    %c0_48 = arith.constant 0 : index
    %c1_49 = arith.constant 1 : index
    %c0_50 = arith.constant 0 : index
    %c0_51 = arith.constant 0 : index
    %39 = vector.load %arg3[%c0_47, %c0_48, %c1_49, %c0_50, %c0_51] : memref<1x1x12x12x3xbf16, #tpu.memory_space<vmem>>, vector<1x1x8x8x3xbf16>
    %40 = vector.shape_cast %39 : vector<1x1x8x8x3xbf16> to vector<8x8x3xbf16>
    %41 = vector.shape_cast %40 : vector<8x8x3xbf16> to vector<64x3xbf16>
    %c0_52 = arith.constant 0 : index
    %c5 = arith.constant 5 : index
    %c0_53 = arith.constant 0 : index
    %c0_54 = arith.constant 0 : index
    %42 = vector.load %arg4[%c0_52, %c5, %c0_53, %c0_54] : memref<1x25x3x5xbf16, #tpu.memory_space<vmem>>, vector<1x1x3x5xbf16>
    %43 = vector.shape_cast %42 : vector<1x1x3x5xbf16> to vector<3x5xbf16>
    %cst_55 = arith.constant dense<0.000000e+00> : vector<64x5xf32>
    %44 = tpu.matmul %41, %43, %cst_55 {dimension_numbers = #tpu.dot_dimension_numbers<[1], [0], [0], [1], [0, 0, 1, 1], [], []>} : vector<64x3xbf16>, vector<3x5xbf16>, vector<64x5xf32> -> vector<64x5xf32>
    %45 = arith.addf %38, %44 : vector<64x5xf32>
    %c0_56 = arith.constant 0 : index
    %c0_57 = arith.constant 0 : index
    %c1_58 = arith.constant 1 : index
    %c1_59 = arith.constant 1 : index
    %c0_60 = arith.constant 0 : index
    %46 = vector.load %arg3[%c0_56, %c0_57, %c1_58, %c1_59, %c0_60] : memref<1x1x12x12x3xbf16, #tpu.memory_space<vmem>>, vector<1x1x8x8x3xbf16>
    %47 = vector.shape_cast %46 : vector<1x1x8x8x3xbf16> to vector<8x8x3xbf16>
    %48 = vector.shape_cast %47 : vector<8x8x3xbf16> to vector<64x3xbf16>
    %c0_61 = arith.constant 0 : index
    %c6 = arith.constant 6 : index
    %c0_62 = arith.constant 0 : index
    %c0_63 = arith.constant 0 : index
    %49 = vector.load %arg4[%c0_61, %c6, %c0_62, %c0_63] : memref<1x25x3x5xbf16, #tpu.memory_space<vmem>>, vector<1x1x3x5xbf16>
    %50 = vector.shape_cast %49 : vector<1x1x3x5xbf16> to vector<3x5xbf16>
    %cst_64 = arith.constant dense<0.000000e+00> : vector<64x5xf32>
    %51 = tpu.matmul %48, %50, %cst_64 {dimension_numbers = #tpu.dot_dimension_numbers<[1], [0], [0], [1], [0, 0, 1, 1], [], []>} : vector<64x3xbf16>, vector<3x5xbf16>, vector<64x5xf32> -> vector<64x5xf32>
    %52 = arith.addf %45, %51 : vector<64x5xf32>
    %c0_65 = arith.constant 0 : index
    %c0_66 = arith.constant 0 : index
    %c1_67 = arith.constant 1 : index
    %c2_68 = arith.constant 2 : index
    %c0_69 = arith.constant 0 : index
    %53 = vector.load %arg3[%c0_65, %c0_66, %c1_67, %c2_68, %c0_69] : memref<1x1x12x12x3xbf16, #tpu.memory_space<vmem>>, vector<1x1x8x8x3xbf16>
    %54 = vector.shape_cast %53 : vector<1x1x8x8x3xbf16> to vector<8x8x3xbf16>
    %55 = vector.shape_cast %54 : vector<8x8x3xbf16> to vector<64x3xbf16>
    %c0_70 = arith.constant 0 : index
    %c7 = arith.constant 7 : index
    %c0_71 = arith.constant 0 : index
    %c0_72 = arith.constant 0 : index
    %56 = vector.load %arg4[%c0_70, %c7, %c0_71, %c0_72] : memref<1x25x3x5xbf16, #tpu.memory_space<vmem>>, vector<1x1x3x5xbf16>
    %57 = vector.shape_cast %56 : vector<1x1x3x5xbf16> to vector<3x5xbf16>
    %cst_73 = arith.constant dense<0.000000e+00> : vector<64x5xf32>
    %58 = tpu.matmul %55, %57, %cst_73 {dimension_numbers = #tpu.dot_dimension_numbers<[1], [0], [0], [1], [0, 0, 1, 1], [], []>} : vector<64x3xbf16>, vector<3x5xbf16>, vector<64x5xf32> -> vector<64x5xf32>
    %59 = arith.addf %52, %58 : vector<64x5xf32>
    %c0_74 = arith.constant 0 : index
    %c0_75 = arith.constant 0 : index
    %c1_76 = arith.constant 1 : index
    %c3_77 = arith.constant 3 : index
    %c0_78 = arith.constant 0 : index
    %60 = vector.load %arg3[%c0_74, %c0_75, %c1_76, %c3_77, %c0_78] : memref<1x1x12x12x3xbf16, #tpu.memory_space<vmem>>, vector<1x1x8x8x3xbf16>
    %61 = vector.shape_cast %60 : vector<1x1x8x8x3xbf16> to vector<8x8x3xbf16>
    %62 = vector.shape_cast %61 : vector<8x8x3xbf16> to vector<64x3xbf16>
    %c0_79 = arith.constant 0 : index
    %c8 = arith.constant 8 : index
    %c0_80 = arith.constant 0 : index
    %c0_81 = arith.constant 0 : index
    %63 = vector.load %arg4[%c0_79, %c8, %c0_80, %c0_81] : memref<1x25x3x5xbf16, #tpu.memory_space<vmem>>, vector<1x1x3x5xbf16>
    %64 = vector.shape_cast %63 : vector<1x1x3x5xbf16> to vector<3x5xbf16>
    %cst_82 = arith.constant dense<0.000000e+00> : vector<64x5xf32>
    %65 = tpu.matmul %62, %64, %cst_82 {dimension_numbers = #tpu.dot_dimension_numbers<[1], [0], [0], [1], [0, 0, 1, 1], [], []>} : vector<64x3xbf16>, vector<3x5xbf16>, vector<64x5xf32> -> vector<64x5xf32>
    %66 = arith.addf %59, %65 : vector<64x5xf32>
    %c0_83 = arith.constant 0 : index
    %c0_84 = arith.constant 0 : index
    %c1_85 = arith.constant 1 : index
    %c4_86 = arith.constant 4 : index
    %c0_87 = arith.constant 0 : index
    %67 = vector.load %arg3[%c0_83, %c0_84, %c1_85, %c4_86, %c0_87] : memref<1x1x12x12x3xbf16, #tpu.memory_space<vmem>>, vector<1x1x8x8x3xbf16>
    %68 = vector.shape_cast %67 : vector<1x1x8x8x3xbf16> to vector<8x8x3xbf16>
    %69 = vector.shape_cast %68 : vector<8x8x3xbf16> to vector<64x3xbf16>
    %c0_88 = arith.constant 0 : index
    %c9 = arith.constant 9 : index
    %c0_89 = arith.constant 0 : index
    %c0_90 = arith.constant 0 : index
    %70 = vector.load %arg4[%c0_88, %c9, %c0_89, %c0_90] : memref<1x25x3x5xbf16, #tpu.memory_space<vmem>>, vector<1x1x3x5xbf16>
    %71 = vector.shape_cast %70 : vector<1x1x3x5xbf16> to vector<3x5xbf16>
    %cst_91 = arith.constant dense<0.000000e+00> : vector<64x5xf32>
    %72 = tpu.matmul %69, %71, %cst_91 {dimension_numbers = #tpu.dot_dimension_numbers<[1], [0], [0], [1], [0, 0, 1, 1], [], []>} : vector<64x3xbf16>, vector<3x5xbf16>, vector<64x5xf32> -> vector<64x5xf32>
    %73 = arith.addf %66, %72 : vector<64x5xf32>
    %c0_92 = arith.constant 0 : index
    %c0_93 = arith.constant 0 : index
    %c2_94 = arith.constant 2 : index
    %c0_95 = arith.constant 0 : index
    %c0_96 = arith.constant 0 : index
    %74 = vector.load %arg3[%c0_92, %c0_93, %c2_94, %c0_95, %c0_96] : memref<1x1x12x12x3xbf16, #tpu.memory_space<vmem>>, vector<1x1x8x8x3xbf16>
    %75 = vector.shape_cast %74 : vector<1x1x8x8x3xbf16> to vector<8x8x3xbf16>
    %76 = vector.shape_cast %75 : vector<8x8x3xbf16> to vector<64x3xbf16>
    %c0_97 = arith.constant 0 : index
    %c10 = arith.constant 10 : index
    %c0_98 = arith.constant 0 : index
    %c0_99 = arith.constant 0 : index
    %77 = vector.load %arg4[%c0_97, %c10, %c0_98, %c0_99] : memref<1x25x3x5xbf16, #tpu.memory_space<vmem>>, vector<1x1x3x5xbf16>
    %78 = vector.shape_cast %77 : vector<1x1x3x5xbf16> to vector<3x5xbf16>
    %cst_100 = arith.constant dense<0.000000e+00> : vector<64x5xf32>
    %79 = tpu.matmul %76, %78, %cst_100 {dimension_numbers = #tpu.dot_dimension_numbers<[1], [0], [0], [1], [0, 0, 1, 1], [], []>} : vector<64x3xbf16>, vector<3x5xbf16>, vector<64x5xf32> -> vector<64x5xf32>
    %80 = arith.addf %73, %79 : vector<64x5xf32>
    %c0_101 = arith.constant 0 : index
    %c0_102 = arith.constant 0 : index
    %c2_103 = arith.constant 2 : index
    %c1_104 = arith.constant 1 : index
    %c0_105 = arith.constant 0 : index
    %81 = vector.load %arg3[%c0_101, %c0_102, %c2_103, %c1_104, %c0_105] : memref<1x1x12x12x3xbf16, #tpu.memory_space<vmem>>, vector<1x1x8x8x3xbf16>
    %82 = vector.shape_cast %81 : vector<1x1x8x8x3xbf16> to vector<8x8x3xbf16>
    %83 = vector.shape_cast %82 : vector<8x8x3xbf16> to vector<64x3xbf16>
    %c0_106 = arith.constant 0 : index
    %c11 = arith.constant 11 : index
    %c0_107 = arith.constant 0 : index
    %c0_108 = arith.constant 0 : index
    %84 = vector.load %arg4[%c0_106, %c11, %c0_107, %c0_108] : memref<1x25x3x5xbf16, #tpu.memory_space<vmem>>, vector<1x1x3x5xbf16>
    %85 = vector.shape_cast %84 : vector<1x1x3x5xbf16> to vector<3x5xbf16>
    %cst_109 = arith.constant dense<0.000000e+00> : vector<64x5xf32>
    %86 = tpu.matmul %83, %85, %cst_109 {dimension_numbers = #tpu.dot_dimension_numbers<[1], [0], [0], [1], [0, 0, 1, 1], [], []>} : vector<64x3xbf16>, vector<3x5xbf16>, vector<64x5xf32> -> vector<64x5xf32>
    %87 = arith.addf %80, %86 : vector<64x5xf32>
    %c0_110 = arith.constant 0 : index
    %c0_111 = arith.constant 0 : index
    %c2_112 = arith.constant 2 : index
    %c2_113 = arith.constant 2 : index
    %c0_114 = arith.constant 0 : index
    %88 = vector.load %arg3[%c0_110, %c0_111, %c2_112, %c2_113, %c0_114] : memref<1x1x12x12x3xbf16, #tpu.memory_space<vmem>>, vector<1x1x8x8x3xbf16>
    %89 = vector.shape_cast %88 : vector<1x1x8x8x3xbf16> to vector<8x8x3xbf16>
    %90 = vector.shape_cast %89 : vector<8x8x3xbf16> to vector<64x3xbf16>
    %c0_115 = arith.constant 0 : index
    %c12 = arith.constant 12 : index
    %c0_116 = arith.constant 0 : index
    %c0_117 = arith.constant 0 : index
    %91 = vector.load %arg4[%c0_115, %c12, %c0_116, %c0_117] : memref<1x25x3x5xbf16, #tpu.memory_space<vmem>>, vector<1x1x3x5xbf16>
    %92 = vector.shape_cast %91 : vector<1x1x3x5xbf16> to vector<3x5xbf16>
    %cst_118 = arith.constant dense<0.000000e+00> : vector<64x5xf32>
    %93 = tpu.matmul %90, %92, %cst_118 {dimension_numbers = #tpu.dot_dimension_numbers<[1], [0], [0], [1], [0, 0, 1, 1], [], []>} : vector<64x3xbf16>, vector<3x5xbf16>, vector<64x5xf32> -> vector<64x5xf32>
    %94 = arith.addf %87, %93 : vector<64x5xf32>
    %c0_119 = arith.constant 0 : index
    %c0_120 = arith.constant 0 : index
    %c2_121 = arith.constant 2 : index
    %c3_122 = arith.constant 3 : index
    %c0_123 = arith.constant 0 : index
    %95 = vector.load %arg3[%c0_119, %c0_120, %c2_121, %c3_122, %c0_123] : memref<1x1x12x12x3xbf16, #tpu.memory_space<vmem>>, vector<1x1x8x8x3xbf16>
    %96 = vector.shape_cast %95 : vector<1x1x8x8x3xbf16> to vector<8x8x3xbf16>
    %97 = vector.shape_cast %96 : vector<8x8x3xbf16> to vector<64x3xbf16>
    %c0_124 = arith.constant 0 : index
    %c13 = arith.constant 13 : index
    %c0_125 = arith.constant 0 : index
    %c0_126 = arith.constant 0 : index
    %98 = vector.load %arg4[%c0_124, %c13, %c0_125, %c0_126] : memref<1x25x3x5xbf16, #tpu.memory_space<vmem>>, vector<1x1x3x5xbf16>
    %99 = vector.shape_cast %98 : vector<1x1x3x5xbf16> to vector<3x5xbf16>
    %cst_127 = arith.constant dense<0.000000e+00> : vector<64x5xf32>
    %100 = tpu.matmul %97, %99, %cst_127 {dimension_numbers = #tpu.dot_dimension_numbers<[1], [0], [0], [1], [0, 0, 1, 1], [], []>} : vector<64x3xbf16>, vector<3x5xbf16>, vector<64x5xf32> -> vector<64x5xf32>
    %101 = arith.addf %94, %100 : vector<64x5xf32>
    %c0_128 = arith.constant 0 : index
    %c0_129 = arith.constant 0 : index
    %c2_130 = arith.constant 2 : index
    %c4_131 = arith.constant 4 : index
    %c0_132 = arith.constant 0 : index
    %102 = vector.load %arg3[%c0_128, %c0_129, %c2_130, %c4_131, %c0_132] : memref<1x1x12x12x3xbf16, #tpu.memory_space<vmem>>, vector<1x1x8x8x3xbf16>
    %103 = vector.shape_cast %102 : vector<1x1x8x8x3xbf16> to vector<8x8x3xbf16>
    %104 = vector.shape_cast %103 : vector<8x8x3xbf16> to vector<64x3xbf16>
    %c0_133 = arith.constant 0 : index
    %c14 = arith.constant 14 : index
    %c0_134 = arith.constant 0 : index
    %c0_135 = arith.constant 0 : index
    %105 = vector.load %arg4[%c0_133, %c14, %c0_134, %c0_135] : memref<1x25x3x5xbf16, #tpu.memory_space<vmem>>, vector<1x1x3x5xbf16>
    %106 = vector.shape_cast %105 : vector<1x1x3x5xbf16> to vector<3x5xbf16>
    %cst_136 = arith.constant dense<0.000000e+00> : vector<64x5xf32>
    %107 = tpu.matmul %104, %106, %cst_136 {dimension_numbers = #tpu.dot_dimension_numbers<[1], [0], [0], [1], [0, 0, 1, 1], [], []>} : vector<64x3xbf16>, vector<3x5xbf16>, vector<64x5xf32> -> vector<64x5xf32>
    %108 = arith.addf %101, %107 : vector<64x5xf32>
    %c0_137 = arith.constant 0 : index
    %c0_138 = arith.constant 0 : index
    %c3_139 = arith.constant 3 : index
    %c0_140 = arith.constant 0 : index
    %c0_141 = arith.constant 0 : index
    %109 = vector.load %arg3[%c0_137, %c0_138, %c3_139, %c0_140, %c0_141] : memref<1x1x12x12x3xbf16, #tpu.memory_space<vmem>>, vector<1x1x8x8x3xbf16>
    %110 = vector.shape_cast %109 : vector<1x1x8x8x3xbf16> to vector<8x8x3xbf16>
    %111 = vector.shape_cast %110 : vector<8x8x3xbf16> to vector<64x3xbf16>
    %c0_142 = arith.constant 0 : index
    %c15 = arith.constant 15 : index
    %c0_143 = arith.constant 0 : index
    %c0_144 = arith.constant 0 : index
    %112 = vector.load %arg4[%c0_142, %c15, %c0_143, %c0_144] : memref<1x25x3x5xbf16, #tpu.memory_space<vmem>>, vector<1x1x3x5xbf16>
    %113 = vector.shape_cast %112 : vector<1x1x3x5xbf16> to vector<3x5xbf16>
    %cst_145 = arith.constant dense<0.000000e+00> : vector<64x5xf32>
    %114 = tpu.matmul %111, %113, %cst_145 {dimension_numbers = #tpu.dot_dimension_numbers<[1], [0], [0], [1], [0, 0, 1, 1], [], []>} : vector<64x3xbf16>, vector<3x5xbf16>, vector<64x5xf32> -> vector<64x5xf32>
    %115 = arith.addf %108, %114 : vector<64x5xf32>
    %c0_146 = arith.constant 0 : index
    %c0_147 = arith.constant 0 : index
    %c3_148 = arith.constant 3 : index
    %c1_149 = arith.constant 1 : index
    %c0_150 = arith.constant 0 : index
    %116 = vector.load %arg3[%c0_146, %c0_147, %c3_148, %c1_149, %c0_150] : memref<1x1x12x12x3xbf16, #tpu.memory_space<vmem>>, vector<1x1x8x8x3xbf16>
    %117 = vector.shape_cast %116 : vector<1x1x8x8x3xbf16> to vector<8x8x3xbf16>
    %118 = vector.shape_cast %117 : vector<8x8x3xbf16> to vector<64x3xbf16>
    %c0_151 = arith.constant 0 : index
    %c16 = arith.constant 16 : index
    %c0_152 = arith.constant 0 : index
    %c0_153 = arith.constant 0 : index
    %119 = vector.load %arg4[%c0_151, %c16, %c0_152, %c0_153] : memref<1x25x3x5xbf16, #tpu.memory_space<vmem>>, vector<1x1x3x5xbf16>
    %120 = vector.shape_cast %119 : vector<1x1x3x5xbf16> to vector<3x5xbf16>
    %cst_154 = arith.constant dense<0.000000e+00> : vector<64x5xf32>
    %121 = tpu.matmul %118, %120, %cst_154 {dimension_numbers = #tpu.dot_dimension_numbers<[1], [0], [0], [1], [0, 0, 1, 1], [], []>} : vector<64x3xbf16>, vector<3x5xbf16>, vector<64x5xf32> -> vector<64x5xf32>
    %122 = arith.addf %115, %121 : vector<64x5xf32>
    %c0_155 = arith.constant 0 : index
    %c0_156 = arith.constant 0 : index
    %c3_157 = arith.constant 3 : index
    %c2_158 = arith.constant 2 : index
    %c0_159 = arith.constant 0 : index
    %123 = vector.load %arg3[%c0_155, %c0_156, %c3_157, %c2_158, %c0_159] : memref<1x1x12x12x3xbf16, #tpu.memory_space<vmem>>, vector<1x1x8x8x3xbf16>
    %124 = vector.shape_cast %123 : vector<1x1x8x8x3xbf16> to vector<8x8x3xbf16>
    %125 = vector.shape_cast %124 : vector<8x8x3xbf16> to vector<64x3xbf16>
    %c0_160 = arith.constant 0 : index
    %c17 = arith.constant 17 : index
    %c0_161 = arith.constant 0 : index
    %c0_162 = arith.constant 0 : index
    %126 = vector.load %arg4[%c0_160, %c17, %c0_161, %c0_162] : memref<1x25x3x5xbf16, #tpu.memory_space<vmem>>, vector<1x1x3x5xbf16>
    %127 = vector.shape_cast %126 : vector<1x1x3x5xbf16> to vector<3x5xbf16>
    %cst_163 = arith.constant dense<0.000000e+00> : vector<64x5xf32>
    %128 = tpu.matmul %125, %127, %cst_163 {dimension_numbers = #tpu.dot_dimension_numbers<[1], [0], [0], [1], [0, 0, 1, 1], [], []>} : vector<64x3xbf16>, vector<3x5xbf16>, vector<64x5xf32> -> vector<64x5xf32>
    %129 = arith.addf %122, %128 : vector<64x5xf32>
    %c0_164 = arith.constant 0 : index
    %c0_165 = arith.constant 0 : index
    %c3_166 = arith.constant 3 : index
    %c3_167 = arith.constant 3 : index
    %c0_168 = arith.constant 0 : index
    %130 = vector.load %arg3[%c0_164, %c0_165, %c3_166, %c3_167, %c0_168] : memref<1x1x12x12x3xbf16, #tpu.memory_space<vmem>>, vector<1x1x8x8x3xbf16>
    %131 = vector.shape_cast %130 : vector<1x1x8x8x3xbf16> to vector<8x8x3xbf16>
    %132 = vector.shape_cast %131 : vector<8x8x3xbf16> to vector<64x3xbf16>
    %c0_169 = arith.constant 0 : index
    %c18 = arith.constant 18 : index
    %c0_170 = arith.constant 0 : index
    %c0_171 = arith.constant 0 : index
    %133 = vector.load %arg4[%c0_169, %c18, %c0_170, %c0_171] : memref<1x25x3x5xbf16, #tpu.memory_space<vmem>>, vector<1x1x3x5xbf16>
    %134 = vector.shape_cast %133 : vector<1x1x3x5xbf16> to vector<3x5xbf16>
    %cst_172 = arith.constant dense<0.000000e+00> : vector<64x5xf32>
    %135 = tpu.matmul %132, %134, %cst_172 {dimension_numbers = #tpu.dot_dimension_numbers<[1], [0], [0], [1], [0, 0, 1, 1], [], []>} : vector<64x3xbf16>, vector<3x5xbf16>, vector<64x5xf32> -> vector<64x5xf32>
    %136 = arith.addf %129, %135 : vector<64x5xf32>
    %c0_173 = arith.constant 0 : index
    %c0_174 = arith.constant 0 : index
    %c3_175 = arith.constant 3 : index
    %c4_176 = arith.constant 4 : index
    %c0_177 = arith.constant 0 : index
    %137 = vector.load %arg3[%c0_173, %c0_174, %c3_175, %c4_176, %c0_177] : memref<1x1x12x12x3xbf16, #tpu.memory_space<vmem>>, vector<1x1x8x8x3xbf16>
    %138 = vector.shape_cast %137 : vector<1x1x8x8x3xbf16> to vector<8x8x3xbf16>
    %139 = vector.shape_cast %138 : vector<8x8x3xbf16> to vector<64x3xbf16>
    %c0_178 = arith.constant 0 : index
    %c19 = arith.constant 19 : index
    %c0_179 = arith.constant 0 : index
    %c0_180 = arith.constant 0 : index
    %140 = vector.load %arg4[%c0_178, %c19, %c0_179, %c0_180] : memref<1x25x3x5xbf16, #tpu.memory_space<vmem>>, vector<1x1x3x5xbf16>
    %141 = vector.shape_cast %140 : vector<1x1x3x5xbf16> to vector<3x5xbf16>
    %cst_181 = arith.constant dense<0.000000e+00> : vector<64x5xf32>
    %142 = tpu.matmul %139, %141, %cst_181 {dimension_numbers = #tpu.dot_dimension_numbers<[1], [0], [0], [1], [0, 0, 1, 1], [], []>} : vector<64x3xbf16>, vector<3x5xbf16>, vector<64x5xf32> -> vector<64x5xf32>
    %143 = arith.addf %136, %142 : vector<64x5xf32>
    %c0_182 = arith.constant 0 : index
    %c0_183 = arith.constant 0 : index
    %c4_184 = arith.constant 4 : index
    %c0_185 = arith.constant 0 : index
    %c0_186 = arith.constant 0 : index
    %144 = vector.load %arg3[%c0_182, %c0_183, %c4_184, %c0_185, %c0_186] : memref<1x1x12x12x3xbf16, #tpu.memory_space<vmem>>, vector<1x1x8x8x3xbf16>
    %145 = vector.shape_cast %144 : vector<1x1x8x8x3xbf16> to vector<8x8x3xbf16>
    %146 = vector.shape_cast %145 : vector<8x8x3xbf16> to vector<64x3xbf16>
    %c0_187 = arith.constant 0 : index
    %c20 = arith.constant 20 : index
    %c0_188 = arith.constant 0 : index
    %c0_189 = arith.constant 0 : index
    %147 = vector.load %arg4[%c0_187, %c20, %c0_188, %c0_189] : memref<1x25x3x5xbf16, #tpu.memory_space<vmem>>, vector<1x1x3x5xbf16>
    %148 = vector.shape_cast %147 : vector<1x1x3x5xbf16> to vector<3x5xbf16>
    %cst_190 = arith.constant dense<0.000000e+00> : vector<64x5xf32>
    %149 = tpu.matmul %146, %148, %cst_190 {dimension_numbers = #tpu.dot_dimension_numbers<[1], [0], [0], [1], [0, 0, 1, 1], [], []>} : vector<64x3xbf16>, vector<3x5xbf16>, vector<64x5xf32> -> vector<64x5xf32>
    %150 = arith.addf %143, %149 : vector<64x5xf32>
    %c0_191 = arith.constant 0 : index
    %c0_192 = arith.constant 0 : index
    %c4_193 = arith.constant 4 : index
    %c1_194 = arith.constant 1 : index
    %c0_195 = arith.constant 0 : index
    %151 = vector.load %arg3[%c0_191, %c0_192, %c4_193, %c1_194, %c0_195] : memref<1x1x12x12x3xbf16, #tpu.memory_space<vmem>>, vector<1x1x8x8x3xbf16>
    %152 = vector.shape_cast %151 : vector<1x1x8x8x3xbf16> to vector<8x8x3xbf16>
    %153 = vector.shape_cast %152 : vector<8x8x3xbf16> to vector<64x3xbf16>
    %c0_196 = arith.constant 0 : index
    %c21 = arith.constant 21 : index
    %c0_197 = arith.constant 0 : index
    %c0_198 = arith.constant 0 : index
    %154 = vector.load %arg4[%c0_196, %c21, %c0_197, %c0_198] : memref<1x25x3x5xbf16, #tpu.memory_space<vmem>>, vector<1x1x3x5xbf16>
    %155 = vector.shape_cast %154 : vector<1x1x3x5xbf16> to vector<3x5xbf16>
    %cst_199 = arith.constant dense<0.000000e+00> : vector<64x5xf32>
    %156 = tpu.matmul %153, %155, %cst_199 {dimension_numbers = #tpu.dot_dimension_numbers<[1], [0], [0], [1], [0, 0, 1, 1], [], []>} : vector<64x3xbf16>, vector<3x5xbf16>, vector<64x5xf32> -> vector<64x5xf32>
    %157 = arith.addf %150, %156 : vector<64x5xf32>
    %c0_200 = arith.constant 0 : index
    %c0_201 = arith.constant 0 : index
    %c4_202 = arith.constant 4 : index
    %c2_203 = arith.constant 2 : index
    %c0_204 = arith.constant 0 : index
    %158 = vector.load %arg3[%c0_200, %c0_201, %c4_202, %c2_203, %c0_204] : memref<1x1x12x12x3xbf16, #tpu.memory_space<vmem>>, vector<1x1x8x8x3xbf16>
    %159 = vector.shape_cast %158 : vector<1x1x8x8x3xbf16> to vector<8x8x3xbf16>
    %160 = vector.shape_cast %159 : vector<8x8x3xbf16> to vector<64x3xbf16>
    %c0_205 = arith.constant 0 : index
    %c22 = arith.constant 22 : index
    %c0_206 = arith.constant 0 : index
    %c0_207 = arith.constant 0 : index
    %161 = vector.load %arg4[%c0_205, %c22, %c0_206, %c0_207] : memref<1x25x3x5xbf16, #tpu.memory_space<vmem>>, vector<1x1x3x5xbf16>
    %162 = vector.shape_cast %161 : vector<1x1x3x5xbf16> to vector<3x5xbf16>
    %cst_208 = arith.constant dense<0.000000e+00> : vector<64x5xf32>
    %163 = tpu.matmul %160, %162, %cst_208 {dimension_numbers = #tpu.dot_dimension_numbers<[1], [0], [0], [1], [0, 0, 1, 1], [], []>} : vector<64x3xbf16>, vector<3x5xbf16>, vector<64x5xf32> -> vector<64x5xf32>
    %164 = arith.addf %157, %163 : vector<64x5xf32>
    %c0_209 = arith.constant 0 : index
    %c0_210 = arith.constant 0 : index
    %c4_211 = arith.constant 4 : index
    %c3_212 = arith.constant 3 : index
    %c0_213 = arith.constant 0 : index
    %165 = vector.load %arg3[%c0_209, %c0_210, %c4_211, %c3_212, %c0_213] : memref<1x1x12x12x3xbf16, #tpu.memory_space<vmem>>, vector<1x1x8x8x3xbf16>
    %166 = vector.shape_cast %165 : vector<1x1x8x8x3xbf16> to vector<8x8x3xbf16>
    %167 = vector.shape_cast %166 : vector<8x8x3xbf16> to vector<64x3xbf16>
    %c0_214 = arith.constant 0 : index
    %c23 = arith.constant 23 : index
    %c0_215 = arith.constant 0 : index
    %c0_216 = arith.constant 0 : index
    %168 = vector.load %arg4[%c0_214, %c23, %c0_215, %c0_216] : memref<1x25x3x5xbf16, #tpu.memory_space<vmem>>, vector<1x1x3x5xbf16>
    %169 = vector.shape_cast %168 : vector<1x1x3x5xbf16> to vector<3x5xbf16>
    %cst_217 = arith.constant dense<0.000000e+00> : vector<64x5xf32>
    %170 = tpu.matmul %167, %169, %cst_217 {dimension_numbers = #tpu.dot_dimension_numbers<[1], [0], [0], [1], [0, 0, 1, 1], [], []>} : vector<64x3xbf16>, vector<3x5xbf16>, vector<64x5xf32> -> vector<64x5xf32>
    %171 = arith.addf %164, %170 : vector<64x5xf32>
    %c0_218 = arith.constant 0 : index
    %c0_219 = arith.constant 0 : index
    %c4_220 = arith.constant 4 : index
    %c4_221 = arith.constant 4 : index
    %c0_222 = arith.constant 0 : index
    %172 = vector.load %arg3[%c0_218, %c0_219, %c4_220, %c4_221, %c0_222] : memref<1x1x12x12x3xbf16, #tpu.memory_space<vmem>>, vector<1x1x8x8x3xbf16>
    %173 = vector.shape_cast %172 : vector<1x1x8x8x3xbf16> to vector<8x8x3xbf16>
    %174 = vector.shape_cast %173 : vector<8x8x3xbf16> to vector<64x3xbf16>
    %c0_223 = arith.constant 0 : index
    %c24 = arith.constant 24 : index
    %c0_224 = arith.constant 0 : index
    %c0_225 = arith.constant 0 : index
    %175 = vector.load %arg4[%c0_223, %c24, %c0_224, %c0_225] : memref<1x25x3x5xbf16, #tpu.memory_space<vmem>>, vector<1x1x3x5xbf16>
    %176 = vector.shape_cast %175 : vector<1x1x3x5xbf16> to vector<3x5xbf16>
    %cst_226 = arith.constant dense<0.000000e+00> : vector<64x5xf32>
    %177 = tpu.matmul %174, %176, %cst_226 {dimension_numbers = #tpu.dot_dimension_numbers<[1], [0], [0], [1], [0, 0, 1, 1], [], []>} : vector<64x3xbf16>, vector<3x5xbf16>, vector<64x5xf32> -> vector<64x5xf32>
    %178 = arith.addf %171, %177 : vector<64x5xf32>
    %c0_227 = arith.constant 0 : index
    %c0_228 = arith.constant 0 : index
    %179 = vector.load %arg8[%c0_227, %c0_228] : memref<64x5xf32, #tpu.memory_space<vmem>>, vector<64x5xf32>
    tpu.vector_store %arg8[%c0_227, %c0_228], %178 {strides = array<i32>} : memref<64x5xf32, #tpu.memory_space<vmem>>, vector<64x5xf32>,
    %c4_i32 = arith.constant 4 : i32
    %180 = arith.cmpi eq, %arg2, %c4_i32 : i32
    %181 = arith.extui %180 : i1 to i32
    %c0_i32_229 = arith.constant 0 : i32
    %182 = arith.cmpi ne, %181, %c0_i32_229 : i32
    scf.if %182 {
      %c0_230 = arith.constant 0 : index
      %c0_231 = arith.constant 0 : index
      %183 = vector.load %arg8[%c0_230, %c0_231] : memref<64x5xf32, #tpu.memory_space<vmem>>, vector<64x5xf32>
      %c0_232 = arith.constant 0 : index
      %c0_233 = arith.constant 0 : index
      %184 = vector.load %arg5[%c0_232, %c0_233] : memref<1x5xf32, #tpu.memory_space<vmem>>, vector<1x5xf32>
      %185 = vector.broadcast %184 : vector<1x5xf32> to vector<64x5xf32>
      %186 = arith.mulf %183, %185 : vector<64x5xf32>
      %c0_234 = arith.constant 0 : index
      %c0_235 = arith.constant 0 : index
      %187 = vector.load %arg6[%c0_234, %c0_235] : memref<1x5xf32, #tpu.memory_space<vmem>>, vector<1x5xf32>
      %188 = vector.broadcast %187 : vector<1x5xf32> to vector<64x5xf32>
      %189 = arith.addf %186, %188 : vector<64x5xf32>
      %cst_236 = arith.constant 0.000000e+00 : f32
      %190 = vector.broadcast %cst_236 : f32 to vector<64x5xf32>
      %191 = arith.maximumf %189, %190 : vector<64x5xf32>
      %192 = vector.shape_cast %191 : vector<64x5xf32> to vector<8x8x5xf32>
      %193 = arith.truncf %192 : vector<8x8x5xf32> to vector<8x8x5xbf16>
      %c0_237 = arith.constant 0 : index
      %c0_238 = arith.constant 0 : index
      %c0_239 = arith.constant 0 : index
      %c0_240 = arith.constant 0 : index
      %c0_241 = arith.constant 0 : index
      %194 = vector.load %arg7[%c0_237, %c0_238, %c0_239, %c0_240, %c0_241] : memref<1x1x8x8x5xbf16, #tpu.memory_space<vmem>>, vector<1x1x8x8x5xbf16>
      %195 = vector.shape_cast %194 : vector<1x1x8x8x5xbf16> to vector<8x8x5xbf16>
      %196 = vector.shape_cast %193 : vector<8x8x5xbf16> to vector<1x1x8x8x5xbf16>
      tpu.vector_store %arg7[%c0_237, %c0_238, %c0_239, %c0_240, %c0_241], %196 {strides = array<i32>} : memref<1x1x8x8x5xbf16, #tpu.memory_space<vmem>>, vector<1x1x8x8x5xbf16>,
    } else {
    }
    return
  }
  func.func @transform_0(%arg0: i32, %arg1: i32, %arg2: i32) -> (i32, i32, i32, i32, i32) {
    %0 = arith.addi %arg1, %arg2 : i32
    %c0_i32 = arith.constant 0 : i32
    %c0_i32_0 = arith.constant 0 : i32
    %c0_i32_1 = arith.constant 0 : i32
    %c0_i32_2 = arith.constant 0 : i32
    return %arg0, %0, %c0_i32, %c0_i32_0, %c0_i32_1 : i32, i32, i32, i32, i32
  }
  func.func @transform_1(%arg0: i32, %arg1: i32, %arg2: i32) -> (i32, i32, i32, i32) {
    %c0_i32 = arith.constant 0 : i32
    %c0_i32_0 = arith.constant 0 : i32
    %c0_i32_1 = arith.constant 0 : i32
    %c0_i32_2 = arith.constant 0 : i32
    return %arg2, %c0_i32, %c0_i32_0, %c0_i32_1 : i32, i32, i32, i32
  }
  func.func @transform_2(%arg0: i32, %arg1: i32, %arg2: i32) -> (i32, i32) {
    %c0_i32 = arith.constant 0 : i32
    %c0_i32_0 = arith.constant 0 : i32
    %c0_i32_1 = arith.constant 0 : i32
    return %c0_i32, %c0_i32_0 : i32, i32
  }
  func.func @transform_3(%arg0: i32, %arg1: i32, %arg2: i32) -> (i32, i32) {
    %c0_i32 = arith.constant 0 : i32
    %c0_i32_0 = arith.constant 0 : i32
    %c0_i32_1 = arith.constant 0 : i32
    return %c0_i32, %c0_i32_0 : i32, i32
  }
  func.func @transform_4(%arg0: i32, %arg1: i32, %arg2: i32) -> (i32, i32, i32, i32, i32) {
    %c0_i32 = arith.constant 0 : i32
    %c0_i32_0 = arith.constant 0 : i32
    %c0_i32_1 = arith.constant 0 : i32
    %c0_i32_2 = arith.constant 0 : i32
    return %arg0, %arg1, %c0_i32, %c0_i32_0, %c0_i32_1 : i32, i32, i32, i32, i32
  }
}

</mosaic_0001>

<bundles_post_ra>
// kernel: tpu_custom_call.1
= control target key start
LH: loop header
LB: loop body
LE: loop exit
PB: predicated region body
PF: predicated region fallthrough
CT: control target
= control target key end

     0   :  { %s6308_s15 = smov 0   ;;  %s6310_s16 = smov 0   ;;  %s7661_s0 = inlined_call_operand.vmem [shape: bf16[1,12,12,12,3], index: 0, kind: input, shape index: {}]   ;;  %s7662_s1 = inlined_call_operand.vmem [shape: bf16[5,25,3,5], index: 1, kind: input, shape index: {}]   ;;  %s7663_s2 = inlined_call_operand.vmem [shape: f32[1,5], index: 2, kind: input, shape index: {}]   ;;  %s7664_s3 = inlined_call_operand.vmem [shape: f32[1,5], index: 3, kind: input, shape index: {}]   ;;  %s7665_s4 = inlined_call_operand.vmem [shape: bf16[1,8,8,8,5], index: 4, kind: output, shape index: {}]  }
   0x1   :  { %s6312_s17 = smov 0   ;;  %s6314_s18 = smov 0  }
   0x2   :  { %s6316_s19 = smov 0  }
   0x3 LB: > { %s26_s20 = sadd.s32 1, %s6271_s17  ;;  %s29_s21 = sadd.s32 1, %s6275_s18  ;;  %s6279_s19 = sphi %s6316_s19, %s14_s19   ;;  %s6275_s18 = sphi %s6314_s18, %s7677_s18   ;;  %s6271_s17 = sphi %s6312_s17, %s7676_s17   ;;  %s6267_s16 = sphi %s6310_s16, %s7675_s16   ;;  %s6263_s15 = sphi %s6308_s15, %s7674_s15  }
   0x4   : > { %p27_p0 = scmp.ge.s32.totalorder %s26_s20, 5  ;;  %p5090_p1 = scmp.ge.s32.totalorder %s6279_s19, 1 }
   0x5   : > { %p203_p2 = scmp.lt.s32.totalorder %s6279_s19, 41 }
   0x6   : > { %s7679_s20 = smov (%p27_p0, %s26_s20), 0  ;;  %s7681_s21 = smov (!%p27_p0, %s29_s21), %s6275_s18 }
   0x7   : > { %p204_p3 = pnand %p5090_p1, %p203_p2  ;;  %p31_p4 = scmp.ge.s32.totalorder %s7681_s21, 8 }
   0x8   : > { %s243_s22 = sadd.s32 (!%p204_p3), %s6263_s15, %s6267_s16  ;;  %p254_p5 = scmp.lt.s32.totalorder (!%p204_p3), %s6263_s15, 4 }
   0x9   : > { %s7683_s21 = smov (%p31_p4, %s7681_s21), 0  ;;  %207 = sbr.rel (%p204_p3) target bundleno = 572 (0x23c), region = 36 }
   0xa   : > { %p246_p6 = scmp.lt.s32.totalorder (!%p204_p3), %s243_s22, 11  ;;  %p261_p7 = scmp.lt.s32.totalorder (!%p204_p3), %s6267_s16, 7 }
   0xb   : > { %p5095_p8 = scmp.ne.s32.totalorder (!%p204_p3), %s6263_s15, 0 }
  0x10   : > { %s255_s23 = scalar_select %p254_p5, %s6263_s15, 4 }
  0x11   : > { %s7685_s22 = smov (!%p246_p6, %s243_s22), 11  ;;  %s7687_s16 = smov (!%p261_p7, %s6267_s16), 7 }
  0x12   : > { %s6176_s24 = smul.u32 50, %s255_s23  ;;  %s5597_s6 = sshll.u32 %s7687_s16, 5  ;;  %vm273_vm0 = vcmask (!%p5095_p8), 39936   ;;  %v6281_v0 = vmov (!%p5095_p8), 0.0  }
  0x13   : > { %s6175_s25 = smul.u32 96, %s7685_s22  ;;  %s6356_s9 = scalar_lea.vmem %s7665_s4, %s5597_s6  ;;  %274 = vst.msk [vmem:[#allocation2] sm:$0xff] (!%p5095_p8), %vm273_vm0, %v6281_v0  ;;  %275 = vst.msk [vmem:[#allocation2 + $0x8] sm:$0xff] (!%p5095_p8), %vm273_vm0, %v6281_v0 }
  0x14   : > { %s6346_s28 = scalar_lea.vmem %s7662_s1, %s6176_s24  ;;  %272 = sbr.rel (%p5095_p8) target bundleno = 27 (0x1b), region = 40  ;;  %276 = vst.msk [vmem:[#allocation2 + $0x10] sm:$0xff] (!%p5095_p8), %vm273_vm0, %v6281_v0  ;;  %277 = vst.msk [vmem:[#allocation2 + $0x18] sm:$0xff] (!%p5095_p8), %vm273_vm0, %v6281_v0 }
  0x15   : > { %s6351_s5 = scalar_lea.vmem %s7661_s0, %s6175_s25  ;;  %278 = vst.msk [vmem:[#allocation2 + $0x20] sm:$0xff] (!%p5095_p8), %vm273_vm0, %v6281_v0  ;;  %279 = vst.msk [vmem:[#allocation2 + $0x28] sm:$0xff] (!%p5095_p8), %vm273_vm0, %v6281_v0 }
  0x16   : > { %280 = vst.msk [vmem:[#allocation2 + $0x30] sm:$0xff] (!%p5095_p8), %vm273_vm0, %v6281_v0  ;;  %281 = vst.msk [vmem:[#allocation2 + $0x38] sm:$0xff] (!%p5095_p8), %vm273_vm0, %v6281_v0 }
  0x1b PF: > { %v298_v1 = vld [vmem:[%s6346_s28] sm:$0x3]  ;;  %vm332_vm1 = vcmask 1040384   ;;  %vm333_vm2 = vcmask 1041408   ;;  %v6282_v2 = vmov 65535   ;;  %vm319_vm3 = vcmask 23552  }
  0x1c   : > { %v334_v3 = vsel %vm332_vm1, 4294967295, %v6282_v2  ;;  %v5323_v4 = vld [vmem:[%s6346_s28 + $0x18] sm:$0x3]  ;;  %v6219_v6 = vld [vmem:[%s6351_s5] ss:$8 sps:$4 sm:$0xff]   ;;  %vm669_vm4 = vcmask 1042432  }
  0x1d   : > { %v6362_v5 = vsel %vm333_vm2, %v334_v3, 0  ;;  %vm670_vm5 = vcmask 1046532   ;;  %v5283_v9 = vld [vmem:[%s6351_s5 + $0x14] sm:$0x1]  ;;  %v5285_v10 = vld [vmem:[%s6351_s5 + $0x1c] sm:$0x1]  ;;  %5725 = vmatprep.mubr.msk.bf16.mxu1 %vm319_vm3, %v6219_v6 }
  0x1e   : > { %v337_v7 = vand.u32 %v6362_v5, %v298_v1  ;;  %v6367_v8 = vand.u32 %v5323_v4, %v6362_v5  ;;  %vm6372_vm6 = vmor %vm669_vm4, %vm670_vm5  ;;  %v2288_v12 = vshll.u32 %v5283_v9, 16  ;;  %v2302_v13 = vshll.u32 %v5285_v10, 16  ;;  %v5307_v14 = vld [vmem:[%s6351_s5 + $0x10] sm:$0xe]  ;;  %v5308_v15 = vld [vmem:[%s6351_s5 + $0x18] sm:$0xe] }
  0x1f   : > { %v5315_v16 = vrot.slane %v5307_v14, 9  ;;  %v2518_v17 = vrot.slane %v5283_v9, 5  ;;  %v5316_v18 = vrot.slane %v5308_v15, 9  ;;  %v2522_v19 = vrot.slane %v5285_v10, 5  ;;  %v6220_v27 = vld [vmem:[%s6351_s5 + $0x10] ss:$8 sps:$4 sm:$0xff]  }
  0x20   : > { %5723 = vmatprep.subr.bf16.mxu1 %v337_v7  ;;  %5843 = vmatprep.subr.bf16.mxu0 %v6367_v8  ;;  %v6380_v20 = vrot.slane %v2288_v12, 5  ;;  %v2659_v21 = vshrl.u32 %v5307_v14, 16  ;;  %v2662_v22 = vshll.u32 %v5307_v14, 16  ;;  %v2677_v25 = vshrl.u32 %v5308_v15, 16  ;;  %v5104_v28 = vld [vmem:[%s6346_s28 + $0x2] sm:$0x3] }
  0x21   : > { %5724 = vmatpush3.bf16.msra.mxu1 %v337_v7  ;;  %5844 = vmatpush3.bf16.msra.mxu0 %v6367_v8  ;;  %v2519_v23 = vsel %vm6372_vm6, %v5315_v16, %v2518_v17  ;;  %v2523_v24 = vsel %vm6372_vm6, %v5316_v18, %v2522_v19  ;;  %v2680_v26 = vshll.u32 %v5308_v15, 16  ;;  %v6388_v29 = vrot.slane %v2302_v13, 5  ;;  %v5287_v33 = vld [vmem:[%s6351_s5 + $0x24] sm:$0x1]  ;;  %v5289_v34 = vld [vmem:[%s6351_s5 + $0x2c] sm:$0x1] }
  0x22   : > { %v5324_v30 = vcombine.low %v2519_v23, %v2523_v24  ;;  %v2661_v31 = vrot.slane %v2659_v21, 5  ;;  %v570_v32 = vand.u32 %v5104_v28, %v6362_v5  ;;  %v2664_v35 = vrot.slane %v2662_v22, 6  ;;  %v5309_v39 = vld [vmem:[%s6351_s5 + $0x20] sm:$0xe]  ;;  %v5310_v40 = vld [vmem:[%s6351_s5 + $0x28] sm:$0xe] }
  0x23   : > { %v2679_v36 = vrot.slane %v2677_v25, 5  ;;  %v2682_v37 = vrot.slane %v2680_v26, 6  ;;  %v2316_v38 = vshll.u32 %v5287_v33, 16  ;;  %v5317_v41 = vrot.slane %v5309_v39, 9  ;;  %v5340_v49 = vld [vmem:[%s6346_s28 + $0x1a] sm:$0x3] }
  0x24   : > { %5726 = vmatmul.mubr.msk.bf16.vlgmr.msra.gmra.mrb[0].mxu1 %vm319_vm3, %v6220_v27  ;;  %5845 = vmatprep.mubr.msk.bf16.mxu0 %vm319_vm3, %v5324_v30  ;;  %v2526_v42 = vrot.slane %v5287_v33, 5  ;;  %v2530_v43 = vrot.slane %v5289_v34, 5  ;;  %v2695_v44 = vshrl.u32 %v5309_v39, 16  ;;  %v2330_v46 = vshll.u32 %v5289_v34, 16  ;;  %v6221_v57 = vld [vmem:[%s6351_s5 + $0x20] ss:$8 sps:$4 sm:$0xff]  }
  0x25   : > { %5733 = vmatprep.subr.bf16.mxu1 %v570_v32  ;;  %v6397_v45 = vrot.slane %v2316_v38, 5  ;;  %v5318_v47 = vrot.slane %v5310_v40, 9  ;;  %v2698_v48 = vshll.u32 %v5309_v39, 16  ;;  %v2713_v52 = vshrl.u32 %v5310_v40, 16  ;;  %5729 = vmatprep.mubr.msk.bf16.mxu1 %vm319_vm3, %v6221_v57  ;;  %v6222_v63 = vld [vmem:[%s6351_s5 + $0x30] ss:$8 sps:$4 sm:$0xff]  }
  0x26   : > { %5734 = vmatpush3.bf16.msra.mxu1 %v570_v32  ;;  %v2527_v50 = vsel %vm6372_vm6, %v5317_v41, %v2526_v42  ;;  %v2697_v51 = vrot.slane %v2695_v44, 5  ;;  %v2716_v53 = vshll.u32 %v5310_v40, 16  ;;  %v2829_v56 = vand.u32 %v5340_v49, %v6362_v5  ;;  %v6412_v2 = vld [vmem:[%s6351_s5 + $0x14] sm:$0x3]  ;;  %v6415_v3 = vld [vmem:[%s6351_s5 + $0x1c] sm:$0x3] }
  0x27   : > { %v2531_v54 = vsel %vm6372_vm6, %v5318_v47, %v2530_v43  ;;  %v2700_v55 = vrot.slane %v2698_v48, 6  ;;  %v2665_v58 = vor.u32 %v2664_v35, %v2661_v31  ;;  %v2715_v60 = vrot.slane %v2713_v52, 5  ;;  %v6423_v13 = vld [vmem:[%s6351_s5 + $0x24] sm:$0x3]  ;;  %v6426_v15 = vld [vmem:[%s6351_s5 + $0x2c] sm:$0x3] }
  0x28   : > { %v5325_v59 = vcombine.low %v2527_v50, %v2531_v54  ;;  %v2718_v61 = vrot.slane %v2716_v53, 6  ;;  %v2683_v62 = vor.u32 %v2682_v37, %v2679_v36  ;;  %5853 = vmatprep.subr.bf16.mxu0 %v2829_v56  ;;  %vm814_vm7 = vsmask.f32 2304  ;;  %v5365_v24 = vld [vmem:[%s6346_s28 + $0x1c] sm:$0x3]  ;;  %p5592_p9 = scmp.ne.s32.totalorder %s6263_s15, 4 }
  0x29   : > { %vm815_vm8 = vsmask.f32 6416  ;;  %v2701_v0 = vor.u32 %v2700_v55, %v2697_v51  ;;  %v6408_v1 = vrot.slane %v2330_v46, 5  ;;  %v2666_v4 = vrot.slane %v2665_v58, 4  ;;  %v412_v31 = vld [vmem:[%s6351_s5] sm:$0xf] }
  0x2a   : > { %5846 = vmatmul.mubr.msk.bf16.vlgmr.msra.gmra.mrb[0].mxu0 %vm319_vm3, %v5325_v59  ;;  %v2719_v6 = vor.u32 %v2718_v61, %v2715_v60  ;;  %v2668_v7 = vshrl.u32 %v6412_v2, 16  ;;  %v2671_v9 = vshll.u32 %v6412_v2, 16  ;;  %v2686_v10 = vshrl.u32 %v6415_v3, 16  ;;  %vm6433_vm9 = vmor %vm814_vm7, %vm815_vm8  ;;  %v6442_v36 = vld [vmem:[%s6351_s5 + $0x4] sm:$0x1] }
  0x2b   : > { %5854 = vmatpush3.bf16.msra.mxu0 %v2829_v56  ;;  %v2689_v12 = vshll.u32 %v6415_v3, 16  ;;  %v2684_v14 = vrot.slane %v2683_v62, 4  ;;  %v2702_v16 = vrot.slane %v2701_v0, 4  ;;  %v2704_v17 = vshrl.u32 %v6423_v13, 16  ;;  %v414_v37 = vld [vmem:[%s6351_s5 + $0x8] sm:$0xf] }
  0x2c   : > { %5730 = vmatmul.mubr.msk.bf16.gmra.mrb[4].mxu1 %vm319_vm3, %v6222_v63  ;;  %v2707_v18 = vshll.u32 %v6423_v13, 16  ;;  %v2670_v19 = vrot.slane %v2668_v7, 5  ;;  %v2673_v21 = vrot.slane %v2671_v9, 6  ;;  %v2688_v22 = vrot.slane %v2686_v10, 5  ;;  %v6446_v41 = vld [vmem:[%s6351_s5 + $0xc] sm:$0x1] }
  0x2d   : > { %v2691_v23 = vrot.slane %v2689_v12, 6  ;;  %v2706_v26 = vrot.slane %v2704_v17, 5  ;;  %v2722_v28 = vshrl.u32 %v6426_v15, 16  ;;  %v2725_v30 = vshll.u32 %v6426_v15, 16  ;;  %v416_v46 = vld [vmem:[%s6351_s5 + $0x10] sm:$0xf] }
  0x2e   : > { %v2709_v27 = vrot.slane %v2707_v18, 6  ;;  %v2674_v32 = vor.u32 %v2673_v21, %v2670_v19  ;;  %v2720_v34 = vrot.slane %v2719_v6, 4  ;;  %v2987_v35 = vand.u32 %v5365_v24, %v6362_v5  ;;  %v6456_v51 = vld [vmem:[%s6351_s5 + $0x14] sm:$0x1]  ;;  %v418_v56 = vld [vmem:[%s6351_s5 + $0x18] sm:$0xf] }
  0x2f   : > { %v2692_v33 = vor.u32 %v2691_v23, %v2688_v22  ;;  %v2724_v39 = vrot.slane %v2722_v28, 5  ;;  %v2727_v40 = vrot.slane %v2725_v30, 6  ;;  %vm428_vm10 = vsmask.f32 3328  ;;  %v6465_v60 = vld [vmem:[%s6351_s5 + $0x1c] sm:$0x1] }
  0x30   : > { %v2710_v38 = vor.u32 %v2709_v27, %v2706_v26  ;;  %v2675_v42 = vsel %vm6433_vm9, %v2666_v4, %v2674_v32  ;;  %5863 = vmatprep.subr.bf16.mxu0 %v2987_v35  ;;  %vm429_vm11 = vsmask.f32 7440  ;;  %v432_v44 = vshrl.u32 %v412_v31, 16  ;;  %v5121_v6 = vld [vmem:[%s6346_s28 + $0x4] sm:$0x3] }
  0x31   : > { %v2693_v43 = vsel %vm6433_vm9, %v2684_v14, %v2692_v33  ;;  %v2728_v49 = vor.u32 %v2727_v40, %v2724_v39  ;;  %v435_v50 = vshll.u32 %v412_v31, 16  ;;  %v441_v53 = vshll.u32 %v6442_v36, 16  ;;  %vm6471_vm12 = vmor %vm428_vm10, %vm429_vm11  ;;  %v5311_v21 = vld [vmem:[%s6351_s5 + $0x30] sm:$0xe]  ;;  %v6480_v27 = vld [vmem:[%s6351_s5 + $0x34] sm:$0x3] }
  0x32   : > { %v5341_v47 = vcombine.low %v2675_v42, %v2693_v43  ;;  %v2711_v48 = vsel %vm6433_vm9, %v2702_v16, %v2710_v38  ;;  %v434_v52 = vrot.slane %v432_v44, 4  ;;  %v446_v54 = vshrl.u32 %v414_v37, 16  ;;  %v5312_v38 = vld [vmem:[%s6351_s5 + $0x38] sm:$0xe]  ;;  %v6488_v42 = vld [vmem:[%s6351_s5 + $0x3c] sm:$0x3] }
  0x33   : > { %v449_v55 = vshll.u32 %v414_v37, 16  ;;  %v2729_v57 = vsel %vm6433_vm9, %v2720_v34, %v2728_v49  ;;  %v437_v58 = vrot.slane %v435_v50, 5  ;;  %v455_v59 = vshll.u32 %v6446_v41, 16 }
  0x34   : > { %5855 = vmatprep.mubr.msk.bf16.mxu0 %vm319_vm3, %v5341_v47  ;;  %v460_v61 = vshrl.u32 %v416_v46, 16  ;;  %v5342_v62 = vcombine.low %v2711_v48, %v2729_v57  ;;  %v443_v63 = vrot.slane %v441_v53, 5  ;;  %v448_v0 = vrot.slane %v446_v54, 4 }
  0x35   : > { %v451_v4 = vrot.slane %v449_v55, 5  ;;  %v438_v7 = vor.u32 %v437_v58, %v434_v52  ;;  %v457_v9 = vrot.slane %v455_v59, 5  ;;  %v463_v12 = vshll.u32 %v416_v46, 16 }
  0x36   : > { %v462_v10 = vrot.slane %v460_v61, 4  ;;  %5856 = vmatmul.mubr.msk.bf16.vlgmr.msra.gmra.mrb[0].mxu0 %vm319_vm3, %v5342_v62  ;;  %v469_v17 = vshll.u32 %v6456_v51, 16  ;;  %v474_v18 = vshrl.u32 %v418_v56, 16  ;;  %v477_v19 = vshll.u32 %v418_v56, 16 }
  0x37   : > { %v452_v16 = vor.u32 %v451_v4, %v448_v0  ;;  %v439_v22 = vrot.slane %v438_v7, 4  ;;  %5864 = vmatpush3.bf16.msra.mxu0 %v2987_v35  ;;  %v465_v23 = vrot.slane %v463_v12, 5  ;;  %v483_v24 = vshll.u32 %v6465_v60, 16  ;;  %v6500_v0 = vld [vmem:[%s6351_s5 + $0x40] sm:$0xe] }
  0x38   : > { %v731_v26 = vand.u32 %v5121_v6, %v6362_v5  ;;  %v471_v30 = vrot.slane %v469_v17, 5  ;;  %v476_v31 = vrot.slane %v474_v18, 4  ;;  %v479_v32 = vrot.slane %v477_v19, 5  ;;  %v6503_v4 = vld [vmem:[%s6351_s5 + $0x44] sm:$0x3] }
  0x39   : > { %v453_v28 = vrot.slane %v452_v16, 4  ;;  %v444_v33 = vsel %vm6471_vm12, %v439_v22, %v443_v63  ;;  %v466_v34 = vor.u32 %v465_v23, %v462_v10  ;;  %v485_v37 = vrot.slane %v483_v24, 5  ;;  %v6506_v12 = vld [vmem:[%s6351_s5 + $0x48] sm:$0xe]  ;;  %v6512_v22 = vld [vmem:[%s6351_s5 + $0x4c] sm:$0x3] }
  0x3a   : > { %5743 = vmatprep.subr.bf16.mxu1 %v731_v26  ;;  %v2731_v35 = vshrl.u32 %v5311_v21, 16  ;;  %v480_v40 = vor.u32 %v479_v32, %v476_v31  ;;  %v2734_v43 = vshll.u32 %v5311_v21, 16  ;;  %v2740_v44 = vshrl.u32 %v6480_v27, 16 }
  0x3b   : > { %v458_v39 = vsel %vm6471_vm12, %v453_v28, %v457_v9  ;;  %v467_v47 = vrot.slane %v466_v34, 4  ;;  %v2743_v49 = vshll.u32 %v6480_v27, 16  ;;  %v2749_v54 = vshrl.u32 %v5312_v38, 16  ;;  %v420_v34 = vld [vmem:[%s6351_s5 + $0x20] sm:$0xf] }
  0x3c   : > { %v5105_v46 = vcombine.low %v444_v33, %v458_v39  ;;  %v2733_v48 = vrot.slane %v2731_v35, 5  ;;  %v481_v50 = vrot.slane %v480_v40, 4  ;;  %v2736_v52 = vrot.slane %v2734_v43, 6 }
  0x3d   : > { %v2742_v53 = vrot.slane %v2740_v44, 5  ;;  %v472_v55 = vsel %vm6471_vm12, %v467_v47, %v471_v30  ;;  %v2745_v56 = vrot.slane %v2743_v49, 6  ;;  %v2752_v57 = vshll.u32 %v5312_v38, 16  ;;  %v6528_v49 = vld [vmem:[%s6351_s5 + $0x24] sm:$0x1] }
  0x3e   : > { %5735 = vmatprep.mubr.msk.bf16.mxu1 %vm319_vm3, %v5105_v46  ;;  %v2758_v58 = vshrl.u32 %v6488_v42, 16  ;;  %v486_v59 = vsel %vm6471_vm12, %v481_v50, %v485_v37  ;;  %v2737_v61 = vor.u32 %v2736_v52, %v2733_v48  ;;  %v2751_v62 = vrot.slane %v2749_v54, 5  ;;  %v422_v50 = vld [vmem:[%s6351_s5 + $0x28] sm:$0xf] }
  0x3f   : > { %v2761_v63 = vshll.u32 %v6488_v42, 16  ;;  %v5106_v6 = vcombine.low %v472_v55, %v486_v59  ;;  %v2746_v7 = vor.u32 %v2745_v56, %v2742_v53  ;;  %v2754_v9 = vrot.slane %v2752_v57, 6  ;;  %v6532_v57 = vld [vmem:[%s6351_s5 + $0x2c] sm:$0x1] }
  0x40   : > { %v2760_v10 = vrot.slane %v2758_v58, 5  ;;  %v2738_v16 = vrot.slane %v2737_v61, 4  ;;  %v5321_v18 = vrot.slane %v6500_v0, 9  ;;  %v5322_v19 = vrot.slane %v6506_v12, 9 }
  0x41   : > { %v2763_v17 = vrot.slane %v2761_v63, 6  ;;  %5736 = vmatmul.mubr.msk.bf16.vlgmr.msra.gmra.mrb[0].mxu1 %vm319_vm3, %v5106_v6  ;;  %v2755_v21 = vor.u32 %v2754_v9, %v2751_v62  ;;  %v2767_v23 = vshrl.u32 %v6500_v0, 16  ;;  %v2770_v24 = vshll.u32 %v6500_v0, 16 }
  0x42   : > { %v2776_v28 = vshrl.u32 %v6503_v4, 16  ;;  %5744 = vmatpush3.bf16.msra.mxu1 %v731_v26  ;;  %v2747_v30 = vsel %vm6433_vm9, %v2738_v16, %v2746_v7  ;;  %v2779_v32 = vshll.u32 %v6503_v4, 16  ;;  %v2785_v33 = vshrl.u32 %v6506_v12, 16 }
  0x43   : > { %v2764_v31 = vor.u32 %v2763_v17, %v2760_v10  ;;  %v2756_v37 = vrot.slane %v2755_v21, 4  ;;  %v2769_v38 = vrot.slane %v2767_v23, 5  ;;  %v2772_v35 = vrot.slane %v2770_v24, 6  ;;  %v424_v10 = vld [vmem:[%s6351_s5 + $0x30] sm:$0xf] }
  0x44   : > { %v2778_v39 = vrot.slane %v2776_v28, 5  ;;  %vm1088_vm13 = vcmask 1045508   ;;  %v2781_v40 = vrot.slane %v2779_v32, 6  ;;  %v2787_v43 = vrot.slane %v2785_v33, 5  ;;  %v6541_v24 = vld [vmem:[%s6351_s5 + $0x34] sm:$0x1] }
  0x45   : > { %v2788_v26 = vshll.u32 %v6506_v12, 16  ;;  %v2794_v44 = vshrl.u32 %v6512_v22, 16  ;;  %v2765_v46 = vsel %vm6433_vm9, %v2756_v37, %v2764_v31  ;;  %v2773_v47 = vor.u32 %v2772_v35, %v2769_v38  ;;  %v426_v28 = vld [vmem:[%s6351_s5 + $0x38] sm:$0xf]  ;;  %vm6556_vm14 = vmor %vm333_vm2, %vm1088_vm13 }
  0x46   : > { %v2797_v48 = vshll.u32 %v6512_v22, 16  ;;  %v488_v52 = vshrl.u32 %v420_v34, 16  ;;  %v5343_v53 = vcombine.low %v2747_v30, %v2765_v46  ;;  %v2782_v54 = vor.u32 %v2781_v40, %v2778_v39  ;;  %v5349_v40 = vld [vmem:[%s6351_s5 + $0x10] sm:$0xc] }
  0x47   : > { %v2790_v55 = vrot.slane %v2788_v26, 6  ;;  %v2796_v56 = vrot.slane %v2794_v44, 5  ;;  %v2774_v58 = vrot.slane %v2773_v47, 4  ;;  %v491_v62 = vshll.u32 %v420_v34, 16  ;;  %v6545_v34 = vld [vmem:[%s6351_s5 + $0x3c] sm:$0x1] }
  0x48   : > { %v2799_v59 = vrot.slane %v2797_v48, 6  ;;  %v490_v61 = vrot.slane %v488_v52, 4  ;;  %5859 = vmatprep.mubr.msk.bf16.mxu0 %vm319_vm3, %v5343_v53  ;;  %v497_v6 = vshll.u32 %v6528_v49, 16  ;;  %v502_v7 = vshrl.u32 %v422_v50, 16  ;;  %v5350_v47 = vld [vmem:[%s6351_s5 + $0x18] sm:$0xc] }
  0x49   : > { %v2791_v63 = vor.u32 %v2790_v55, %v2787_v43  ;;  %v505_v9 = vshll.u32 %v422_v50, 16  ;;  %v2783_v16 = vsel %vm6433_vm9, %v2774_v58, %v2782_v54  ;;  %v493_v21 = vrot.slane %v491_v62, 5  ;;  %v5351_v54 = vld [vmem:[%s6351_s5 + $0x20] sm:$0xc] }
  0x4a   : > { %v2800_v17 = vor.u32 %v2799_v59, %v2796_v56  ;;  %v511_v23 = vshll.u32 %v6532_v57, 16  ;;  %v499_v31 = vrot.slane %v497_v6, 5  ;;  %v504_v32 = vrot.slane %v502_v7, 4 }
  0x4b   : > { %v2792_v30 = vrot.slane %v2791_v63, 4  ;;  %v507_v33 = vrot.slane %v505_v9, 5  ;;  %v494_v37 = vor.u32 %v493_v21, %v490_v61  ;;  %v516_v35 = vshrl.u32 %v424_v10, 16  ;;  %v5352_v61 = vld [vmem:[%s6351_s5 + $0x28] sm:$0xc] }
  0x4c   : > { %v513_v38 = vrot.slane %v511_v23, 5  ;;  %v519_v39 = vshll.u32 %v424_v10, 16  ;;  %v525_v44 = vshll.u32 %v6541_v24, 16  ;;  %v530_v46 = vshrl.u32 %v426_v28, 16  ;;  %v5382_v23 = vld [vmem:[%s6346_s28 + $0x1e] sm:$0x3] }
  0x4d   : > { %v2801_v43 = vsel %vm6433_vm9, %v2792_v30, %v2800_v17  ;;  %v508_v26 = vor.u32 %v507_v33, %v504_v32  ;;  %v495_v50 = vrot.slane %v494_v37, 4  ;;  %v518_v52 = vrot.slane %v516_v35, 4  ;;  %v6570_v33 = vld [vmem:[%s6351_s5] sm:$0xe] }
  0x4e   : > { %v5344_v48 = vcombine.low %v2783_v16, %v2801_v43  ;;  %v521_v53 = vrot.slane %v519_v39, 5  ;;  %v527_v56 = vrot.slane %v525_v44, 5  ;;  %v532_v58 = vrot.slane %v530_v46, 4  ;;  %v6588_v46 = vld [vmem:[%s6351_s5 + $0x18] sm:$0xe] }
  0x4f   : > { %v509_v55 = vrot.slane %v508_v26, 4  ;;  %v533_v59 = vshll.u32 %v426_v28, 16  ;;  %v500_v63 = vsel %vm6471_vm12, %v495_v50, %v499_v31  ;;  %v539_v7 = vshll.u32 %v6545_v34, 16 }
  0x50   : > { %5860 = vmatmul.mubr.msk.bf16.gmra.mrb[4].mxu0 %vm319_vm3, %v5344_v48  ;;  %v522_v6 = vor.u32 %v521_v53, %v518_v52  ;;  %v5357_v9 = vrot.slane %v5349_v40, 10  ;;  %v2930_v17 = vrot.slane %v6412_v2, 6  ;;  %v5358_v21 = vrot.slane %v5350_v47, 10  ;;  %v6576_v2 = vld [vmem:[%s6351_s5 + $0x8] sm:$0xe] }
  0x51   : > { %v514_v10 = vsel %vm6471_vm12, %v509_v55, %v513_v38  ;;  %v535_v16 = vrot.slane %v533_v59, 5  ;;  %v541_v32 = vrot.slane %v539_v7, 5  ;;  %v2934_v31 = vrot.slane %v6415_v3, 6  ;;  %v6579_v40 = vld [vmem:[%s6351_s5 + $0x10] sm:$0xe] }
  0x52   : > { %v5107_v28 = vcombine.low %v500_v63, %v514_v10  ;;  %v523_v30 = vrot.slane %v522_v6, 4  ;;  %v2931_v35 = vsel %vm6556_vm14, %v5357_v9, %v2930_v17  ;;  %v5359_v38 = vrot.slane %v5351_v54, 10  ;;  %v5130_v47 = vld [vmem:[%s6346_s28 + $0x6] sm:$0x3]  ;;  %v5353_v53 = vld [vmem:[%s6351_s5 + $0x30] sm:$0xc] }
  0x53   : > { %v536_v37 = vor.u32 %v535_v16, %v532_v58  ;;  %v2938_v39 = vrot.slane %v6423_v13, 6  ;;  %v2935_v3 = vsel %vm6556_vm14, %v5358_v21, %v2934_v31  ;;  %v5360_v26 = vrot.slane %v5352_v61, 10  ;;  %v5354_v6 = vld [vmem:[%s6351_s5 + $0x38] sm:$0xc]  ;;  %v5355_v16 = vld [vmem:[%s6351_s5 + $0x40] sm:$0xc] }
  0x54   : > { %5739 = vmatprep.mubr.msk.bf16.mxu1 %vm319_vm3, %v5107_v28  ;;  %v528_v43 = vsel %vm6471_vm12, %v523_v30, %v527_v56  ;;  %v2942_v44 = vrot.slane %v6426_v15, 6  ;;  %v5366_v48 = vcombine.low %v2931_v35, %v2935_v3  ;;  %v3106_v52 = vand.u32 %v5382_v23, %v6362_v5  ;;  %v5356_v28 = vld [vmem:[%s6351_s5 + $0x48] sm:$0xc] }
  0x55   : > { %v537_v13 = vrot.slane %v536_v37, 4  ;;  %v2939_v50 = vsel %vm6556_vm14, %v5359_v38, %v2938_v39  ;;  %v5113_v55 = vrot.slane %v6570_v33, 9  ;;  %v674_v15 = vrot.slane %v6442_v36, 5  ;;  %v6622_v37 = vld [vmem:[%s6351_s5 + $0x20] sm:$0xe] }
  0x56   : > { %v2943_v54 = vsel %vm6556_vm14, %v5360_v26, %v2942_v44  ;;  %v5114_v56 = vrot.slane %v6576_v2, 9  ;;  %5865 = vmatprep.mubr.msk.bf16.mxu0 %vm319_vm3, %v5366_v48  ;;  %5873 = vmatprep.subr.bf16.mxu0 %v3106_v52  ;;  %v678_v61 = vrot.slane %v6446_v41, 5  ;;  %v5115_v63 = vrot.slane %v6579_v40, 9 }
  0x57   : > { %v542_v58 = vsel %vm6471_vm12, %v537_v13, %v541_v32  ;;  %v5367_v59 = vcombine.low %v2939_v50, %v2943_v54  ;;  %v675_v9 = vsel %vm6372_vm6, %v5113_v55, %v674_v15  ;;  %v682_v36 = vrot.slane %v6456_v51, 5  ;;  %v6645_v50 = vld [vmem:[%s6351_s5 + $0x38] sm:$0xe] }
  0x58   : > { %v5108_v7 = vcombine.low %v528_v43, %v542_v58  ;;  %v5116_v10 = vrot.slane %v6588_v46, 9  ;;  %v679_v17 = vsel %vm6372_vm6, %v5114_v56, %v678_v61  ;;  %v686_v41 = vrot.slane %v6465_v60, 5  ;;  %v6629_v43 = vld [vmem:[%s6351_s5 + $0x28] sm:$0xe]  ;;  %v6223_v15 = vld [vmem:[%s6351_s5 + $0x18] ss:$8 sps:$4 sm:$0xff]  }
  0x59   : > { %5866 = vmatmul.mubr.msk.bf16.vlgmr.msra.gmra.mrb[0].mxu0 %vm319_vm3, %v5367_v59  ;;  %v988_v21 = vand.u32 %v5130_v47, %v6362_v5  ;;  %v5361_v23 = vrot.slane %v5353_v53, 10  ;;  %v5122_v30 = vcombine.low %v675_v9, %v679_v17  ;;  %v683_v51 = vsel %vm6372_vm6, %v5115_v63, %v682_v36  ;;  %v6636_v47 = vld [vmem:[%s6351_s5 + $0x30] sm:$0xe]  ;;  %v6658_v61 = vld [vmem:[%s6351_s5 + $0x4] sm:$0x3] }
  0x5a   : > { %5740 = vmatmul.mubr.msk.bf16.gmra.mrb[4].mxu1 %vm319_vm3, %v5108_v7  ;;  %5874 = vmatpush3.bf16.msra.mxu0 %v3106_v52  ;;  %v2946_v32 = vrot.slane %v6480_v27, 6  ;;  %v5362_v31 = vrot.slane %v5354_v6, 10  ;;  %v687_v60 = vsel %vm6372_vm6, %v5116_v10, %v686_v41  ;;  %v2950_v35 = vrot.slane %v6488_v42, 6  ;;  %v5407_v52 = vld [vmem:[%s6346_s28 + $0x20] sm:$0x3] }
  0x5b   : > { %5753 = vmatprep.subr.bf16.mxu1 %v988_v21  ;;  %v5363_v38 = vrot.slane %v5355_v16, 10  ;;  %v2954_v39 = vrot.slane %v6503_v4, 6  ;;  %5745 = vmatprep.mubr.msk.bf16.mxu1 %vm319_vm3, %v5122_v30  ;;  %v5123_v27 = vcombine.low %v683_v51, %v687_v60  ;;  %v5364_v26 = vrot.slane %v5356_v28, 10 }
  0x5c   : > { %v2947_v3 = vsel %vm6556_vm14, %v5361_v23, %v2946_v32  ;;  %v2958_v44 = vrot.slane %v6512_v22, 6  ;;  %v2951_v42 = vsel %vm6556_vm14, %v5362_v31, %v2950_v35  ;;  %v5117_v13 = vrot.slane %v6622_v37, 9  ;;  %v6684_v32 = vld [vmem:[%s6351_s5 + $0x14] sm:$0x3] }
  0x5d   : > { %v2955_v4 = vsel %vm6556_vm14, %v5363_v38, %v2954_v39  ;;  %v690_v48 = vrot.slane %v6528_v49, 5  ;;  %v5368_v53 = vcombine.low %v2947_v3, %v2951_v42  ;;  %v5118_v54 = vrot.slane %v6629_v43, 9  ;;  %v6224_v39 = vld [vmem:[%s6351_s5 + $0x28] ss:$8 sps:$4 sm:$0xff]  }
  0x5e   : > { %v2959_v22 = vsel %vm6556_vm14, %v5364_v26, %v2958_v44  ;;  %v694_v55 = vrot.slane %v6532_v57, 5  ;;  %v5119_v59 = vrot.slane %v6636_v47, 9  ;;  %v698_v49 = vrot.slane %v6541_v24, 5  ;;  %v6670_v24 = vld [vmem:[%s6351_s5 + $0xc] sm:$0x3] }
  0x5f   : > { %v5369_v56 = vcombine.low %v2955_v4, %v2959_v22  ;;  %v691_v58 = vsel %vm6372_vm6, %v5117_v13, %v690_v48  ;;  %5869 = vmatprep.mubr.msk.bf16.mxu0 %vm319_vm3, %v5368_v53  ;;  %v5120_v6 = vrot.slane %v6645_v50, 9  ;;  %v702_v57 = vrot.slane %v6545_v34, 5 }
  0x60   : > { %v695_v63 = vsel %vm6372_vm6, %v5118_v54, %v694_v55  ;;  %v3336_v7 = vand.u32 %v5407_v52, %v6362_v5  ;;  %v699_v36 = vsel %vm6372_vm6, %v5119_v59, %v698_v49  ;;  %v818_v10 = vshrl.u32 %v6570_v33, 16  ;;  %v6225_v54 = vld [vmem:[%s6351_s5 + $0x38] ss:$8 sps:$4 sm:$0xff]   ;;  %v5147_v59 = vld [vmem:[%s6346_s28 + $0x8] sm:$0x3] }
  0x61   : > { %5870 = vmatmul.mubr.msk.bf16.gmra.mrb[4].mxu0 %vm319_vm3, %v5369_v56  ;;  %v5124_v9 = vcombine.low %v691_v58, %v695_v63  ;;  %v821_v16 = vshll.u32 %v6570_v33, 16  ;;  %v703_v34 = vsel %vm6372_vm6, %v5120_v6, %v702_v57  ;;  %v827_v17 = vshrl.u32 %v6658_v61, 16 }
  0x62   : > { %5746 = vmatmul.mubr.msk.bf16.vlgmr.msra.gmra.mrb[0].mxu1 %vm319_vm3, %v5123_v27  ;;  %5875 = vmatprep.mubr.msk.bf16.mxu0 %vm319_vm3, %v6223_v15  ;;  %v830_v41 = vshll.u32 %v6658_v61, 16  ;;  %v836_v23 = vshrl.u32 %v6576_v2, 16  ;;  %v5125_v28 = vcombine.low %v699_v36, %v703_v34  ;;  %v820_v30 = vrot.slane %v818_v10, 5 }
  0x63   : > { %5754 = vmatpush3.bf16.msra.mxu1 %v988_v21  ;;  %5749 = vmatprep.mubr.msk.bf16.mxu1 %vm319_vm3, %v5124_v9  ;;  %v823_v33 = vrot.slane %v821_v16, 6  ;;  %v839_v51 = vshll.u32 %v6576_v2, 16  ;;  %v829_v31 = vrot.slane %v827_v17, 5  ;;  %v845_v38 = vshrl.u32 %v6670_v24, 16  ;;  %v6691_v2 = vld [vmem:[%s6351_s5 + $0x1c] sm:$0x3] }
  0x64   : > { %5883 = vmatprep.subr.bf16.mxu0 %v3336_v7  ;;  %v832_v60 = vrot.slane %v830_v41, 6  ;;  %v838_v35 = vrot.slane %v836_v23, 5  ;;  %v848_v3 = vshll.u32 %v6670_v24, 16  ;;  %v854_v26 = vshrl.u32 %v6579_v40, 16 }
  0x65   : > { %v824_v27 = vor.u32 %v823_v33, %v820_v30  ;;  %v841_v21 = vrot.slane %v839_v51, 6  ;;  %v847_v42 = vrot.slane %v845_v38, 5  ;;  %v857_v4 = vshll.u32 %v6579_v40, 16 }
  0x66   : > { %v833_v44 = vor.u32 %v832_v60, %v829_v31  ;;  %v863_v13 = vshrl.u32 %v6684_v32, 16  ;;  %v850_v53 = vrot.slane %v848_v3, 6  ;;  %v856_v22 = vrot.slane %v854_v26, 5  ;;  %v6226_v31 = vld [vmem:[%s6351_s5 + $0x48] ss:$8 sps:$4 sm:$0xff]  }
  0x67   : > { %v825_v48 = vrot.slane %v824_v27, 4  ;;  %v842_v52 = vor.u32 %v841_v21, %v838_v35  ;;  %v859_v55 = vrot.slane %v857_v4, 6  ;;  %v866_v56 = vshll.u32 %v6684_v32, 16 }
  0x68   : > { %v865_v15 = vrot.slane %v863_v13, 5  ;;  %v872_v58 = vshrl.u32 %v6588_v46, 16  ;;  %v851_v63 = vor.u32 %v850_v53, %v847_v42  ;;  %v875_v6 = vshll.u32 %v6588_v46, 16  ;;  %v6711_v46 = vld [vmem:[%s6351_s5 + $0x24] sm:$0x3] }
  0x69   : > { %5876 = vmatmul.mubr.msk.bf16.vlgmr.msra.gmra.mrb[0].mxu0 %vm319_vm3, %v6224_v39  ;;  %v834_v40 = vsel %vm6433_vm9, %v825_v48, %v833_v44  ;;  %v843_v49 = vrot.slane %v842_v52, 4  ;;  %v860_v57 = vor.u32 %v859_v55, %v856_v22  ;;  %v868_v9 = vrot.slane %v866_v56, 6  ;;  %v6720_v39 = vld [vmem:[%s6351_s5 + $0x2c] sm:$0x3]  ;;  %v6727_v53 = vld [vmem:[%s6351_s5 + $0x34] sm:$0x3] }
  0x6a   : > { %5750 = vmatmul.mubr.msk.bf16.gmra.mrb[4].mxu1 %vm319_vm3, %v5125_v28  ;;  %5884 = vmatpush3.bf16.msra.mxu0 %v3336_v7  ;;  %v874_v36 = vrot.slane %v872_v58, 5  ;;  %v881_v10 = vshrl.u32 %v6691_v2, 16  ;;  %v877_v34 = vrot.slane %v875_v6, 6  ;;  %v884_v17 = vshll.u32 %v6691_v2, 16 }
  0x6b   : > { %v852_v16 = vsel %vm6433_vm9, %v843_v49, %v851_v63  ;;  %v1149_v41 = vand.u32 %v5147_v59, %v6362_v5  ;;  %5879 = vmatprep.mubr.msk.bf16.mxu0 %vm319_vm3, %v6225_v54  ;;  %v861_v23 = vrot.slane %v860_v57, 4  ;;  %v869_v28 = vor.u32 %v868_v9, %v865_v15  ;;  %v6738_v9 = vld [vmem:[%s6351_s5 + $0x3c] sm:$0x3] }
  0x6c   : > { %v5131_v7 = vcombine.low %v834_v40, %v852_v16  ;;  %v883_v30 = vrot.slane %v881_v10, 5  ;;  %v878_v33 = vor.u32 %v877_v34, %v874_v36  ;;  %v886_v51 = vrot.slane %v884_v17, 6 }
  0x6d   : > { %5763 = vmatprep.subr.bf16.mxu1 %v1149_v41  ;;  %v890_v60 = vshrl.u32 %v6622_v37, 16  ;;  %v893_v35 = vshll.u32 %v6622_v37, 16  ;;  %v870_v38 = vsel %vm6433_vm9, %v861_v23, %v869_v28  ;;  %v899_v27 = vshrl.u32 %v6711_v46, 16  ;;  %v5391_v23 = vld [vmem:[%s6351_s5 + $0x18] sm:$0xf] }
  0x6e   : > { %5755 = vmatprep.mubr.msk.bf16.mxu1 %vm319_vm3, %v5131_v7  ;;  %v902_v21 = vshll.u32 %v6711_v46, 16  ;;  %v908_v3 = vshrl.u32 %v6629_v43, 16  ;;  %v879_v26 = vrot.slane %v878_v33, 4  ;;  %v887_v44 = vor.u32 %v886_v51, %v883_v30  ;;  %v6747_v28 = vld [vmem:[%s6351_s5 + $0x1c] sm:$0x1] }
  0x6f   : > { %v892_v42 = vrot.slane %v890_v60, 5  ;;  %v895_v4 = vrot.slane %v893_v35, 6  ;;  %v901_v13 = vrot.slane %v899_v27, 5  ;;  %v911_v52 = vshll.u32 %v6629_v43, 16  ;;  %v5393_v60 = vld [vmem:[%s6351_s5 + $0x20] sm:$0xf] }
  0x70   : > { %v904_v48 = vrot.slane %v902_v21, 6  ;;  %v910_v37 = vrot.slane %v908_v3, 5  ;;  %v888_v22 = vsel %vm6433_vm9, %v879_v26, %v887_v44  ;;  %v917_v55 = vshrl.u32 %v6720_v39, 16  ;;  %v6754_v21 = vld [vmem:[%s6351_s5 + $0x24] sm:$0x1] }
  0x71   : > { %5880 = vmatmul.mubr.msk.bf16.gmra.mrb[4].mxu0 %vm319_vm3, %v6226_v31  ;;  %v896_v54 = vor.u32 %v895_v4, %v892_v42  ;;  %v920_v15 = vshll.u32 %v6720_v39, 16  ;;  %v5132_v56 = vcombine.low %v870_v38, %v888_v22  ;;  %v913_v59 = vrot.slane %v911_v52, 6  ;;  %v5395_v4 = vld [vmem:[%s6351_s5 + $0x28] sm:$0xf] }
  0x72   : > { %v905_v58 = vor.u32 %v904_v48, %v901_v13  ;;  %v926_v40 = vshrl.u32 %v6636_v47, 16  ;;  %v919_v49 = vrot.slane %v917_v55, 5  ;;  %v929_v6 = vshll.u32 %v6636_v47, 16 }
  0x73   : > { %v897_v43 = vrot.slane %v896_v54, 4  ;;  %v922_v63 = vrot.slane %v920_v15, 6  ;;  %5756 = vmatmul.mubr.msk.bf16.vlgmr.msra.gmra.mrb[0].mxu1 %vm319_vm3, %v5132_v56  ;;  %v914_v57 = vor.u32 %v913_v59, %v910_v37  ;;  %v935_v10 = vshrl.u32 %v6727_v53, 16  ;;  %v6761_v15 = vld [vmem:[%s6351_s5 + $0x2c] sm:$0x1] }
  0x74   : > { %v928_v36 = vrot.slane %v926_v40, 5  ;;  %v938_v16 = vshll.u32 %v6727_v53, 16  ;;  %5764 = vmatpush3.bf16.msra.mxu1 %v1149_v41  ;;  %v931_v7 = vrot.slane %v929_v6, 6  ;;  %v944_v47 = vshrl.u32 %v6645_v50, 16 }
  0x75   : > { %v906_v34 = vsel %vm6433_vm9, %v897_v43, %v905_v58  ;;  %v923_v17 = vor.u32 %v922_v63, %v919_v49  ;;  %v915_v30 = vrot.slane %v914_v57, 4  ;;  %v937_v33 = vrot.slane %v935_v10, 5  ;;  %v5397_v10 = vld [vmem:[%s6351_s5 + $0x30] sm:$0xf] }
  0x76   : > { %v940_v51 = vrot.slane %v938_v16, 6  ;;  %v947_v31 = vshll.u32 %v6645_v50, 16  ;;  %v932_v35 = vor.u32 %v931_v7, %v928_v36  ;;  %v946_v41 = vrot.slane %v944_v47, 5 }
  0x77   : > { %v953_v38 = vshrl.u32 %v6738_v9, 16  ;;  %v956_v27 = vshll.u32 %v6738_v9, 16  ;;  %v924_v3 = vsel %vm6433_vm9, %v915_v30, %v923_v17  ;;  %v3198_v42 = vshrl.u32 %v5391_v23, 16 }
  0x78   : > { %v941_v26 = vor.u32 %v940_v51, %v937_v33  ;;  %v949_v44 = vrot.slane %v947_v31, 6  ;;  %v5133_v13 = vcombine.low %v906_v34, %v924_v3  ;;  %v933_v48 = vrot.slane %v932_v35, 4  ;;  %v5432_v33 = vld [vmem:[%s6346_s28 + $0x22] sm:$0x3] }
  0x79   : > { %v955_v50 = vrot.slane %v953_v38, 5  ;;  %v958_v37 = vrot.slane %v956_v27, 6  ;;  %v3200_v22 = vrot.slane %v3198_v42, 4  ;;  %v3201_v54 = vshll.u32 %v5391_v23, 16  ;;  %v6771_v23 = vld [vmem:[%s6351_s5 + $0x34] sm:$0x1] }
  0x7a   : > { %v950_v52 = vor.u32 %v949_v44, %v946_v41  ;;  %v3207_v55 = vshll.u32 %v6747_v28, 16  ;;  %5759 = vmatprep.mubr.msk.bf16.mxu1 %vm319_vm3, %v5133_v13  ;;  %v942_v56 = vsel %vm6433_vm9, %v933_v48, %v941_v26  ;;  %v3212_v59 = vshrl.u32 %v5393_v60, 16  ;;  %v1063_v41 = vld [vmem:[%s6351_s5] sm:$0xc]  ;;  %v1064_v48 = vld [vmem:[%s6351_s5 + $0x8] sm:$0xc] }
  0x7b   : > { %v959_v58 = vor.u32 %v958_v37, %v955_v50  ;;  %v3215_v40 = vshll.u32 %v5393_v60, 16  ;;  %v3203_v49 = vrot.slane %v3201_v54, 5  ;;  %v3221_v6 = vshll.u32 %v6754_v21, 16  ;;  %v1065_v54 = vld [vmem:[%s6351_s5 + $0x10] sm:$0xc] }
  0x7c   : > { %v951_v43 = vrot.slane %v950_v52, 4  ;;  %v3209_v63 = vrot.slane %v3207_v55, 5  ;;  %v3214_v57 = vrot.slane %v3212_v59, 4  ;;  %v3226_v16 = vshrl.u32 %v5395_v4, 16 }
  0x7d   : > { %v3217_v36 = vrot.slane %v3215_v40, 5  ;;  %v3229_v34 = vshll.u32 %v5395_v4, 16  ;;  %v3204_v7 = vor.u32 %v3203_v49, %v3200_v22  ;;  %v3223_v47 = vrot.slane %v3221_v6, 5  ;;  %v1066_v40 = vld [vmem:[%s6351_s5 + $0x18] sm:$0xc] }
  0x7e   : > { %v960_v17 = vsel %vm6433_vm9, %v951_v43, %v959_v58  ;;  %v3235_v30 = vshll.u32 %v6761_v15, 16  ;;  %v3228_v60 = vrot.slane %v3226_v16, 4  ;;  %v3240_v3 = vshrl.u32 %v5397_v10, 16 }
  0x7f   : > { %v5134_v51 = vcombine.low %v942_v56, %v960_v17  ;;  %v3218_v31 = vor.u32 %v3217_v36, %v3214_v57  ;;  %v3231_v35 = vrot.slane %v3229_v34, 5  ;;  %v3205_v38 = vrot.slane %v3204_v7, 4  ;;  %v5164_v57 = vld [vmem:[%s6346_s28 + $0xa] sm:$0x3]  ;;  %v5399_v36 = vld [vmem:[%s6351_s5 + $0x38] sm:$0xf] }
  0x80   : > { %v3237_v27 = vrot.slane %v3235_v30, 5  ;;  %v3243_v26 = vshll.u32 %v5397_v10, 16  ;;  %v3249_v4 = vshll.u32 %v6771_v23, 16  ;;  %v3494_v13 = vand.u32 %v5432_v33, %v6362_v5  ;;  %v5401_v33 = vld [vmem:[%s6351_s5 + $0x40] sm:$0xf] }
  0x81   : > { %5760 = vmatmul.mubr.msk.bf16.gmra.mrb[4].mxu1 %vm319_vm3, %v5134_v51  ;;  %v3219_v44 = vrot.slane %v3218_v31, 4  ;;  %v3232_v42 = vor.u32 %v3231_v35, %v3228_v60  ;;  %v3210_v50 = vsel %vm6471_vm12, %v3205_v38, %v3209_v63  ;;  %v3242_v37 = vrot.slane %v3240_v3, 4  ;;  %v6807_v60 = vld [vmem:[%s6351_s5 + $0x44] sm:$0x1]  ;;  %v5403_v3 = vld [vmem:[%s6351_s5 + $0x48] sm:$0xf] }
  0x82   : > { %v3245_v52 = vrot.slane %v3243_v26, 5  ;;  %v5139_v22 = vrot.slane %v1063_v41, 10  ;;  %v3251_v58 = vrot.slane %v3249_v4, 5  ;;  %5893 = vmatprep.subr.bf16.mxu0 %v3494_v13  ;;  %v1092_v59 = vrot.slane %v6658_v61, 6  ;;  %v6796_v61 = vld [vmem:[%s6351_s5 + $0x3c] sm:$0x1] }
  0x83   : > { %v3224_v55 = vsel %vm6471_vm12, %v3219_v44, %v3223_v47  ;;  %v3233_v56 = vrot.slane %v3232_v42, 4  ;;  %v5140_v6 = vrot.slane %v1064_v48, 10  ;;  %v1096_v63 = vrot.slane %v6670_v24, 6  ;;  %v6816_v26 = vld [vmem:[%s6351_s5 + $0x4c] sm:$0x1] }
  0x84   : > { %v5408_v43 = vcombine.low %v3210_v50, %v3224_v55  ;;  %v3246_v49 = vor.u32 %v3245_v52, %v3242_v37  ;;  %v1093_v16 = vsel %vm6556_vm14, %v5139_v22, %v1092_v59  ;;  %v5141_v34 = vrot.slane %v1065_v54, 10  ;;  %v5405_v50 = vld [vmem:[%s6351_s5 + $0x50] sm:$0xf] }
  0x85   : > { %v3238_v10 = vsel %vm6471_vm12, %v3233_v56, %v3237_v27  ;;  %v1100_v17 = vrot.slane %v6684_v32, 6  ;;  %v1097_v24 = vsel %vm6556_vm14, %v5140_v6, %v1096_v63  ;;  %v5142_v47 = vrot.slane %v1066_v40, 10  ;;  %v6824_v56 = vld [vmem:[%s6351_s5 + $0x54] sm:$0x1] }
  0x86   : > { %5885 = vmatprep.mubr.msk.bf16.mxu0 %vm319_vm3, %v5408_v43  ;;  %v3247_v7 = vrot.slane %v3246_v49, 4  ;;  %v1104_v30 = vrot.slane %v6691_v2, 6  ;;  %v5148_v51 = vcombine.low %v1093_v16, %v1097_v24  ;;  %v1268_v32 = vand.u32 %v5164_v57, %v6362_v5  ;;  %v1067_v57 = vld [vmem:[%s6351_s5 + $0x20] sm:$0xc] }
  0x87   : > { %v1101_v31 = vsel %vm6556_vm14, %v5141_v34, %v1100_v17  ;;  %v3254_v35 = vshrl.u32 %v5399_v36, 16  ;;  %v3257_v27 = vshll.u32 %v5399_v36, 16  ;;  %v3263_v2 = vshll.u32 %v6796_v61, 16  ;;  %v1068_v17 = vld [vmem:[%s6351_s5 + $0x28] sm:$0xc] }
  0x88   : > { %v3252_v41 = vsel %vm6471_vm12, %v3247_v7, %v3251_v58  ;;  %v1105_v38 = vsel %vm6556_vm14, %v5142_v47, %v1104_v30  ;;  %5765 = vmatprep.mubr.msk.bf16.mxu1 %vm319_vm3, %v5148_v51  ;;  %5773 = vmatprep.subr.bf16.mxu1 %v1268_v32  ;;  %v3268_v48 = vshrl.u32 %v5401_v33, 16  ;;  %v3271_v22 = vshll.u32 %v5401_v33, 16 }
  0x89   : > { %v5409_v44 = vcombine.low %v3238_v10, %v3252_v41  ;;  %v5149_v42 = vcombine.low %v1101_v31, %v1105_v38  ;;  %v3256_v4 = vrot.slane %v3254_v35, 4  ;;  %v3259_v37 = vrot.slane %v3257_v27, 5  ;;  %v1070_v35 = vld [vmem:[%s6351_s5 + $0x38] sm:$0xc] }
  0x8a   : > { %v3265_v52 = vrot.slane %v3263_v2, 5  ;;  %v3277_v54 = vshll.u32 %v6807_v60, 16  ;;  %v3270_v55 = vrot.slane %v3268_v48, 4  ;;  %v3282_v58 = vshrl.u32 %v5403_v3, 16  ;;  %v6839_v48 = vld [vmem:[%s6351_s5 + $0x18] sm:$0xe] }
  0x8b   : > { %5886 = vmatmul.mubr.msk.bf16.vlgmr.msra.gmra.mrb[0].mxu0 %vm319_vm3, %v5409_v44  ;;  %5766 = vmatmul.mubr.msk.bf16.vlgmr.msra.gmra.mrb[0].mxu1 %vm319_vm3, %v5149_v42  ;;  %v3285_v59 = vshll.u32 %v5403_v3, 16  ;;  %v3291_v40 = vshll.u32 %v6816_v26, 16  ;;  %v3260_v43 = vor.u32 %v3259_v37, %v3256_v4  ;;  %v3273_v49 = vrot.slane %v3271_v22, 5  ;;  %v6845_v22 = vld [vmem:[%s6351_s5 + $0x20] sm:$0xe] }
  0x8c   : > { %5894 = vmatpush3.bf16.msra.mxu0 %v3494_v13  ;;  %5774 = vmatpush3.bf16.msra.mxu1 %v1268_v32  ;;  %v3279_v6 = vrot.slane %v3277_v54, 5  ;;  %v3296_v63 = vshrl.u32 %v5405_v50, 16  ;;  %v3284_v36 = vrot.slane %v3282_v58, 4  ;;  %v3299_v34 = vshll.u32 %v5405_v50, 16  ;;  %v1069_v13 = vld [vmem:[%s6351_s5 + $0x30] sm:$0xc] }
  0x8d   : > { %v3287_v10 = vrot.slane %v3285_v59, 5  ;;  %v3293_v16 = vrot.slane %v3291_v40, 5  ;;  %v3261_v7 = vrot.slane %v3260_v43, 4  ;;  %v3274_v24 = vor.u32 %v3273_v49, %v3270_v55  ;;  %v6852_v59 = vld [vmem:[%s6351_s5 + $0x28] sm:$0xe] }
  0x8e   : > { %v3298_v47 = vrot.slane %v3296_v63, 4  ;;  %v3305_v30 = vshll.u32 %v6824_v56, 16  ;;  %v3301_v51 = vrot.slane %v3299_v34, 5  ;;  %v5143_v31 = vrot.slane %v1067_v57, 10  ;;  %v5449_v63 = vld [vmem:[%s6346_s28 + $0x24] sm:$0x3] }
  0x8f   : > { %v3288_v33 = vor.u32 %v3287_v10, %v3284_v36  ;;  %v1108_v32 = vrot.slane %v6711_v46, 6  ;;  %v3266_v41 = vsel %vm6471_vm12, %v3261_v7, %v3265_v52  ;;  %v3275_v38 = vrot.slane %v3274_v24, 4 }
  0x90   : > { %v3307_v27 = vrot.slane %v3305_v30, 5  ;;  %v5144_v2 = vrot.slane %v1068_v17, 10  ;;  %v3302_v44 = vor.u32 %v3301_v51, %v3298_v47  ;;  %v1112_v4 = vrot.slane %v6720_v39, 6  ;;  %v6875_v47 = vld [vmem:[%s6351_s5 + $0x38] sm:$0xe] }
  0x91   : > { %v3289_v3 = vrot.slane %v3288_v33, 4  ;;  %v1109_v42 = vsel %vm6556_vm14, %v5143_v31, %v1108_v32  ;;  %v3280_v46 = vsel %vm6471_vm12, %v3275_v38, %v3279_v6  ;;  %v5145_v50 = vrot.slane %v1069_v13, 10  ;;  %v6859_v6 = vld [vmem:[%s6351_s5 + $0x30] sm:$0xe]  ;;  %v6887_v31 = vld [vmem:[%s6351_s5 + $0x48] sm:$0xe] }
  0x92   : > { %v1116_v37 = vrot.slane %v6727_v53, 6  ;;  %v5146_v52 = vrot.slane %v1070_v35, 10  ;;  %v5410_v54 = vcombine.low %v3266_v41, %v3280_v46  ;;  %v3303_v58 = vrot.slane %v3302_v44, 4  ;;  %v6227_v51 = vld [vmem:[%s6351_s5 + $0x8] ss:$8 sps:$4 sm:$0xff]  }
  0x93   : > { %v3294_v55 = vsel %vm6471_vm12, %v3289_v3, %v3293_v16  ;;  %v1113_v39 = vsel %vm6556_vm14, %v5144_v2, %v1112_v4  ;;  %v1120_v53 = vrot.slane %v6738_v9, 6  ;;  %v5424_v49 = vrot.slane %v6839_v48, 9  ;;  %v5189_v9 = vld [vmem:[%s6346_s28 + $0xc] sm:$0x3]  ;;  %v6895_v38 = vld [vmem:[%s6351_s5 + $0x50] sm:$0xe] }
  0x94   : > { %v5150_v40 = vcombine.low %v1109_v42, %v1113_v39  ;;  %v1117_v43 = vsel %vm6556_vm14, %v5145_v50, %v1116_v37  ;;  %5889 = vmatprep.mubr.msk.bf16.mxu0 %vm319_vm3, %v5410_v54  ;;  %v3308_v57 = vsel %vm6471_vm12, %v3303_v58, %v3307_v27  ;;  %v3437_v36 = vrot.slane %v6747_v28, 5  ;;  %v6878_v28 = vld [vmem:[%s6351_s5 + $0x40] sm:$0xe]  ;;  %v6909_v50 = vld [vmem:[%s6351_s5 + $0x1c] sm:$0x3] }
  0x95   : > { %v5425_v10 = vrot.slane %v6845_v22, 9  ;;  %v3441_v16 = vrot.slane %v6754_v21, 5  ;;  %v5411_v34 = vcombine.low %v3294_v55, %v3308_v57  ;;  %v1121_v17 = vsel %vm6556_vm14, %v5146_v52, %v1120_v53  ;;  %v6923_v55 = vld [vmem:[%s6351_s5 + $0x24] sm:$0x3]  ;;  %v6229_v57 = vld [vmem:[%s6351_s5 + $0x28] ss:$8 sps:$4 sm:$0xff]  }
  0x96   : > { %5769 = vmatprep.mubr.msk.bf16.mxu1 %vm319_vm3, %v5150_v40  ;;  %v5426_v7 = vrot.slane %v6852_v59, 9  ;;  %v3445_v24 = vrot.slane %v6761_v15, 5  ;;  %v5151_v30 = vcombine.low %v1117_v43, %v1121_v17  ;;  %v3438_v21 = vsel %vm6372_vm6, %v5424_v49, %v3437_v36  ;;  %v6228_v40 = vld [vmem:[%s6351_s5 + $0x18] ss:$8 sps:$4 sm:$0xff]  }
  0x97   : > { %v3442_v13 = vsel %vm6372_vm6, %v5425_v10, %v3441_v16  ;;  %v5427_v33 = vrot.slane %v6859_v6, 9  ;;  %5890 = vmatmul.mubr.msk.bf16.gmra.mrb[4].mxu0 %vm319_vm3, %v5411_v34  ;;  %v3449_v35 = vrot.slane %v6771_v23, 5  ;;  %v3748_v41 = vand.u32 %v5449_v63, %v6362_v5 }
  0x98   : > { %v5433_v32 = vcombine.low %v3438_v21, %v3442_v13  ;;  %v3446_v15 = vsel %vm6372_vm6, %v5426_v7, %v3445_v24  ;;  %5770 = vmatmul.mubr.msk.bf16.gmra.mrb[4].mxu1 %vm319_vm3, %v5151_v30  ;;  %v1498_v27 = vand.u32 %v5189_v9, %v6362_v5  ;;  %v5428_v2 = vrot.slane %v6875_v47, 9  ;;  %v6938_v7 = vld [vmem:[%s6351_s5 + $0x2c] sm:$0x3] }
  0x99   : > { %v3453_v3 = vrot.slane %v6796_v61, 5  ;;  %v5429_v44 = vrot.slane %v6878_v28, 9  ;;  %v3450_v23 = vsel %vm6372_vm6, %v5427_v33, %v3449_v35  ;;  %5903 = vmatprep.subr.bf16.mxu0 %v3748_v41  ;;  %v3457_v42 = vrot.slane %v6807_v60, 5  ;;  %5775 = vmatprep.mubr.msk.bf16.mxu1 %vm319_vm3, %v6227_v51 }
  0x9a   : > { %5895 = vmatprep.mubr.msk.bf16.mxu0 %vm319_vm3, %v5433_v32  ;;  %v5430_v4 = vrot.slane %v6887_v31, 9  ;;  %v3461_v46 = vrot.slane %v6816_v26, 5  ;;  %v5434_v37 = vcombine.low %v3446_v15, %v3450_v23  ;;  %5783 = vmatprep.subr.bf16.mxu1 %v1498_v27  ;;  %v5431_v52 = vrot.slane %v6895_v38, 9  ;;  %v6945_v32 = vld [vmem:[%s6351_s5 + $0x34] sm:$0x3] }
  0x9b   : > { %v3454_v61 = vsel %vm6372_vm6, %v5428_v2, %v3453_v3  ;;  %v3465_v54 = vrot.slane %v6824_v56, 5  ;;  %v3458_v60 = vsel %vm6372_vm6, %v5429_v44, %v3457_v42  ;;  %v3578_v58 = vshrl.u32 %v6839_v48, 16  ;;  %v5474_v23 = vld [vmem:[%s6346_s28 + $0x26] sm:$0x3] }
  0x9c   : > { %v6920_v26 = vsel %vm6372_vm6, %v5430_v4, %v3461_v46  ;;  %v3581_v39 = vshll.u32 %v6839_v48, 16  ;;  %v5435_v43 = vcombine.low %v3454_v61, %v3458_v60  ;;  %v3587_v56 = vshrl.u32 %v6909_v50, 16 }
  0x9d   : > { %v3466_v53 = vsel %vm6372_vm6, %v5431_v52, %v3465_v54  ;;  %v3590_v49 = vshll.u32 %v6909_v50, 16  ;;  %v3580_v36 = vrot.slane %v3578_v58, 5  ;;  %v3596_v16 = vshrl.u32 %v6845_v22, 16 }
  0x9e   : > { %v5436_v63 = vcombine.low %v6920_v26, %v3466_v53  ;;  %v3583_v10 = vrot.slane %v3581_v39, 6  ;;  %v3589_v9 = vrot.slane %v3587_v56, 5  ;;  %v3599_v48 = vshll.u32 %v6845_v22, 16 }
  0x9f   : > { %v3592_v34 = vrot.slane %v3590_v49, 6  ;;  %v3605_v17 = vshrl.u32 %v6923_v55, 16  ;;  %5896 = vmatmul.mubr.msk.bf16.vlgmr.msra.gmra.mrb[0].mxu0 %vm319_vm3, %v5434_v37  ;;  %v3598_v30 = vrot.slane %v3596_v16, 5  ;;  %v3608_v21 = vshll.u32 %v6923_v55, 16 }
  0xa0   : > { %v3584_v24 = vor.u32 %v3583_v10, %v3580_v36  ;;  %v3614_v13 = vshrl.u32 %v6852_v59, 16  ;;  %5904 = vmatpush3.bf16.msra.mxu0 %v3748_v41  ;;  %5776 = vmatmul.mubr.msk.bf16.vlgmr.msra.gmra.mrb[0].mxu1 %vm319_vm3, %v6228_v40  ;;  %v3601_v51 = vrot.slane %v3599_v48, 6  ;;  %v3617_v15 = vshll.u32 %v6852_v59, 16  ;;  %v6230_v41 = vld [vmem:[%s6351_s5 + $0x38] ss:$8 sps:$4 sm:$0xff]  }
  0xa1   : > { %v3593_v33 = vor.u32 %v3592_v34, %v3589_v9  ;;  %v3607_v22 = vrot.slane %v3605_v17, 5  ;;  %5784 = vmatpush3.bf16.msra.mxu1 %v1498_v27  ;;  %5899 = vmatprep.mubr.msk.bf16.mxu0 %vm319_vm3, %v5435_v43  ;;  %v3610_v2 = vrot.slane %v3608_v21, 6  ;;  %v3623_v44 = vshrl.u32 %v6938_v7, 16  ;;  %v5173_v59 = vld [vmem:[%s6351_s5 + $0x8] sm:$0xf] }
  0xa2   : > { %v3585_v35 = vrot.slane %v3584_v24, 4  ;;  %v3616_v3 = vrot.slane %v3614_v13, 5  ;;  %5779 = vmatprep.mubr.msk.bf16.mxu1 %vm319_vm3, %v6229_v57  ;;  %v3602_v42 = vor.u32 %v3601_v51, %v3598_v30  ;;  %v3619_v4 = vrot.slane %v3617_v15, 6  ;;  %v6960_v40 = vld [vmem:[%s6351_s5 + $0xc] sm:$0x1] }
  0xa3   : > { %v3626_v46 = vshll.u32 %v6938_v7, 16  ;;  %v3632_v37 = vshrl.u32 %v6859_v6, 16  ;;  %v3611_v61 = vor.u32 %v3610_v2, %v3607_v22  ;;  %v3625_v52 = vrot.slane %v3623_v44, 5  ;;  %v5175_v10 = vld [vmem:[%s6351_s5 + $0x10] sm:$0xf] }
  0xa4   : > { %v3594_v27 = vsel %vm6433_vm9, %v3585_v35, %v3593_v33  ;;  %v3635_v54 = vshll.u32 %v6859_v6, 16  ;;  %v3603_v60 = vrot.slane %v3602_v42, 4  ;;  %v3620_v26 = vor.u32 %v3619_v4, %v3616_v3  ;;  %v6970_v24 = vld [vmem:[%s6351_s5 + $0x14] sm:$0x1]  ;;  %v5177_v30 = vld [vmem:[%s6351_s5 + $0x18] sm:$0xf] }
  0xa5   : > { %v3628_v58 = vrot.slane %v3626_v46, 6  ;;  %v3634_v39 = vrot.slane %v3632_v37, 5  ;;  %v3641_v53 = vshrl.u32 %v6945_v32, 16  ;;  %v3644_v56 = vshll.u32 %v6945_v32, 16  ;;  %v5179_v3 = vld [vmem:[%s6351_s5 + $0x20] sm:$0xf] }
  0xa6   : > { %v3637_v43 = vrot.slane %v3635_v54, 6  ;;  %v3906_v49 = vand.u32 %v5474_v23, %v6362_v5  ;;  %v3612_v57 = vsel %vm6433_vm9, %v3603_v60, %v3611_v61  ;;  %v3621_v36 = vrot.slane %v3620_v26, 4  ;;  %v6984_v42 = vld [vmem:[%s6351_s5 + $0x24] sm:$0x1]  ;;  %v5214_v61 = vld [vmem:[%s6346_s28 + $0xe] sm:$0x3] }
  0xa7   : > { %v3629_v6 = vor.u32 %v3628_v58, %v3625_v52  ;;  %v1360_v16 = vshrl.u32 %v5173_v59, 16  ;;  %5900 = vmatmul.mubr.msk.bf16.gmra.mrb[4].mxu0 %vm319_vm3, %v5436_v63  ;;  %v5450_v9 = vcombine.low %v3594_v27, %v3612_v57  ;;  %v3643_v48 = vrot.slane %v3641_v53, 5  ;;  %v6978_v63 = vld [vmem:[%s6351_s5 + $0x1c] sm:$0x1] }
  0xa8   : > { %v3638_v34 = vor.u32 %v3637_v43, %v3634_v39  ;;  %v3646_v17 = vrot.slane %v3644_v56, 6  ;;  %5913 = vmatprep.subr.bf16.mxu0 %v3906_v49  ;;  %5780 = vmatmul.mubr.msk.bf16.gmra.mrb[4].mxu1 %vm319_vm3, %v6230_v41  ;;  %v1363_v33 = vshll.u32 %v5173_v59, 16  ;;  %v1369_v51 = vshll.u32 %v6960_v40, 16 }
  0xa9   : > { %v3630_v21 = vsel %vm6433_vm9, %v3621_v36, %v3629_v6  ;;  %v1362_v13 = vrot.slane %v1360_v16, 4  ;;  %5905 = vmatprep.mubr.msk.bf16.mxu0 %vm319_vm3, %v5450_v9  ;;  %v1374_v35 = vshrl.u32 %v5175_v10, 16  ;;  %v1377_v2 = vshll.u32 %v5175_v10, 16  ;;  %v6993_v10 = vld [vmem:[%s6351_s5 + $0x3c] sm:$0x3] }
  0xaa   : > { %v3639_v22 = vrot.slane %v3638_v34, 4  ;;  %v3647_v15 = vor.u32 %v3646_v17, %v3643_v48  ;;  %v1365_v44 = vrot.slane %v1363_v33, 5  ;;  %v1371_v23 = vrot.slane %v1369_v51, 5 }
  0xab   : > { %v1383_v41 = vshll.u32 %v6970_v24, 16  ;;  %v1388_v4 = vshrl.u32 %v5177_v30, 16  ;;  %v1376_v37 = vrot.slane %v1374_v35, 4  ;;  %v1379_v59 = vrot.slane %v1377_v2, 5 }
  0xac   : > { %v3648_v46 = vsel %vm6433_vm9, %v3639_v22, %v3647_v15  ;;  %v1391_v27 = vshll.u32 %v5177_v30, 16  ;;  %v1366_v54 = vor.u32 %v1365_v44, %v1362_v13  ;;  %v1397_v43 = vshll.u32 %v6978_v63, 16  ;;  %v7002_v22 = vld [vmem:[%s6351_s5 + $0x44] sm:$0x3] }
  0xad   : > { %v5451_v52 = vcombine.low %v3630_v21, %v3648_v46  ;;  %v1385_v60 = vrot.slane %v1383_v41, 5  ;;  %v1390_v26 = vrot.slane %v1388_v4, 4  ;;  %v1380_v58 = vor.u32 %v1379_v59, %v1376_v37 }
  0xae   : > { %v1393_v39 = vrot.slane %v1391_v27, 5  ;;  %v1402_v53 = vshrl.u32 %v5179_v3, 16  ;;  %v1367_v56 = vrot.slane %v1366_v54, 4  ;;  %v1405_v57 = vshll.u32 %v5179_v3, 16 }
  0xaf   : > { %v1411_v36 = vshll.u32 %v6984_v42, 16  ;;  %v1656_v6 = vand.u32 %v5214_v61, %v6362_v5  ;;  %5906 = vmatmul.mubr.msk.bf16.vlgmr.msra.gmra.mrb[0].mxu0 %vm319_vm3, %v5451_v52  ;;  %v1381_v16 = vrot.slane %v1380_v58, 4  ;;  %v1399_v34 = vrot.slane %v1397_v43, 5 }
  0xb0   : > { %v1394_v9 = vor.u32 %v1393_v39, %v1390_v26  ;;  %v1404_v48 = vrot.slane %v1402_v53, 4  ;;  %v1372_v17 = vsel %vm6471_vm12, %v1367_v56, %v1371_v23  ;;  %5914 = vmatpush3.bf16.msra.mxu0 %v3906_v49  ;;  %v1407_v30 = vrot.slane %v1405_v57, 5 }
  0xb1   : > { %v1413_v21 = vrot.slane %v1411_v36, 5  ;;  %5793 = vmatprep.subr.bf16.mxu1 %v1656_v6  ;;  %v3650_v13 = vshrl.u32 %v6875_v47, 16  ;;  %v1386_v33 = vsel %vm6471_vm12, %v1381_v16, %v1385_v60  ;;  %v3653_v15 = vshll.u32 %v6875_v47, 16  ;;  %v7015_v60 = vld [vmem:[%s6351_s5 + $0x4c] sm:$0x3] }
  0xb2   : > { %v1395_v51 = vrot.slane %v1394_v9, 4  ;;  %v3659_v35 = vshrl.u32 %v6993_v10, 16  ;;  %v5190_v2 = vcombine.low %v1372_v17, %v1386_v33  ;;  %v1408_v3 = vor.u32 %v1407_v30, %v1404_v48  ;;  %v7021_v9 = vld [vmem:[%s6351_s5 + $0x54] sm:$0x3] }
  0xb3   : > { %v3652_v44 = vrot.slane %v3650_v13, 5  ;;  %v3662_v49 = vshll.u32 %v6993_v10, 16  ;;  %v3655_v41 = vrot.slane %v3653_v15, 6  ;;  %v3668_v46 = vshrl.u32 %v6878_v28, 16 }
  0xb4   : > { %v1400_v23 = vsel %vm6471_vm12, %v1395_v51, %v1399_v34  ;;  %v3661_v4 = vrot.slane %v3659_v35, 5  ;;  %5785 = vmatprep.mubr.msk.bf16.mxu1 %vm319_vm3, %v5190_v2  ;;  %v1409_v37 = vrot.slane %v1408_v3, 4  ;;  %v3671_v47 = vshll.u32 %v6878_v28, 16  ;;  %v5181_v51 = vld [vmem:[%s6351_s5 + $0x28] sm:$0xf] }
  0xb5   : > { %v3664_v59 = vrot.slane %v3662_v49, 6  ;;  %v3677_v27 = vshrl.u32 %v7002_v22, 16  ;;  %v3656_v61 = vor.u32 %v3655_v41, %v3652_v44  ;;  %v3670_v52 = vrot.slane %v3668_v46, 5  ;;  %v7035_v41 = vld [vmem:[%s6351_s5 + $0x2c] sm:$0x1] }
  0xb6   : > { %v3680_v54 = vshll.u32 %v7002_v22, 16  ;;  %v3686_v26 = vshrl.u32 %v6887_v31, 16  ;;  %v1414_v58 = vsel %vm6471_vm12, %v1409_v37, %v1413_v21  ;;  %v3673_v43 = vrot.slane %v3671_v47, 6  ;;  %v5183_v46 = vld [vmem:[%s6351_s5 + $0x30] sm:$0xf] }
  0xb7   : > { %v3665_v39 = vor.u32 %v3664_v59, %v3661_v4  ;;  %v3679_v53 = vrot.slane %v3677_v27, 5  ;;  %v5191_v56 = vcombine.low %v1400_v23, %v1414_v58  ;;  %v3657_v28 = vrot.slane %v3656_v61, 4 }
  0xb8   : > { %v3682_v57 = vrot.slane %v3680_v54, 6  ;;  %v3688_v36 = vrot.slane %v3686_v26, 5  ;;  %v3674_v16 = vor.u32 %v3673_v43, %v3670_v52  ;;  %v3689_v34 = vshll.u32 %v6887_v31, 16  ;;  %v7041_v52 = vld [vmem:[%s6351_s5 + $0x34] sm:$0x1] }
  0xb9   : > { %v3695_v48 = vshrl.u32 %v7015_v60, 16  ;;  %v3698_v17 = vshll.u32 %v7015_v60, 16  ;;  %5786 = vmatmul.mubr.msk.bf16.vlgmr.msra.gmra.mrb[0].mxu1 %vm319_vm3, %v5191_v56  ;;  %v3666_v30 = vsel %vm6433_vm9, %v3657_v28, %v3665_v39  ;;  %v3704_v13 = vshrl.u32 %v6895_v38, 16  ;;  %v5185_v54 = vld [vmem:[%s6351_s5 + $0x38] sm:$0xf] }
  0xba   : > { %v3683_v21 = vor.u32 %v3682_v57, %v3679_v53  ;;  %v3707_v33 = vshll.u32 %v6895_v38, 16  ;;  %5794 = vmatpush3.bf16.msra.mxu1 %v1656_v6  ;;  %v3675_v15 = vrot.slane %v3674_v16, 4  ;;  %v3691_v31 = vrot.slane %v3689_v34, 6  ;;  %v7046_v53 = vld [vmem:[%s6351_s5 + $0x3c] sm:$0x1] }
  0xbb   : > { %v3697_v35 = vrot.slane %v3695_v48, 5  ;;  %v3700_v2 = vrot.slane %v3698_v17, 6  ;;  %v3706_v3 = vrot.slane %v3704_v13, 5  ;;  %v3713_v49 = vshrl.u32 %v7021_v9, 16  ;;  %v5187_v16 = vld [vmem:[%s6351_s5 + $0x40] sm:$0xf] }
  0xbc   : > { %v3709_v44 = vrot.slane %v3707_v33, 6  ;;  %v3716_v23 = vshll.u32 %v7021_v9, 16  ;;  %v3684_v38 = vsel %vm6433_vm9, %v3675_v15, %v3683_v21  ;;  %v3692_v4 = vor.u32 %v3691_v31, %v3688_v36  ;;  %v7054_v21 = vld [vmem:[%s6351_s5 + $0x44] sm:$0x1]  ;;  %v5458_v31 = vld [vmem:[%s6351_s5 + $0x18] sm:$0xc] }
  0xbd   : > { %v3701_v6 = vor.u32 %v3700_v2, %v3697_v35  ;;  %v1416_v37 = vshrl.u32 %v5181_v51, 16  ;;  %v5452_v59 = vcombine.low %v3666_v30, %v3684_v38  ;;  %v3715_v27 = vrot.slane %v3713_v49, 5  ;;  %v5459_v49 = vld [vmem:[%s6351_s5 + $0x20] sm:$0xc] }
  0xbe   : > { %v3710_v47 = vor.u32 %v3709_v44, %v3706_v3  ;;  %v3718_v61 = vrot.slane %v3716_v23, 6  ;;  %v3693_v26 = vrot.slane %v3692_v4, 4  ;;  %v1419_v39 = vshll.u32 %v5181_v51, 16 }
  0xbf   : > { %v1418_v58 = vrot.slane %v1416_v37, 4  ;;  %v1425_v43 = vshll.u32 %v7035_v41, 16  ;;  %5909 = vmatprep.mubr.msk.bf16.mxu0 %vm319_vm3, %v5452_v59  ;;  %v1430_v57 = vshrl.u32 %v5183_v46, 16  ;;  %v1433_v36 = vshll.u32 %v5183_v46, 16 }
  0xc0   : > { %v3711_v56 = vrot.slane %v3710_v47, 4  ;;  %v3719_v28 = vor.u32 %v3718_v61, %v3715_v27  ;;  %v3702_v34 = vsel %vm6433_vm9, %v3693_v26, %v3701_v6  ;;  %v1421_v48 = vrot.slane %v1419_v39, 5  ;;  %v5460_v27 = vld [vmem:[%s6351_s5 + $0x28] sm:$0xc] }
  0xc1   : > { %v1427_v17 = vrot.slane %v1425_v43, 5  ;;  %v1439_v30 = vshll.u32 %v7041_v52, 16  ;;  %v1432_v33 = vrot.slane %v1430_v57, 4  ;;  %v1435_v51 = vrot.slane %v1433_v36, 5  ;;  %v5461_v57 = vld [vmem:[%s6351_s5 + $0x30] sm:$0xc] }
  0xc2   : > { %v3720_v13 = vsel %vm6433_vm9, %v3711_v56, %v3719_v28  ;;  %v1444_v15 = vshrl.u32 %v5185_v54, 16  ;;  %v1422_v2 = vor.u32 %v1421_v48, %v1418_v58  ;;  %v1447_v44 = vshll.u32 %v5185_v54, 16 }
  0xc3   : > { %v5453_v35 = vcombine.low %v3702_v34, %v3720_v13  ;;  %v1441_v3 = vrot.slane %v1439_v30, 5  ;;  %v1436_v23 = vor.u32 %v1435_v51, %v1432_v33  ;;  %v1453_v4 = vshll.u32 %v7046_v53, 16  ;;  %v5491_v30 = vld [vmem:[%s6346_s28 + $0x28] sm:$0x3] }
  0xc4   : > { %v1446_v38 = vrot.slane %v1444_v15, 4  ;;  %v1458_v6 = vshrl.u32 %v5187_v16, 16  ;;  %v1423_v46 = vrot.slane %v1422_v2, 4  ;;  %v1449_v37 = vrot.slane %v1447_v44, 5  ;;  %v7087_v44 = vld [vmem:[%s6351_s5 + $0x20] sm:$0xe] }
  0xc5   : > { %5910 = vmatmul.mubr.msk.bf16.gmra.mrb[4].mxu0 %vm319_vm3, %v5453_v35  ;;  %v1461_v59 = vshll.u32 %v5187_v16, 16  ;;  %v1467_v47 = vshll.u32 %v7054_v21, 16  ;;  %v1437_v61 = vrot.slane %v1436_v23, 4  ;;  %v1455_v26 = vrot.slane %v1453_v4, 5 }
  0xc6   : > { %v1460_v58 = vrot.slane %v1458_v6, 4  ;;  %v5466_v54 = vrot.slane %v5458_v31, 10  ;;  %v1428_v39 = vsel %vm6471_vm12, %v1423_v46, %v1427_v17  ;;  %v1450_v43 = vor.u32 %v1449_v37, %v1446_v38  ;;  %v7073_v17 = vld [vmem:[%s6351_s5 + $0x8] sm:$0xe]  ;;  %v7076_v31 = vld [vmem:[%s6351_s5 + $0x10] sm:$0xe] }
  0xc7   : > { %v1463_v56 = vrot.slane %v1461_v59, 5  ;;  %v1469_v28 = vrot.slane %v1467_v47, 5  ;;  %v1442_v36 = vsel %vm6471_vm12, %v1437_v61, %v1441_v3  ;;  %v3849_v16 = vrot.slane %v6909_v50, 6  ;;  %v5231_v59 = vld [vmem:[%s6346_s28 + $0x10] sm:$0x3] }
  0xc8   : > { %v5467_v34 = vrot.slane %v5459_v49, 10  ;;  %v3853_v48 = vrot.slane %v6923_v55, 6  ;;  %v5192_v13 = vcombine.low %v1428_v39, %v1442_v36  ;;  %v1451_v33 = vrot.slane %v1450_v43, 4  ;;  %v7084_v55 = vld [vmem:[%s6351_s5 + $0x18] sm:$0xe] }
  0xc9   : > { %v1464_v51 = vor.u32 %v1463_v56, %v1460_v58  ;;  %v5468_v15 = vrot.slane %v5460_v27, 10  ;;  %v3850_v35 = vsel %vm6556_vm14, %v5466_v54, %v3849_v16  ;;  %v3857_v50 = vrot.slane %v6938_v7, 6  ;;  %v5463_v43 = vld [vmem:[%s6351_s5 + $0x40] sm:$0xc]  ;;  %v5464_v36 = vld [vmem:[%s6351_s5 + $0x48] sm:$0xc] }
  0xca   : > { %v3854_v2 = vsel %vm6556_vm14, %v5467_v34, %v3853_v48  ;;  %v5469_v3 = vrot.slane %v5461_v57, 10  ;;  %5789 = vmatprep.mubr.msk.bf16.mxu1 %vm319_vm3, %v5192_v13  ;;  %v1456_v49 = vsel %vm6471_vm12, %v1451_v33, %v1455_v26  ;;  %v3861_v4 = vrot.slane %v6945_v32, 6  ;;  %v5462_v26 = vld [vmem:[%s6351_s5 + $0x38] sm:$0xc]  ;;  %v5465_v13 = vld [vmem:[%s6351_s5 + $0x50] sm:$0xc] }
  0xcb   : > { %v1465_v23 = vrot.slane %v1464_v51, 4  ;;  %v5475_v38 = vcombine.low %v3850_v35, %v3854_v2  ;;  %v3858_v6 = vsel %vm6556_vm14, %v5468_v15, %v3857_v50  ;;  %v4025_v7 = vand.u32 %v5491_v30, %v6362_v5  ;;  %v7123_v33 = vld [vmem:[%s6351_s5 + $0x28] sm:$0xe]  ;;  %v7131_v35 = vld [vmem:[%s6351_s5 + $0x30] sm:$0xe] }
  0xcc   : > { %v5206_v46 = vrot.slane %v7073_v17, 9  ;;  %v1599_v37 = vrot.slane %v6960_v40, 5  ;;  %v3862_v32 = vsel %vm6556_vm14, %v5469_v3, %v3861_v4  ;;  %v5207_v27 = vrot.slane %v7076_v31, 9 }
  0xcd   : > { %v1470_v47 = vsel %vm6471_vm12, %v1465_v23, %v1469_v28  ;;  %5915 = vmatprep.mubr.msk.bf16.mxu0 %vm319_vm3, %v5475_v38  ;;  %v1603_v61 = vrot.slane %v6970_v24, 5  ;;  %v5476_v54 = vcombine.low %v3858_v6, %v3862_v32  ;;  %5923 = vmatprep.subr.bf16.mxu0 %v4025_v7  ;;  %v5208_v39 = vrot.slane %v7084_v55, 9  ;;  %v7145_v6 = vld [vmem:[%s6351_s5 + $0x40] sm:$0xe] }
  0xce   : > { %v5193_v58 = vcombine.low %v1456_v49, %v1470_v47  ;;  %v1600_v40 = vsel %vm6372_vm6, %v5206_v46, %v1599_v37  ;;  %v1607_v28 = vrot.slane %v6978_v63, 5  ;;  %v5209_v57 = vrot.slane %v7087_v44, 9  ;;  %v7138_v49 = vld [vmem:[%s6351_s5 + $0x38] sm:$0xe]  ;;  %v5516_v47 = vld [vmem:[%s6346_s28 + $0x2a] sm:$0x3] }
  0xcf   : > { %v1604_v56 = vsel %vm6372_vm6, %v5207_v27, %v1603_v61  ;;  %v1611_v24 = vrot.slane %v6984_v42, 5  ;;  %5916 = vmatmul.mubr.msk.bf16.vlgmr.msra.gmra.mrb[0].mxu0 %vm319_vm3, %v5476_v54  ;;  %v1910_v34 = vand.u32 %v5231_v59, %v6362_v5  ;;  %v5470_v48 = vrot.slane %v5462_v26, 10  ;;  %v6231_v59 = vld [vmem:[%s6351_s5 + $0x20] ss:$8 sps:$4 sm:$0xff]   ;;  %v7159_v26 = vld [vmem:[%s6351_s5 + $0xc] sm:$0x3] }
  0xd0   : > { %5790 = vmatmul.mubr.msk.bf16.gmra.mrb[4].mxu1 %vm319_vm3, %v5193_v58  ;;  %v5215_v16 = vcombine.low %v1600_v40, %v1604_v56  ;;  %v3865_v30 = vrot.slane %v6993_v10, 6  ;;  %5924 = vmatpush3.bf16.msra.mxu0 %v4025_v7  ;;  %v1608_v63 = vsel %vm6372_vm6, %v5208_v39, %v1607_v28  ;;  %v5471_v51 = vrot.slane %v5463_v43, 10  ;;  %v7172_v43 = vld [vmem:[%s6351_s5 + $0x14] sm:$0x3] }
  0xd1   : > { %v1612_v42 = vsel %vm6372_vm6, %v5209_v57, %v1611_v24  ;;  %v3869_v15 = vrot.slane %v7002_v22, 6  ;;  %5803 = vmatprep.subr.bf16.mxu1 %v1910_v34  ;;  %v5472_v50 = vrot.slane %v5464_v36, 10  ;;  %v3873_v3 = vrot.slane %v7015_v60, 6 }
  0xd2   : > { %5795 = vmatprep.mubr.msk.bf16.mxu1 %vm319_vm3, %v5215_v16  ;;  %v5216_v10 = vcombine.low %v1608_v63, %v1612_v42  ;;  %v3866_v2 = vsel %vm6556_vm14, %v5470_v48, %v3865_v30  ;;  %v5473_v23 = vrot.slane %v5465_v13, 10  ;;  %v3877_v38 = vrot.slane %v7021_v9, 6 }
  0xd3   : > { %v3870_v22 = vsel %vm6556_vm14, %v5471_v51, %v3869_v15  ;;  %v5210_v4 = vrot.slane %v7123_v33, 9  ;;  %v3874_v46 = vsel %vm6556_vm14, %v5472_v50, %v3873_v3  ;;  %v1615_v37 = vrot.slane %v7035_v41, 5  ;;  %v6232_v50 = vld [vmem:[%s6351_s5 + $0x30] ss:$8 sps:$4 sm:$0xff]  }
  0xd4   : > { %v5477_v7 = vcombine.low %v3866_v2, %v3870_v22  ;;  %v5211_v60 = vrot.slane %v7131_v35, 9  ;;  %v3878_v32 = vsel %vm6556_vm14, %v5473_v23, %v3877_v38  ;;  %v1619_v9 = vrot.slane %v7041_v52, 5 }
  0xd5   : > { %v5212_v27 = vrot.slane %v7138_v49, 9  ;;  %v1623_v61 = vrot.slane %v7046_v53, 5  ;;  %v5478_v58 = vcombine.low %v3874_v46, %v3878_v32  ;;  %v1616_v41 = vsel %vm6372_vm6, %v5210_v4, %v1615_v37  ;;  %v6233_v37 = vld [vmem:[%s6351_s5 + $0x40] ss:$8 sps:$4 sm:$0xff]  }
  0xd6   : > { %5919 = vmatprep.mubr.msk.bf16.mxu0 %vm319_vm3, %v5477_v7  ;;  %v5213_v54 = vrot.slane %v7145_v6, 9  ;;  %v1627_v40 = vrot.slane %v7054_v21, 5  ;;  %v1620_v39 = vsel %vm6372_vm6, %v5211_v60, %v1619_v9  ;;  %v4255_v53 = vand.u32 %v5516_v47, %v6362_v5  ;;  %v7197_v47 = vld [vmem:[%s6351_s5 + $0x24] sm:$0x3] }
  0xd7   : > { %v1624_v52 = vsel %vm6372_vm6, %v5212_v27, %v1623_v61  ;;  %v1740_v56 = vshrl.u32 %v7073_v17, 16  ;;  %5920 = vmatmul.mubr.msk.bf16.gmra.mrb[4].mxu0 %vm319_vm3, %v5478_v58  ;;  %v5217_v28 = vcombine.low %v1616_v41, %v1620_v39  ;;  %v1743_v57 = vshll.u32 %v7073_v17, 16  ;;  %v5256_v41 = vld [vmem:[%s6346_s28 + $0x12] sm:$0x3] }
  0xd8   : > { %5796 = vmatmul.mubr.msk.bf16.vlgmr.msra.gmra.mrb[0].mxu1 %vm319_vm3, %v5216_v10  ;;  %v1628_v21 = vsel %vm6372_vm6, %v5213_v54, %v1627_v40  ;;  %v1749_v24 = vshrl.u32 %v7159_v26, 16  ;;  %5925 = vmatprep.mubr.msk.bf16.mxu0 %vm319_vm3, %v6231_v59  ;;  %v1752_v48 = vshll.u32 %v7159_v26, 16  ;;  %v1758_v30 = vshrl.u32 %v7076_v31, 16 }
  0xd9   : > { %5804 = vmatpush3.bf16.msra.mxu1 %v1910_v34  ;;  %v5218_v36 = vcombine.low %v1624_v52, %v1628_v21  ;;  %v1742_v16 = vrot.slane %v1740_v56, 5  ;;  %5799 = vmatprep.mubr.msk.bf16.mxu1 %vm319_vm3, %v5217_v28  ;;  %v1745_v13 = vrot.slane %v1743_v57, 6  ;;  %v1761_v42 = vshll.u32 %v7076_v31, 16  ;;  %v7188_v34 = vld [vmem:[%s6351_s5 + $0x1c] sm:$0x3] }
  0xda   : > { %5933 = vmatprep.subr.bf16.mxu0 %v4255_v53  ;;  %v1751_v63 = vrot.slane %v1749_v24, 5  ;;  %v1767_v17 = vshrl.u32 %v7172_v43, 16  ;;  %v1754_v51 = vrot.slane %v1752_v48, 6  ;;  %v1760_v15 = vrot.slane %v1758_v30, 5  ;;  %v7211_v57 = vld [vmem:[%s6351_s5 + $0x2c] sm:$0x3] }
  0xdb   : > { %v1770_v10 = vshll.u32 %v7172_v43, 16  ;;  %v1776_v2 = vshrl.u32 %v7084_v55, 16  ;;  %v1746_v3 = vor.u32 %v1745_v13, %v1742_v16  ;;  %v1763_v22 = vrot.slane %v1761_v42, 6  ;;  %v6234_v42 = vld [vmem:[%s6351_s5 + $0x50] ss:$8 sps:$4 sm:$0xff]  }
  0xdc   : > { %v1769_v23 = vrot.slane %v1767_v17, 5  ;;  %v1779_v38 = vshll.u32 %v7084_v55, 16  ;;  %v1755_v31 = vor.u32 %v1754_v51, %v1751_v63  ;;  %v1785_v46 = vshrl.u32 %v7188_v34, 16  ;;  %v7220_v51 = vld [vmem:[%s6351_s5 + $0x34] sm:$0x3] }
  0xdd   : > { %v1772_v4 = vrot.slane %v1770_v10, 6  ;;  %v1778_v7 = vrot.slane %v1776_v2, 5  ;;  %v1747_v60 = vrot.slane %v1746_v3, 4  ;;  %v1764_v59 = vor.u32 %v1763_v22, %v1760_v15 }
  0xde   : > { %v1781_v32 = vrot.slane %v1779_v38, 6  ;;  %v1788_v9 = vshll.u32 %v7188_v34, 16  ;;  %v1787_v61 = vrot.slane %v1785_v46, 5  ;;  %v1794_v58 = vshrl.u32 %v7087_v44, 16 }
  0xdf   : > { %v1773_v27 = vor.u32 %v1772_v4, %v1769_v23  ;;  %v1797_v55 = vshll.u32 %v7087_v44, 16  ;;  %5926 = vmatmul.mubr.msk.bf16.vlgmr.msra.gmra.mrb[0].mxu0 %vm319_vm3, %v6232_v50  ;;  %v1756_v54 = vsel %vm6433_vm9, %v1747_v60, %v1755_v31  ;;  %v1765_v40 = vrot.slane %v1764_v59, 4  ;;  %v7233_v59 = vld [vmem:[%s6351_s5 + $0x3c] sm:$0x3] }
  0xe0   : > { %5800 = vmatmul.mubr.msk.bf16.gmra.mrb[4].mxu1 %vm319_vm3, %v5218_v36  ;;  %v1782_v39 = vor.u32 %v1781_v32, %v1778_v7  ;;  %v1790_v52 = vrot.slane %v1788_v9, 6  ;;  %5934 = vmatpush3.bf16.msra.mxu0 %v4255_v53  ;;  %v1796_v56 = vrot.slane %v1794_v58, 5  ;;  %v1803_v21 = vshrl.u32 %v7197_v47, 16 }
  0xe1   : > { %v1799_v28 = vrot.slane %v1797_v55, 6  ;;  %v1806_v44 = vshll.u32 %v7197_v47, 16  ;;  %5929 = vmatprep.mubr.msk.bf16.mxu0 %vm319_vm3, %v6233_v37  ;;  %v1774_v24 = vsel %vm6433_vm9, %v1765_v40, %v1773_v27  ;;  %v2068_v48 = vand.u32 %v5256_v41, %v6362_v5 }
  0xe2   : > { %v1783_v36 = vrot.slane %v1782_v39, 4  ;;  %v1791_v16 = vor.u32 %v1790_v52, %v1787_v61  ;;  %v5232_v30 = vcombine.low %v1756_v54, %v1774_v24  ;;  %v1805_v13 = vrot.slane %v1803_v21, 5  ;;  %v7241_v52 = vld [vmem:[%s6351_s5 + $0x44] sm:$0x3] }
  0xe3   : > { %v1800_v53 = vor.u32 %v1799_v28, %v1796_v56  ;;  %v1808_v63 = vrot.slane %v1806_v44, 6  ;;  %5813 = vmatprep.subr.bf16.mxu1 %v2068_v48  ;;  %v1812_v15 = vshrl.u32 %v7123_v33, 16  ;;  %v1815_v10 = vshll.u32 %v7123_v33, 16 }
  0xe4   : > { %v1792_v17 = vsel %vm6433_vm9, %v1783_v36, %v1791_v16  ;;  %v1821_v2 = vshrl.u32 %v7211_v57, 16  ;;  %5805 = vmatprep.mubr.msk.bf16.mxu1 %vm319_vm3, %v5232_v30  ;;  %v1824_v22 = vshll.u32 %v7211_v57, 16  ;;  %v1830_v23 = vshrl.u32 %v7131_v35, 16  ;;  %v5500_v36 = vld [vmem:[%s6351_s5 + $0x20] sm:$0xf] }
  0xe5   : > { %v1801_v50 = vrot.slane %v1800_v53, 4  ;;  %v1809_v3 = vor.u32 %v1808_v63, %v1805_v13  ;;  %v1814_v38 = vrot.slane %v1812_v15, 5  ;;  %v1817_v31 = vrot.slane %v1815_v10, 6 }
  0xe6   : > { %v1823_v4 = vrot.slane %v1821_v2, 5  ;;  %v1833_v7 = vshll.u32 %v7131_v35, 16  ;;  %v1826_v37 = vrot.slane %v1824_v22, 6  ;;  %v1832_v33 = vrot.slane %v1830_v23, 5 }
  0xe7   : > { %v1810_v46 = vsel %vm6433_vm9, %v1801_v50, %v1809_v3  ;;  %v1839_v60 = vshrl.u32 %v7220_v51, 16  ;;  %5930 = vmatmul.mubr.msk.bf16.gmra.mrb[4].mxu0 %vm319_vm3, %v6234_v42  ;;  %v1818_v9 = vor.u32 %v1817_v31, %v1814_v38  ;;  %v1842_v61 = vshll.u32 %v7220_v51, 16  ;;  %v5502_v50 = vld [vmem:[%s6351_s5 + $0x28] sm:$0xf] }
  0xe8   : > { %v5233_v32 = vcombine.low %v1792_v17, %v1810_v46  ;;  %v1835_v27 = vrot.slane %v1833_v7, 6  ;;  %v1827_v58 = vor.u32 %v1826_v37, %v1823_v4  ;;  %v1848_v55 = vshrl.u32 %v7138_v49, 16  ;;  %v7251_v17 = vld [vmem:[%s6351_s5 + $0x24] sm:$0x1]  ;;  %v7259_v4 = vld [vmem:[%s6351_s5 + $0x2c] sm:$0x1] }
  0xe9   : > { %v1841_v35 = vrot.slane %v1839_v60, 5  ;;  %v1851_v41 = vshll.u32 %v7138_v49, 16  ;;  %v1819_v54 = vrot.slane %v1818_v9, 4  ;;  %v1844_v39 = vrot.slane %v1842_v61, 6  ;;  %v7267_v61 = vld [vmem:[%s6351_s5 + $0x34] sm:$0x1] }
  0xea   : > { %5806 = vmatmul.mubr.msk.bf16.vlgmr.msra.gmra.mrb[0].mxu1 %vm319_vm3, %v5233_v32  ;;  %v1836_v40 = vor.u32 %v1835_v27, %v1832_v33  ;;  %v1857_v56 = vshrl.u32 %v7233_v59, 16  ;;  %v1850_v28 = vrot.slane %v1848_v55, 5  ;;  %v1860_v44 = vshll.u32 %v7233_v59, 16  ;;  %v5504_v33 = vld [vmem:[%s6351_s5 + $0x30] sm:$0xf] }
  0xeb   : > { %5814 = vmatpush3.bf16.msra.mxu1 %v2068_v48  ;;  %v1853_v21 = vrot.slane %v1851_v41, 6  ;;  %v1866_v24 = vshrl.u32 %v7145_v6, 16  ;;  %v1828_v49 = vsel %vm6433_vm9, %v1819_v54, %v1827_v58  ;;  %v1845_v30 = vor.u32 %v1844_v39, %v1841_v35  ;;  %v5506_v54 = vld [vmem:[%s6351_s5 + $0x38] sm:$0xf] }
  0xec   : > { %v1837_v16 = vrot.slane %v1836_v40, 4  ;;  %v1859_v53 = vrot.slane %v1857_v56, 5  ;;  %v1862_v63 = vrot.slane %v1860_v44, 6  ;;  %v1869_v48 = vshll.u32 %v7145_v6, 16 }
  0xed   : > { %v1854_v13 = vor.u32 %v1853_v21, %v1850_v28  ;;  %v1868_v42 = vrot.slane %v1866_v24, 5  ;;  %v1875_v10 = vshrl.u32 %v7241_v52, 16  ;;  %v1878_v2 = vshll.u32 %v7241_v52, 16 }
  0xee   : > { %v1846_v15 = vsel %vm6433_vm9, %v1837_v16, %v1845_v30  ;;  %v4117_v3 = vshrl.u32 %v5500_v36, 16  ;;  %v1863_v38 = vor.u32 %v1862_v63, %v1859_v53  ;;  %v1871_v31 = vrot.slane %v1869_v48, 6  ;;  %v5541_v63 = vld [vmem:[%s6346_s28 + $0x2c] sm:$0x3] }
  0xef   : > { %v5234_v22 = vcombine.low %v1828_v49, %v1846_v15  ;;  %v1855_v23 = vrot.slane %v1854_v13, 4  ;;  %v1877_v6 = vrot.slane %v1875_v10, 5  ;;  %v1880_v7 = vrot.slane %v1878_v2, 6  ;;  %v5240_v2 = vld [vmem:[%s6351_s5 + $0x8] sm:$0xc] }
  0xf0   : > { %v4119_v46 = vrot.slane %v4117_v3, 4  ;;  %v4120_v37 = vshll.u32 %v5500_v36, 16  ;;  %v1872_v32 = vor.u32 %v1871_v31, %v1868_v42  ;;  %v4126_v9 = vshll.u32 %v7251_v17, 16  ;;  %v7272_v36 = vld [vmem:[%s6351_s5 + $0x3c] sm:$0x1] }
  0xf1   : > { %5809 = vmatprep.mubr.msk.bf16.mxu1 %vm319_vm3, %v5234_v22  ;;  %v1864_v60 = vsel %vm6433_vm9, %v1855_v23, %v1863_v38  ;;  %v4131_v27 = vshrl.u32 %v5502_v50, 16  ;;  %v1881_v58 = vor.u32 %v1880_v7, %v1877_v6  ;;  %v4134_v55 = vshll.u32 %v5502_v50, 16  ;;  %v5241_v38 = vld [vmem:[%s6351_s5 + $0x10] sm:$0xc] }
  0xf2   : > { %v4122_v35 = vrot.slane %v4120_v37, 5  ;;  %v4140_v41 = vshll.u32 %v7259_v4, 16  ;;  %v1873_v40 = vrot.slane %v1872_v32, 4  ;;  %v4128_v39 = vrot.slane %v4126_v9, 5  ;;  %v5242_v37 = vld [vmem:[%s6351_s5 + $0x18] sm:$0xc] }
  0xf3   : > { %v4133_v56 = vrot.slane %v4131_v27, 4  ;;  %v4145_v28 = vshrl.u32 %v5504_v33, 16  ;;  %v4136_v44 = vrot.slane %v4134_v55, 5  ;;  %v4148_v49 = vshll.u32 %v5504_v33, 16  ;;  %v5243_v27 = vld [vmem:[%s6351_s5 + $0x20] sm:$0xc] }
  0xf4   : > { %v4123_v21 = vor.u32 %v4122_v35, %v4119_v46  ;;  %v4142_v24 = vrot.slane %v4140_v41, 5  ;;  %v1882_v16 = vsel %vm6433_vm9, %v1873_v40, %v1881_v58  ;;  %v4154_v53 = vshll.u32 %v7267_v61, 16 }
  0xf5   : > { %v4147_v30 = vrot.slane %v4145_v28, 4  ;;  %v4159_v13 = vshrl.u32 %v5506_v54, 16  ;;  %v5235_v42 = vcombine.low %v1864_v60, %v1882_v16  ;;  %v4137_v15 = vor.u32 %v4136_v44, %v4133_v56  ;;  %v5510_v16 = vld [vmem:[%s6351_s5 + $0x48] sm:$0xf] }
  0xf6   : > { %v4124_v48 = vrot.slane %v4123_v21, 4  ;;  %v4150_v10 = vrot.slane %v4148_v49, 5  ;;  %v4156_v50 = vrot.slane %v4154_v53, 5  ;;  %v4162_v22 = vshll.u32 %v5506_v54, 16  ;;  %v5273_v54 = vld [vmem:[%s6346_s28 + $0x14] sm:$0x3] }
  0xf7   : > { %v4161_v3 = vrot.slane %v4159_v13, 4  ;;  %v4168_v23 = vshll.u32 %v7272_v36, 16  ;;  %5810 = vmatmul.mubr.msk.bf16.gmra.mrb[4].mxu1 %vm319_vm3, %v5235_v42  ;;  %v4138_v6 = vrot.slane %v4137_v15, 4  ;;  %v4413_v46 = vand.u32 %v5541_v63, %v6362_v5  ;;  %v5508_v21 = vld [vmem:[%s6351_s5 + $0x40] sm:$0xf] }
  0xf8   : > { %v4129_v31 = vsel %vm6471_vm12, %v4124_v48, %v4128_v39  ;;  %v4151_v7 = vor.u32 %v4150_v10, %v4147_v30  ;;  %v4164_v33 = vrot.slane %v4162_v22, 5  ;;  %v5248_v32 = vrot.slane %v5240_v2, 10  ;;  %v7310_v48 = vld [vmem:[%s6351_s5 + $0x4c] sm:$0x1]  ;;  %v5512_v22 = vld [vmem:[%s6351_s5 + $0x50] sm:$0xf] }
  0xf9   : > { %v4170_v60 = vrot.slane %v4168_v23, 5  ;;  %v2011_v9 = vrot.slane %v7159_v26, 6  ;;  %v4143_v58 = vsel %vm6471_vm12, %v4138_v6, %v4142_v24  ;;  %5943 = vmatprep.subr.bf16.mxu0 %v4413_v46  ;;  %v5249_v55 = vrot.slane %v5241_v38, 10  ;;  %v7296_v26 = vld [vmem:[%s6351_s5 + $0x44] sm:$0x1] }
  0xfa   : > { %v4152_v35 = vrot.slane %v4151_v7, 4  ;;  %v2015_v41 = vrot.slane %v7172_v43, 6  ;;  %v5517_v40 = vcombine.low %v4129_v31, %v4143_v58  ;;  %v4165_v39 = vor.u32 %v4164_v33, %v4161_v3  ;;  %v7320_v23 = vld [vmem:[%s6351_s5 + $0x54] sm:$0x1]  ;;  %v7327_v58 = vld [vmem:[%s6351_s5 + $0x5c] sm:$0x1] }
  0xfb   : > { %v2012_v56 = vsel %vm6556_vm14, %v5248_v32, %v2011_v9  ;;  %v5250_v28 = vrot.slane %v5242_v37, 10  ;;  %v2019_v49 = vrot.slane %v7188_v34, 6  ;;  %v5251_v43 = vrot.slane %v5243_v27, 10  ;;  %v5514_v37 = vld [vmem:[%s6351_s5 + $0x58] sm:$0xf] }
  0xfc   : > { %v4157_v44 = vsel %vm6471_vm12, %v4152_v35, %v4156_v50  ;;  %v2016_v24 = vsel %vm6556_vm14, %v5249_v55, %v2015_v41  ;;  %5935 = vmatprep.mubr.msk.bf16.mxu0 %vm319_vm3, %v5517_v40  ;;  %v4166_v30 = vrot.slane %v4165_v39, 4  ;;  %v2023_v13 = vrot.slane %v7197_v47, 6 }
  0xfd   : > { %v5257_v53 = vcombine.low %v2012_v56, %v2016_v24  ;;  %v2187_v63 = vand.u32 %v5273_v54, %v6362_v5  ;;  %v2020_v42 = vsel %vm6556_vm14, %v5250_v28, %v2019_v49  ;;  %v4173_v15 = vshrl.u32 %v5508_v21, 16  ;;  %v5244_v28 = vld [vmem:[%s6351_s5 + $0x28] sm:$0xc] }
  0xfe   : > { %v4176_v34 = vshll.u32 %v5508_v21, 16  ;;  %v4182_v10 = vshll.u32 %v7296_v26, 16  ;;  %v4171_v2 = vsel %vm6471_vm12, %v4166_v30, %v4170_v60  ;;  %v2024_v47 = vsel %vm6556_vm14, %v5251_v43, %v2023_v13  ;;  %v5245_v43 = vld [vmem:[%s6351_s5 + $0x30] sm:$0xc] }
  0xff   : > { %5815 = vmatprep.mubr.msk.bf16.mxu1 %vm319_vm3, %v5257_v53  ;;  %5823 = vmatprep.subr.bf16.mxu1 %v2187_v63  ;;  %v4187_v50 = vshrl.u32 %v5510_v16, 16  ;;  %v4190_v3 = vshll.u32 %v5510_v16, 16  ;;  %v5518_v38 = vcombine.low %v4157_v44, %v4171_v2  ;;  %v5258_v31 = vcombine.low %v2020_v42, %v2024_v47 }
 0x100   : > { %v4175_v6 = vrot.slane %v4173_v15, 4  ;;  %v4178_v7 = vrot.slane %v4176_v34, 5  ;;  %v4184_v33 = vrot.slane %v4182_v10, 5  ;;  %v4196_v9 = vshll.u32 %v7310_v48, 16  ;;  %v5246_v34 = vld [vmem:[%s6351_s5 + $0x38] sm:$0xc] }
 0x101   : > { %v4189_v32 = vrot.slane %v4187_v50, 4  ;;  %v4192_v60 = vrot.slane %v4190_v3, 5  ;;  %5936 = vmatmul.mubr.msk.bf16.vlgmr.msra.gmra.mrb[0].mxu0 %vm319_vm3, %v5518_v38  ;;  %5816 = vmatmul.mubr.msk.bf16.vlgmr.msra.gmra.mrb[0].mxu1 %vm319_vm3, %v5258_v31  ;;  %v4201_v35 = vshrl.u32 %v5512_v22, 16  ;;  %v4204_v55 = vshll.u32 %v5512_v22, 16  ;;  %v5247_v10 = vld [vmem:[%s6351_s5 + $0x40] sm:$0xc] }
 0x102   : > { %v4179_v27 = vor.u32 %v4178_v7, %v4175_v6  ;;  %v4210_v41 = vshll.u32 %v7320_v23, 16  ;;  %5944 = vmatpush3.bf16.msra.mxu0 %v4413_v46  ;;  %5824 = vmatpush3.bf16.msra.mxu1 %v2187_v63  ;;  %v4198_v40 = vrot.slane %v4196_v9, 5  ;;  %v4215_v39 = vshrl.u32 %v5514_v37, 16  ;;  %v7341_v22 = vld [vmem:[%s6351_s5 + $0x20] sm:$0xe] }
 0x103   : > { %v4193_v54 = vor.u32 %v4192_v60, %v4189_v32  ;;  %v4218_v56 = vshll.u32 %v5514_v37, 16  ;;  %v4203_v44 = vrot.slane %v4201_v35, 4  ;;  %v4206_v24 = vrot.slane %v4204_v55, 5  ;;  %v7348_v60 = vld [vmem:[%s6351_s5 + $0x28] sm:$0xe] }
 0x104   : > { %v4180_v21 = vrot.slane %v4179_v27, 4  ;;  %v4212_v49 = vrot.slane %v4210_v41, 5  ;;  %v4217_v30 = vrot.slane %v4215_v39, 4  ;;  %v4224_v13 = vshll.u32 %v7327_v58, 16  ;;  %v7358_v55 = vld [vmem:[%s6351_s5 + $0x30] sm:$0xe] }
 0x105   : > { %v4194_v16 = vrot.slane %v4193_v54, 4  ;;  %v4220_v53 = vrot.slane %v4218_v56, 5  ;;  %v4207_v63 = vor.u32 %v4206_v24, %v4203_v44  ;;  %v5252_v42 = vrot.slane %v5244_v28, 10  ;;  %v5558_v56 = vld [vmem:[%s6346_s28 + $0x2e] sm:$0x3] }
 0x106   : > { %v4185_v46 = vsel %vm6471_vm12, %v4180_v21, %v4184_v33  ;;  %v2027_v15 = vrot.slane %v7211_v57, 6  ;;  %v4226_v50 = vrot.slane %v4224_v13, 5  ;;  %v5253_v3 = vrot.slane %v5245_v43, 10  ;;  %v6235_v28 = vld [vmem:[%s6351_s5 + $0x10] ss:$8 sps:$4 sm:$0xff]  }
 0x107   : > { %v4199_v2 = vsel %vm6471_vm12, %v4194_v16, %v4198_v40  ;;  %v4221_v47 = vor.u32 %v4220_v53, %v4217_v30  ;;  %v4208_v31 = vrot.slane %v4207_v63, 4  ;;  %v2031_v57 = vrot.slane %v7220_v51, 6  ;;  %v7376_v43 = vld [vmem:[%s6351_s5 + $0x40] sm:$0xe]  ;;  %v7384_v13 = vld [vmem:[%s6351_s5 + $0x48] sm:$0xe] }
 0x108   : > { %v5519_v38 = vcombine.low %v4185_v46, %v4199_v2  ;;  %v2028_v6 = vsel %vm6556_vm14, %v5252_v42, %v2027_v15  ;;  %v5254_v37 = vrot.slane %v5246_v34, 10  ;;  %v2035_v33 = vrot.slane %v7233_v59, 6  ;;  %v7361_v59 = vld [vmem:[%s6351_s5 + $0x38] sm:$0xe]  ;;  %v7393_v15 = vld [vmem:[%s6351_s5 + $0x50] sm:$0xe] }
 0x109   : > { %v4222_v7 = vrot.slane %v4221_v47, 4  ;;  %v5255_v32 = vrot.slane %v5247_v10, 10  ;;  %v4213_v9 = vsel %vm6471_vm12, %v4208_v31, %v4212_v49  ;;  %v2032_v27 = vsel %vm6556_vm14, %v5253_v3, %v2031_v57  ;;  %v5298_v49 = vld [vmem:[%s6346_s28 + $0x16] sm:$0x3]  ;;  %v7396_v34 = vld [vmem:[%s6351_s5 + $0x58] sm:$0xe] }
 0x10a   : > { %5939 = vmatprep.mubr.msk.bf16.mxu0 %vm319_vm3, %v5519_v38  ;;  %v2039_v51 = vrot.slane %v7241_v52, 6  ;;  %v5533_v35 = vrot.slane %v7341_v22, 9  ;;  %v5259_v54 = vcombine.low %v2028_v6, %v2032_v27  ;;  %v2036_v40 = vsel %vm6556_vm14, %v5254_v37, %v2035_v33  ;;  %v7410_v31 = vld [vmem:[%s6351_s5 + $0x24] sm:$0x3] }
 0x10b   : > { %v4227_v41 = vsel %vm6471_vm12, %v4222_v7, %v4226_v50  ;;  %v4356_v39 = vrot.slane %v7251_v17, 5  ;;  %v5534_v44 = vrot.slane %v7348_v60, 9  ;;  %v4360_v24 = vrot.slane %v7259_v4, 5 }
 0x10c   : > { %v5520_v21 = vcombine.low %v4213_v9, %v4227_v41  ;;  %v2040_v52 = vsel %vm6556_vm14, %v5255_v32, %v2039_v51  ;;  %5819 = vmatprep.mubr.msk.bf16.mxu1 %vm319_vm3, %v5259_v54  ;;  %v5535_v30 = vrot.slane %v7358_v55, 9  ;;  %v4364_v53 = vrot.slane %v7267_v61, 5  ;;  %v6236_v9 = vld [vmem:[%s6351_s5 + $0x20] ss:$8 sps:$4 sm:$0xff]  }
 0x10d   : > { %v5260_v16 = vcombine.low %v2036_v40, %v2040_v52  ;;  %v4357_v17 = vsel %vm6372_vm6, %v5533_v35, %v4356_v39  ;;  %v4361_v4 = vsel %vm6372_vm6, %v5534_v44, %v4360_v24  ;;  %v5536_v46 = vrot.slane %v7361_v59, 9  ;;  %v7426_v35 = vld [vmem:[%s6351_s5 + $0x2c] sm:$0x3]  ;;  %v6237_v40 = vld [vmem:[%s6351_s5 + $0x30] ss:$8 sps:$4 sm:$0xff]  }
 0x10e   : > { %5940 = vmatmul.mubr.msk.bf16.gmra.mrb[4].mxu0 %vm319_vm3, %v5520_v21  ;;  %v4368_v63 = vrot.slane %v7272_v36, 5  ;;  %v4667_v42 = vand.u32 %v5558_v56, %v6362_v5  ;;  %v5542_v61 = vcombine.low %v4357_v17, %v4361_v4  ;;  %v4365_v10 = vsel %vm6372_vm6, %v5535_v30, %v4364_v53  ;;  %v7437_v24 = vld [vmem:[%s6351_s5 + $0x34] sm:$0x3] }
 0x10f   : > { %5820 = vmatmul.mubr.msk.bf16.gmra.mrb[4].mxu1 %vm319_vm3, %v5260_v16  ;;  %v2417_v2 = vand.u32 %v5298_v49, %v6362_v5  ;;  %v5537_v47 = vrot.slane %v7376_v43, 9  ;;  %v4372_v36 = vrot.slane %v7296_v26, 5  ;;  %v5538_v3 = vrot.slane %v7384_v13, 9 }
 0x110   : > { %v4369_v50 = vsel %vm6372_vm6, %v5536_v46, %v4368_v63  ;;  %5953 = vmatprep.subr.bf16.mxu0 %v4667_v42  ;;  %5825 = vmatprep.mubr.msk.bf16.mxu1 %vm319_vm3, %v6235_v28  ;;  %v4376_v38 = vrot.slane %v7310_v48, 5  ;;  %v5539_v57 = vrot.slane %v7393_v15, 9  ;;  %v4380_v7 = vrot.slane %v7320_v23, 5 }
 0x111   : > { %5945 = vmatprep.mubr.msk.bf16.mxu0 %vm319_vm3, %v5542_v61  ;;  %v5543_v6 = vcombine.low %v4365_v10, %v4369_v50  ;;  %5833 = vmatprep.subr.bf16.mxu1 %v2417_v2  ;;  %v5540_v37 = vrot.slane %v7396_v34, 9  ;;  %v4373_v26 = vsel %vm6372_vm6, %v5537_v47, %v4372_v36  ;;  %v4384_v48 = vrot.slane %v7327_v58, 5  ;;  %v7449_v50 = vld [vmem:[%s6351_s5 + $0x3c] sm:$0x3] }
 0x112   : > { %v4377_v33 = vsel %vm6372_vm6, %v5538_v3, %v4376_v38  ;;  %v4497_v32 = vshrl.u32 %v7341_v22, 16  ;;  %v4381_v51 = vsel %vm6372_vm6, %v5539_v57, %v4380_v7  ;;  %v4500_v23 = vshll.u32 %v7341_v22, 16  ;;  %v5583_v57 = vld [vmem:[%s6346_s28 + $0x30] sm:$0x3]  ;;  %v6238_v7 = vld [vmem:[%s6351_s5 + $0x40] ss:$8 sps:$4 sm:$0xff]  }
 0x113   : > { %v5544_v27 = vcombine.low %v4373_v26, %v4377_v33  ;;  %v4506_v41 = vshrl.u32 %v7410_v31, 16  ;;  %v4385_v54 = vsel %vm6372_vm6, %v5540_v37, %v4384_v48  ;;  %v4509_v58 = vshll.u32 %v7410_v31, 16 }
 0x114   : > { %v4499_v39 = vrot.slane %v4497_v32, 5  ;;  %v4515_v56 = vshrl.u32 %v7348_v60, 16  ;;  %v5545_v28 = vcombine.low %v4381_v51, %v4385_v54  ;;  %v4502_v21 = vrot.slane %v4500_v23, 6  ;;  %v5282_v32 = vld [vmem:[%s6351_s5 + $0x10] sm:$0xf] }
 0x115   : > { %v4508_v52 = vrot.slane %v4506_v41, 5  ;;  %v4518_v44 = vshll.u32 %v7348_v60, 16  ;;  %v4511_v22 = vrot.slane %v4509_v58, 6  ;;  %v4524_v16 = vshrl.u32 %v7426_v35, 16  ;;  %v5284_v41 = vld [vmem:[%s6351_s5 + $0x18] sm:$0xf] }
 0x116   : > { %5946 = vmatmul.mubr.msk.bf16.vlgmr.msra.gmra.mrb[0].mxu0 %vm319_vm3, %v5543_v6  ;;  %v4517_v49 = vrot.slane %v4515_v56, 5  ;;  %v4527_v17 = vshll.u32 %v7426_v35, 16  ;;  %v4503_v30 = vor.u32 %v4502_v21, %v4499_v39  ;;  %v4533_v4 = vshrl.u32 %v7358_v55, 16  ;;  %v5286_v56 = vld [vmem:[%s6351_s5 + $0x20] sm:$0xf] }
 0x117   : > { %5954 = vmatpush3.bf16.msra.mxu0 %v4667_v42  ;;  %5826 = vmatmul.mubr.msk.bf16.vlgmr.msra.gmra.mrb[0].mxu1 %vm319_vm3, %v6236_v9  ;;  %v4520_v53 = vrot.slane %v4518_v44, 6  ;;  %v4536_v60 = vshll.u32 %v7358_v55, 16  ;;  %v4512_v46 = vor.u32 %v4511_v22, %v4508_v52  ;;  %v4526_v63 = vrot.slane %v4524_v16, 5 }
 0x118   : > { %5834 = vmatpush3.bf16.msra.mxu1 %v2417_v2  ;;  %5949 = vmatprep.mubr.msk.bf16.mxu0 %vm319_vm3, %v5544_v27  ;;  %v4529_v61 = vrot.slane %v4527_v17, 6  ;;  %v4542_v10 = vshrl.u32 %v7437_v24, 16  ;;  %v4504_v42 = vrot.slane %v4503_v30, 4  ;;  %v4535_v36 = vrot.slane %v4533_v4, 5  ;;  %v5288_v30 = vld [vmem:[%s6351_s5 + $0x28] sm:$0xf] }
 0x119   : > { %5829 = vmatprep.mubr.msk.bf16.mxu1 %vm319_vm3, %v6237_v40  ;;  %v4521_v47 = vor.u32 %v4520_v53, %v4517_v49  ;;  %v4538_v3 = vrot.slane %v4536_v60, 6  ;;  %5973 = vmatprep.subr.bf16.mxu1 %v6367_v8  ;;  %v4545_v38 = vshll.u32 %v7437_v24, 16  ;;  %v4551_v6 = vshrl.u32 %v7361_v59, 16 }
 0x11a   : > { %v4530_v55 = vor.u32 %v4529_v61, %v4526_v63  ;;  %v4544_v2 = vrot.slane %v4542_v10, 5  ;;  %v4513_v37 = vsel %vm6433_vm9, %v4504_v42, %v4512_v46  ;;  %v4554_v48 = vshll.u32 %v7361_v59, 16 }
 0x11b   : > { %v4522_v26 = vrot.slane %v4521_v47, 4  ;;  %v4539_v33 = vor.u32 %v4538_v3, %v4535_v36  ;;  %v4547_v9 = vrot.slane %v4545_v38, 6  ;;  %v4553_v27 = vrot.slane %v4551_v6, 5  ;;  %v7476_v38 = vld [vmem:[%s6351_s5 + $0x44] sm:$0x3] }
 0x11c   : > { %v4560_v51 = vshrl.u32 %v7449_v50, 16  ;;  %v4563_v23 = vshll.u32 %v7449_v50, 16  ;;  %v4556_v39 = vrot.slane %v4554_v48, 6  ;;  %v4825_v58 = vand.u32 %v5583_v57, %v6362_v5 }
 0x11d   : > { %v4531_v54 = vsel %vm6433_vm9, %v4522_v26, %v4530_v55  ;;  %v4540_v40 = vrot.slane %v4539_v33, 4  ;;  %v4548_v21 = vor.u32 %v4547_v9, %v4544_v2  ;;  %v2279_v49 = vshrl.u32 %v5282_v32, 16 }
 0x11e   : > { %5950 = vmatmul.mubr.msk.bf16.gmra.mrb[4].mxu0 %vm319_vm3, %v5545_v28  ;;  %v5559_v59 = vcombine.low %v4513_v37, %v4531_v54  ;;  %v4562_v52 = vrot.slane %v4560_v51, 5  ;;  %v4565_v44 = vrot.slane %v4563_v23, 6  ;;  %v4557_v22 = vor.u32 %v4556_v39, %v4553_v27  ;;  %5963 = vmatprep.subr.bf16.mxu0 %v4825_v58  ;;  %v7487_v39 = vld [vmem:[%s6351_s5 + $0x4c] sm:$0x3] }
 0x11f   : > { %5830 = vmatmul.mubr.msk.bf16.gmra.mrb[4].mxu1 %vm319_vm3, %v6238_v7  ;;  %v2282_v16 = vshll.u32 %v5282_v32, 16  ;;  %v2293_v17 = vshrl.u32 %v5284_v41, 16  ;;  %v4549_v5 = vsel %vm6433_vm9, %v4540_v40, %v4548_v21  ;;  %v2296_v28 = vshll.u32 %v5284_v41, 16 }
 0x120   : > { %5955 = vmatprep.mubr.msk.bf16.mxu0 %vm319_vm3, %v5559_v59  ;;  %v4566_v53 = vor.u32 %v4565_v44, %v4562_v52  ;;  %v2307_v4 = vshrl.u32 %v5286_v56, 16  ;;  %v4558_v60 = vrot.slane %v4557_v22, 4  ;;  %v2281_v46 = vrot.slane %v2279_v49, 4 }
 0x121   : > { %v2284_v63 = vrot.slane %v2282_v16, 5  ;;  %v2295_v61 = vrot.slane %v2293_v17, 4  ;;  %v2298_v10 = vrot.slane %v2296_v28, 5  ;;  %v2310_v47 = vshll.u32 %v5286_v56, 16 }
 0x122   : > { %v2309_v42 = vrot.slane %v2307_v4, 4  ;;  %v2321_v36 = vshrl.u32 %v5288_v30, 16  ;;  %v4567_v3 = vsel %vm6433_vm9, %v4558_v60, %v4566_v53  ;;  %v2324_v2 = vshll.u32 %v5288_v30, 16  ;;  %v7499_v53 = vld [vmem:[%s6351_s5 + $0x54] sm:$0x3] }
 0x123   : > { %v2285_v55 = vor.u32 %v2284_v63, %v2281_v46  ;;  %v4569_v6 = vshrl.u32 %v7376_v43, 16  ;;  %v5560_v57 = vcombine.low %v4549_v5, %v4567_v3  ;;  %v2299_v7 = vor.u32 %v2298_v10, %v2295_v61 }
 0x124   : > { %v2312_v37 = vrot.slane %v2310_v47, 5  ;;  %v2323_v26 = vrot.slane %v2321_v36, 4  ;;  %v2326_v48 = vrot.slane %v2324_v2, 5  ;;  %v4572_v9 = vshll.u32 %v7376_v43, 16 }
 0x125   : > { %v2286_v33 = vrot.slane %v2285_v55, 4  ;;  %v4571_v32 = vrot.slane %v4569_v6, 5  ;;  %v2300_v27 = vrot.slane %v2299_v7, 4  ;;  %v4578_v23 = vshrl.u32 %v7476_v38, 16  ;;  %v5290_v6 = vld [vmem:[%s6351_s5 + $0x30] sm:$0xf] }
 0x126   : > { %5956 = vmatmul.mubr.msk.bf16.vlgmr.msra.gmra.mrb[0].mxu0 %vm319_vm3, %v5560_v57  ;;  %v2313_v51 = vor.u32 %v2312_v37, %v2309_v42  ;;  %v4581_v41 = vshll.u32 %v7476_v38, 16  ;;  %v2327_v40 = vor.u32 %v2326_v48, %v2323_v26  ;;  %v4574_v56 = vrot.slane %v4572_v9, 6  ;;  %v7522_v9 = vld [vmem:[%s6351_s5 + $0x34] sm:$0x1] }
 0x127   : > { %v2291_v54 = vsel %vm6471_vm12, %v2286_v33, %v6380_v20  ;;  %5964 = vmatpush3.bf16.msra.mxu0 %v4825_v58  ;;  %v4587_v43 = vshrl.u32 %v7384_v13, 16  ;;  %v2305_v59 = vsel %vm6471_vm12, %v2300_v27, %v6388_v29  ;;  %v4580_v52 = vrot.slane %v4578_v23, 5 }
 0x128   : > { %v2314_v21 = vrot.slane %v2313_v51, 4  ;;  %v4583_v44 = vrot.slane %v4581_v41, 6  ;;  %v5299_v22 = vcombine.low %v2291_v54, %v2305_v59  ;;  %v2328_v49 = vrot.slane %v2327_v40, 4  ;;  %v5292_v41 = vld [vmem:[%s6351_s5 + $0x38] sm:$0xf] }
 0x129   : > { %v4575_v16 = vor.u32 %v4574_v56, %v4571_v32  ;;  %v4589_v20 = vrot.slane %v4587_v43, 5  ;;  %v4590_v30 = vshll.u32 %v7384_v13, 16  ;;  %v4596_v5 = vshrl.u32 %v7487_v39, 16  ;;  %v7508_v13 = vld [vmem:[%s6351_s5 + $0x5c] sm:$0x3] }
 0x12a   : > { %v2319_v58 = vsel %vm6471_vm12, %v2314_v21, %v6397_v45  ;;  %v4584_v17 = vor.u32 %v4583_v44, %v4580_v52  ;;  %5835 = vmatprep.mubr.msk.bf16.mxu1 %vm319_vm3, %v5299_v22  ;;  %v2333_v29 = vsel %vm6471_vm12, %v2328_v49, %v6408_v1  ;;  %v4599_v4 = vshll.u32 %v7487_v39, 16  ;;  %v7529_v56 = vld [vmem:[%s6351_s5 + $0x3c] sm:$0x1]  ;;  %v5294_v22 = vld [vmem:[%s6351_s5 + $0x40] sm:$0xf] }
 0x12b   : > { %v4576_v28 = vrot.slane %v4575_v16, 4  ;;  %v4605_v60 = vshrl.u32 %v7393_v15, 16  ;;  %v5300_v45 = vcombine.low %v2319_v58, %v2333_v29  ;;  %v4592_v46 = vrot.slane %v4590_v30, 6 }
 0x12c   : > { %v4598_v63 = vrot.slane %v4596_v5, 5  ;;  %v4608_v61 = vshll.u32 %v7393_v15, 16  ;;  %v4601_v42 = vrot.slane %v4599_v4, 6  ;;  %v4614_v1 = vshrl.u32 %v7499_v53, 16 }
 0x12d   : > { %v4585_v10 = vsel %vm6433_vm9, %v4576_v28, %v4584_v17  ;;  %v4607_v47 = vrot.slane %v4605_v60, 5  ;;  %5836 = vmatmul.mubr.msk.bf16.vlgmr.msra.gmra.mrb[0].mxu1 %vm319_vm3, %v5300_v45  ;;  %v4593_v36 = vor.u32 %v4592_v46, %v4589_v20  ;;  %v4617_v55 = vshll.u32 %v7499_v53, 16  ;;  %v7538_v28 = vld [vmem:[%s6351_s5 + $0x44] sm:$0x1]  ;;  %v5296_v46 = vld [vmem:[%s6351_s5 + $0x48] sm:$0xf] }
 0x12e   : > { %v4610_v3 = vrot.slane %v4608_v61, 6  ;;  %v4623_v2 = vshrl.u32 %v7396_v34, 16  ;;  %5974 = vmatpush3.bf16.msra.mxu1 %v6367_v8  ;;  %v4602_v15 = vor.u32 %v4601_v42, %v4598_v63  ;;  %v4616_v57 = vrot.slane %v4614_v1, 5 }
 0x12f   : > { %v4626_v7 = vshll.u32 %v7396_v34, 16  ;;  %v4632_v37 = vshrl.u32 %v7508_v13, 16  ;;  %v4594_v26 = vrot.slane %v4593_v36, 4  ;;  %v4619_v48 = vrot.slane %v4617_v55, 6 }
 0x130   : > { %v4611_v33 = vor.u32 %v4610_v3, %v4607_v47  ;;  %v4625_v32 = vrot.slane %v4623_v2, 5  ;;  %v4635_v23 = vshll.u32 %v7508_v13, 16  ;;  %v2335_v8 = vshrl.u32 %v5290_v6, 16  ;;  %v7544_v47 = vld [vmem:[%s6351_s5 + $0x4c] sm:$0x1] }
 0x131   : > { %v4628_v27 = vrot.slane %v4626_v7, 6  ;;  %v4634_v51 = vrot.slane %v4632_v37, 5  ;;  %v4603_v54 = vsel %vm6433_vm9, %v4594_v26, %v4602_v15  ;;  %v4620_v34 = vor.u32 %v4619_v48, %v4616_v57  ;;  %v5567_v37 = vld [vmem:[%s6351_s5 + $0x20] sm:$0xc] }
 0x132   : > { %v4612_v40 = vrot.slane %v4611_v33, 4  ;;  %v2338_v43 = vshll.u32 %v5290_v6, 16  ;;  %v5561_v59 = vcombine.low %v4585_v10, %v4603_v54  ;;  %v4637_v52 = vrot.slane %v4635_v23, 6 }
 0x133   : > { %v4629_v21 = vor.u32 %v4628_v27, %v4625_v32  ;;  %v2337_v44 = vrot.slane %v2335_v8, 4  ;;  %v2344_v20 = vshll.u32 %v7522_v9, 16  ;;  %v2349_v58 = vshrl.u32 %v5292_v41, 16  ;;  %v5568_v32 = vld [vmem:[%s6351_s5 + $0x28] sm:$0xc] }
 0x134   : > { %v4621_v49 = vsel %vm6433_vm9, %v4612_v40, %v4620_v34  ;;  %v2340_v16 = vrot.slane %v2338_v43, 5  ;;  %5959 = vmatprep.mubr.msk.bf16.mxu0 %vm319_vm3, %v5561_v59  ;;  %v4638_v30 = vor.u32 %v4637_v52, %v4634_v51  ;;  %v2352_v5 = vshll.u32 %v5292_v41, 16  ;;  %v5569_v8 = vld [vmem:[%s6351_s5 + $0x30] sm:$0xc]  ;;  %v5570_v59 = vld [vmem:[%s6351_s5 + $0x38] sm:$0xc] }
 0x135   : > { %v4630_v17 = vrot.slane %v4629_v21, 4  ;;  %v2358_v29 = vshll.u32 %v7529_v56, 16  ;;  %v2346_v60 = vrot.slane %v2344_v20, 5  ;;  %v2351_v45 = vrot.slane %v2349_v58, 4 }
 0x136   : > { %v2341_v4 = vor.u32 %v2340_v16, %v2337_v44  ;;  %v2363_v63 = vshrl.u32 %v5294_v22, 16  ;;  %v2354_v10 = vrot.slane %v2352_v5, 5  ;;  %v2366_v1 = vshll.u32 %v5294_v22, 16 }
 0x137   : > { %v4639_v61 = vsel %vm6433_vm9, %v4630_v17, %v4638_v30  ;;  %v2360_v42 = vrot.slane %v2358_v29, 5  ;;  %v2372_v2 = vshll.u32 %v7538_v28, 16  ;;  %v2377_v57 = vshrl.u32 %v5296_v46, 16  ;;  %v5571_v29 = vld [vmem:[%s6351_s5 + $0x40] sm:$0xc] }
 0x138   : > { %v5562_v36 = vcombine.low %v4621_v49, %v4639_v61  ;;  %v2342_v3 = vrot.slane %v2341_v4, 4  ;;  %v2365_v55 = vrot.slane %v2363_v63, 4  ;;  %v2355_v6 = vor.u32 %v2354_v10, %v2351_v45  ;;  %v6240_v10 = vld [vmem:[%s6351_s5 + $0x38] sm:$0xe] }
 0x139   : > { %v2368_v15 = vrot.slane %v2366_v1, 5  ;;  %v2380_v7 = vshll.u32 %v5296_v46, 16  ;;  %v2374_v26 = vrot.slane %v2372_v2, 5  ;;  %v2386_v33 = vshll.u32 %v7544_v47, 16  ;;  %v5572_v46 = vld [vmem:[%s6351_s5 + $0x48] sm:$0xc] }
 0x13a   : > { %5960 = vmatmul.mubr.msk.bf16.gmra.mrb[4].mxu0 %vm319_vm3, %v5562_v36  ;;  %v2347_v25 = vsel %vm6471_vm12, %v2342_v3, %v2346_v60  ;;  %v2542_v48 = vrot.slane %v7538_v28, 5  ;;  %v2356_v27 = vrot.slane %v2355_v6, 4  ;;  %v2379_v23 = vrot.slane %v2377_v57, 4  ;;  %v6239_v60 = vld [vmem:[%s6351_s5 + $0x30] sm:$0xe] }
 0x13b   : > { %v2369_v51 = vor.u32 %v2368_v15, %v2365_v55  ;;  %v2382_v41 = vrot.slane %v2380_v7, 5  ;;  %v2388_v54 = vrot.slane %v2386_v33, 5  ;;  %v2546_v40 = vrot.slane %v7544_v47, 5  ;;  %v5573_v36 = vld [vmem:[%s6351_s5 + $0x50] sm:$0xc] }
 0x13c   : > { %v5575_v34 = vrot.slane %v5567_v37, 10  ;;  %v4768_v43 = vrot.slane %v7410_v31, 6  ;;  %v2361_v21 = vsel %vm6471_vm12, %v2356_v27, %v2360_v42  ;;  %v5576_v22 = vrot.slane %v5568_v32, 10  ;;  %v5574_v6 = vld [vmem:[%s6351_s5 + $0x58] sm:$0xc] }
 0x13d   : > { %v2370_v52 = vrot.slane %v2369_v51, 4  ;;  %v2383_v44 = vor.u32 %v2382_v41, %v2379_v23  ;;  %v5301_v49 = vcombine.low %v2347_v25, %v2361_v21  ;;  %v4772_v20 = vrot.slane %v7426_v35, 6  ;;  %v284_v51 = vld [vmem:[#allocation2 + $0x10] sm:$0xff]  ;;  %v282_v23 = vld [vmem:[#allocation2] sm:$0xff]  ;;  %v285_v41 = vld [vmem:[#allocation2 + $0x18] sm:$0xff] }
 0x13e   : > { %v4769_v16 = vsel %vm6556_vm14, %v5575_v34, %v4768_v43  ;;  %v5577_v58 = vrot.slane %v5569_v8, 10  ;;  %v4776_v30 = vrot.slane %v7437_v24, 6  ;;  %v5578_v5 = vrot.slane %v5570_v59, 10 }
 0x13f   : > { %v2375_v31 = vsel %vm6471_vm12, %v2370_v52, %v2374_v26  ;;  %v2384_v17 = vrot.slane %v2383_v44, 4  ;;  %5839 = vmatprep.mubr.msk.bf16.mxu1 %vm319_vm3, %v5301_v49  ;;  %v4773_v28 = vsel %vm6556_vm14, %v5576_v22, %v4772_v20  ;;  %v4780_v4 = vrot.slane %v7449_v50, 6 }
 0x140   : > { %v5319_v35 = vrot.slane %v6239_v60, 9  ;;  %v2534_v45 = vrot.slane %v7522_v9, 5  ;;  %v5584_v24 = vcombine.low %v4769_v16, %v4773_v28  ;;  %v4777_v61 = vsel %vm6556_vm14, %v5577_v58, %v4776_v30  ;;  %v288_v58 = vld [vmem:[#allocation2 + $0x30] sm:$0xff] }
 0x141   : > { %v2389_v63 = vsel %vm6471_vm12, %v2384_v17, %v2388_v54  ;;  %v5320_v42 = vrot.slane %v6240_v10, 9  ;;  %v4781_v1 = vsel %vm6556_vm14, %v5578_v5, %v4780_v4  ;;  %v2538_v9 = vrot.slane %v7529_v56, 5  ;;  %v283_v54 = vld [vmem:[#allocation2 + $0x8] sm:$0xff]  ;;  %v286_v17 = vld [vmem:[#allocation2 + $0x20] sm:$0xff] }
 0x142   : > { %v5302_v47 = vcombine.low %v2375_v31, %v2389_v63  ;;  %v2535_v50 = vsel %vm6372_vm6, %v5319_v35, %v2534_v45  ;;  %5965 = vmatprep.mubr.msk.bf16.mxu0 %vm319_vm3, %v5584_v24  ;;  %v5585_v14 = vcombine.low %v4777_v61, %v4781_v1  ;;  %v5579_v3 = vrot.slane %v5571_v29, 10  ;;  %v289_v29 = vld [vmem:[#allocation2 + $0x38] sm:$0xff]  ;;  %v287_v35 = vld [vmem:[#allocation2 + $0x28] sm:$0xff] }
 0x143   : > { %v4784_v55 = vrot.slane %v7476_v38, 6  ;;  %v5580_v2 = vrot.slane %v5572_v46, 10  ;;  %v2539_v15 = vsel %vm6372_vm6, %v5320_v42, %v2538_v9  ;;  %v4788_v57 = vrot.slane %v7487_v39, 6  ;;  %v5593_v9 = vld [vmem:[%s7663_s2] ss:$0 sm:$0xff] (!%p5592_p9) }
 0x144   : > { %5840 = vmatmul.mubr.msk.bf16.gmra.mrb[4].mxu1 %vm319_vm3, %v5302_v47  ;;  %v2543_v56 = vsel %vm6372_vm6, %v5321_v18, %v2542_v48  ;;  %v2547_v7 = vsel %vm6372_vm6, %v5322_v19, %v2546_v40  ;;  %5966 = vmatmul.mubr.msk.bf16.vlgmr.msra.gmra.mrb[0].mxu0 %vm319_vm3, %v5585_v14  ;;  %v5326_v38 = vcombine.low %v2535_v50, %v2539_v15  ;;  %v5581_v26 = vrot.slane %v5573_v36, 10  ;;  %v5594_v36 = vld [vmem:[%s7664_s3] ss:$0 sm:$0xff] (!%p5592_p9) }
 0x145   : > { %v4785_v37 = vsel %vm6556_vm14, %v5579_v3, %v4784_v55  ;;  %v5327_v25 = vcombine.low %v2543_v56, %v2547_v7  ;;  %v4789_v39 = vsel %vm6556_vm14, %v5580_v2, %v4788_v57  ;;  %v4792_v0 = vrot.slane %v7499_v53, 6 }
 0x146   : > { %v5582_v33 = vrot.slane %v5574_v6, 10  ;;  %v4796_v18 = vrot.slane %v7508_v13, 6  ;;  %5849 = vmatprep.mubr.msk.bf16.mxu1 %vm319_vm3, %v5326_v38  ;;  %v5586_v11 = vcombine.low %v4785_v37, %v4789_v39  ;;  %vm4900_vm15 = vcmask 39936  }
 0x147   : > { %v4793_v12 = vsel %vm6556_vm14, %v5581_v26, %v4792_v0  ;;  %vm4967_vm0 = vcmask (!%p5592_p9), 35840  }
 0x148   : > { %v4797_v19 = vsel %vm6556_vm14, %v5582_v33, %v4796_v18  ;;  %5969 = vmatprep.mubr.msk.bf16.mxu0 %vm319_vm3, %v5586_v11 }
 0x149   : > { %v5587_v48 = vcombine.low %v4793_v12, %v4797_v19 }
 0x14c   : > { %5970 = vmatmul.mubr.msk.bf16.gmra.mrb[4].mxu0 %vm319_vm3, %v5587_v48 }
 0x150   : > { %5850 = vmatmul.mubr.msk.bf16.vlgmr.msra.gmra.mrb[4].mxu1 %vm319_vm3, %v5327_v25 }
 0x200   : > { %v5837_v53 = vpop.f32.mrb[0].mxu1 }
 0x201   : > { %v2453_v32 = vpop.f32.mrb[1].mxu1  ;;  %v5975_v8 = vadd.f32 %v5837_v53, %v284_v51 }
 0x202   : > { %v5838_v27 = vpop.f32.mrb[2].mxu1  ;;  %v5977_v40 = vadd.f32 %v2453_v32, %v282_v23 }
 0x203   : > { %v2456_v13 = vpop.f32.mrb[3].mxu1  ;;  %v5979_v62 = vadd.f32 %v5838_v27, %v285_v41 }
 0x204   : > { %v5981_v21 = vadd.f32 %v2456_v13, %v283_v54 }
 0x217   : > { %v5967_v34 = vpop.f32.mrb[0].mxu0 }
 0x218   : > { %v5976_v43 = vadd.f32 %v5975_v8, %v5967_v34  ;;  %v4861_v59 = vpop.f32.mrb[1].mxu0 }
 0x219   : > { %v5978_v52 = vadd.f32 %v5977_v40, %v4861_v59  ;;  %v5968_v44 = vpop.f32.mrb[2].mxu0 }
 0x21a   : > { %4903 = vst.msk [vmem:[#allocation2 + $0x10] sm:$0xff] %vm4900_vm15, %v5976_v43  ;;  %v5980_v22 = vadd.f32 %v5979_v62, %v5968_v44  ;;  %v4864_v49 = vpop.f32.mrb[3].mxu0 }
 0x21b   : > { %4901 = vst.msk [vmem:[#allocation2] sm:$0xff] %vm4900_vm15, %v5978_v52  ;;  %v5982_v16 = vadd.f32 %v5981_v21, %v4864_v49 }
 0x21c   : > { %4904 = vst.msk [vmem:[#allocation2 + $0x18] sm:$0xff] %vm4900_vm15, %v5980_v22 }
 0x21d   : > { %4902 = vst.msk [vmem:[#allocation2 + $0x8] sm:$0xff] %vm4900_vm15, %v5982_v16 }
 0x21f   : > { %v5971_v20 = vpop.f32.mrb[4].mxu0 }
 0x220   : > { %v4877_v31 = vpop.f32.mrb[5].mxu0 }
 0x221   : > { %v5972_v30 = vpop.f32.mrb[6].mxu0  ;;  %v4915_v55 = vld [vmem:[#allocation2 + $0x10] sm:$0xff] (!%p5592_p9) }
 0x222   : > { %v4880_v28 = vpop.f32.mrb[7].mxu0  ;;  %v4913_v50 = vld [vmem:[#allocation2] sm:$0xff] (!%p5592_p9)  ;;  %v4930_v15 = vmul.f32 (!%p5592_p9), %v5593_v9, %v4915_v55 }
 0x223   : > { %v5851_v5 = vpop.f32.mrb[4].mxu1  ;;  %v4928_v14 = vmul.f32 (!%p5592_p9), %v5593_v9, %v4913_v50  ;;  %v4916_v2 = vld [vmem:[#allocation2 + $0x18] sm:$0xff] (!%p5592_p9) }
 0x224   : > { %v5983_v4 = vadd.f32 %v5851_v5, %v288_v58  ;;  %v2627_v60 = vpop.f32.mrb[5].mxu1  ;;  %v4914_v3 = vld [vmem:[#allocation2 + $0x8] sm:$0xff] (!%p5592_p9)  ;;  %v4931_v57 = vmul.f32 (!%p5592_p9), %v5593_v9, %v4916_v2  ;;  %v4945_v18 = vadd.f32 (!%p5592_p9), %v5594_v36, %v4930_v15 }
 0x225   : > { %v5985_v45 = vadd.f32 %v2627_v60, %v286_v17  ;;  %v5852_v46 = vpop.f32.mrb[6].mxu1  ;;  %4912 = sbr.rel (%p5592_p9) target bundleno = 572 (0x23c), region = 44  ;;  %v4929_v6 = vmul.f32 (!%p5592_p9), %v5593_v9, %v4914_v3  ;;  %v4943_v37 = vadd.f32 (!%p5592_p9), %v5594_v36, %v4928_v14 }
 0x226   : > { %v5984_v63 = vadd.f32 %v5983_v4, %v5971_v20  ;;  %v5987_v24 = vadd.f32 %v5852_v46, %v289_v29  ;;  %v2630_v61 = vpop.f32.mrb[7].mxu1  ;;  %v4946_v11 = vadd.f32 (!%p5592_p9), %v5594_v36, %v4931_v57  ;;  %v4953_v13 = vmax.f32 (!%p5592_p9), %v4945_v18, 0.0 }
 0x227   : > { %v5986_v10 = vadd.f32 %v5985_v45, %v4877_v31  ;;  %v5989_v42 = vadd.f32 %v2630_v61, %v287_v35  ;;  %v4944_v33 = vadd.f32 (!%p5592_p9), %v5594_v36, %v4929_v6  ;;  %v4951_v19 = vmax.f32 (!%p5592_p9), %v4943_v37, 0.0 }
 0x228   : > { %4907 = vst.msk [vmem:[#allocation2 + $0x30] sm:$0xff] %vm4900_vm15, %v5984_v63  ;;  %v5988_v47 = vadd.f32 %v5987_v24, %v5972_v30  ;;  %v4954_v51 = vmax.f32 (!%p5592_p9), %v4946_v11, 0.0  ;;  %v4961_v62 = vpack.c.bf16 (!%p5592_p9), %v4953_v13, %v4953_v13 }
 0x229   : > { %4905 = vst.msk [vmem:[#allocation2 + $0x20] sm:$0xff] %vm4900_vm15, %v5986_v10  ;;  %v5990_v1 = vadd.f32 %v5989_v42, %v4880_v28  ;;  %v4952_v27 = vmax.f32 (!%p5592_p9), %v4944_v33, 0.0  ;;  %v4959_v41 = vpack.c.bf16 (!%p5592_p9), %v4951_v19, %v4951_v19 }
 0x22a   : > { %4908 = vst.msk [vmem:[#allocation2 + $0x38] sm:$0xff] %vm4900_vm15, %v5988_v47  ;;  %v4962_v43 = vpack.c.bf16 (!%p5592_p9), %v4954_v51, %v4954_v51 }
 0x22b   : > { %4906 = vst.msk [vmem:[#allocation2 + $0x28] sm:$0xff] %vm4900_vm15, %v5990_v1  ;;  %v4960_v34 = vpack.c.bf16 (!%p5592_p9), %v4952_v27, %v4952_v27 }
 0x22c   : > { %4968 = vst.msk [vmem:[%s6356_s9] sm:$0xf] %vm4967_vm0, %v4959_v41  ;;  %4970 = vst.msk [vmem:[%s6356_s9 + $0x8] sm:$0xf] %vm4967_vm0, %v4961_v62 }
 0x22d   : > { %4969 = vst.msk [vmem:[%s6356_s9 + $0x4] sm:$0xf] %vm4967_vm0, %v4960_v34  ;;  %4971 = vst.msk [vmem:[%s6356_s9 + $0xc] sm:$0xf] %vm4967_vm0, %v4962_v43 }
 0x22f   : > { %v4919_v38 = vld [vmem:[#allocation2 + $0x30] sm:$0xff] }
 0x230   : > { %v4917_v56 = vld [vmem:[#allocation2 + $0x20] sm:$0xff]  ;;  %v4934_v39 = vmul.f32 %v5593_v9, %v4919_v38 }
 0x231   : > { %v4932_v25 = vmul.f32 %v5593_v9, %v4917_v56  ;;  %v4920_v0 = vld [vmem:[#allocation2 + $0x38] sm:$0xff] }
 0x232   : > { %v4918_v7 = vld [vmem:[#allocation2 + $0x28] sm:$0xff]  ;;  %v4935_v12 = vmul.f32 %v5593_v9, %v4920_v0  ;;  %v4949_v32 = vadd.f32 %v5594_v36, %v4934_v39 }
 0x233   : > { %v4933_v26 = vmul.f32 %v5593_v9, %v4918_v7  ;;  %v4947_v48 = vadd.f32 %v5594_v36, %v4932_v25 }
 0x234   : > { %v4950_v23 = vadd.f32 %v5594_v36, %v4935_v12  ;;  %v4957_v40 = vmax.f32 %v4949_v32, 0.0 }
 0x235   : > { %v4948_v53 = vadd.f32 %v5594_v36, %v4933_v26  ;;  %v4955_v8 = vmax.f32 %v4947_v48, 0.0 }
 0x236   : > { %v4958_v59 = vmax.f32 %v4950_v23, 0.0  ;;  %v4965_v44 = vpack.c.bf16 %v4957_v40, %v4957_v40 }
 0x237   : > { %v4956_v54 = vmax.f32 %v4948_v53, 0.0  ;;  %v4963_v21 = vpack.c.bf16 %v4955_v8, %v4955_v8 }
 0x238   : > { %v4966_v22 = vpack.c.bf16 %v4958_v59, %v4958_v59  ;;  %4974 = vst.msk [vmem:[%s6356_s9 + $0x18] sm:$0xf] %vm4967_vm0, %v4965_v44 }
 0x239   : > { %v4964_v52 = vpack.c.bf16 %v4956_v54, %v4956_v54  ;;  %4972 = vst.msk [vmem:[%s6356_s9 + $0x10] sm:$0xf] %vm4967_vm0, %v4963_v21 }
 0x23a   : > { %4975 = vst.msk [vmem:[%s6356_s9 + $0x1c] sm:$0xf] %vm4967_vm0, %v4966_v22 }
 0x23b   : > { %4973 = vst.msk [vmem:[%s6356_s9 + $0x14] sm:$0xf] %vm4967_vm0, %v4964_v52 }
 0x23c PF: > { %s14_s19 = sadd.s32 1, %s6279_s19   ;;  %s7674_s15 = smov %s6271_s17 }
 0x23d   : > { %p11_p10 = scmp.ge.s32.totalorder %s14_s19, 42   ;;  %s7675_s16 = smov %s6275_s18 }
 0x23e   : > { %s7676_s17 = smov %s7679_s20  ;;  %s7677_s18 = smov %s7683_s21 }
 0x23f   :  { %13 = sbr.rel (!%p11_p10) target bundleno = 3 (0x3), region = 105 }

</bundles_post_ra>
